<compile_context>
chip_gen: v7x
topology: tpu7x:2x2x1
jax: 0.10.0
libtpu: 0.0.40
codegen_flags: <defaults>
</compile_context>

<pallas_src>
import functools

import jax
import jax.numpy as jnp
from jax import lax
from jax.experimental import pallas as pl
from jax.experimental.pallas import tpu as pltpu


def _lstm_kernel(xaug_ref,   # ((T+1)*R, Ip)  bf16  x + bias-indicator columns
                 wih0_ref,   # (Ip, 4Hp)      bf16  [W_ih0 ; b0 ; b1 ; 0...]
                 wrec_ref,   # (3Hp, 4Hp)     bf16  [W_hh0 ; W_ih1 ; W_hh1]
                 wfc_ref,    # (1, Hp) f32 if O==1 else (Hp, O) f32
                 bfc_ref,    # (1, O) f32
                 out_ref,    # (B, O) f32
                 xw_ref,     # ((T+1)*R, 4Hp) f32 scratch: per-step additive slabs
                 *, T, B, R, Hp, O):
    f32 = jnp.float32
    cdt = wrec_ref.dtype          # MXU operand dtype (bf16)

    # ---- hoisted input projection + bias routing: ONE batched MXU matmul.
    # Indicator columns place (x_t @ W_ih0 + b0) on the layer-0 rows and b1 on
    # the layer-1 rows of every R-row slab; each slab starts at a multiple of
    # R (>= 8) sublanes, so the per-step load below is aligned.
    xw_ref[...] = jnp.dot(xaug_ref[...], wih0_ref[...],
                          preferred_element_type=f32)

    # ---- loop-invariant row masks / zero blocks (hoisted out of the loop).
    row = lax.broadcasted_iota(jnp.int32, (R, Hp), 0)
    top = row < B                          # layer-0 rows of a slab
    bot = (row >= B) & (row < 2 * B)       # layer-1 rows of a slab
    zb = jnp.zeros((B, Hp), f32)
    ztail = jnp.zeros((R - 2 * B, Hp), f32) if R > 2 * B else None

    def gate_math(gates, c_prev):
        # ONE slab for both layers (rows 0:B layer-0, rows B:2B layer-1) —
        # every gate slice is lane-aligned, and both layers share the same
        # vregs, so EUP pushes are halved vs. per-layer gate math.
        i = jax.nn.sigmoid(gates[:, 0 * Hp:1 * Hp])
        f = jax.nn.sigmoid(gates[:, 1 * Hp:2 * Hp])
        g = jnp.tanh(gates[:, 2 * Hp:3 * Hp])
        o = jax.nn.sigmoid(gates[:, 3 * Hp:4 * Hp])
        c_new = f * c_prev + i * g
        h_new = o * jnp.tanh(c_new)
        return h_new, c_new

    def place_bot(rows_b):                 # (B, Hp) -> rows B:2B of an (R, Hp) block
        pieces = [zb, rows_b]
        if ztail is not None:
            pieces.append(ztail)
        return jnp.concatenate(pieces, axis=0)

    def fused_step(hs, cs, t):
        # Block LHS [[h0, 0, 0], [0, h0, h1]]: all 128-lane blocks are either
        # a masked copy of the carried state vreg or a sublane placement of
        # its top rows — no lane permutes.  One matmul + one gate_math.
        h0 = hs[0:B, :]
        blk0 = jnp.where(top, hs, 0.0)     # [h0 ; 0 ]
        blk1 = place_bot(h0)               # [0  ; h0]
        blk2 = jnp.where(bot, hs, 0.0)     # [0  ; h1]
        lhs = jnp.concatenate([blk0, blk1, blk2], axis=1)        # (R, 3Hp)
        gates = (jnp.dot(lhs.astype(cdt), wrec_ref[...],
                         preferred_element_type=f32)
                 + xw_ref[pl.ds(t * R, R), :])
        return gate_math(gates, cs)

    # ---- prologue: layer-0 step 0. Zero initial state => the recurrent
    # matmul is exactly zero, so it is just gate_math on the step-0 slab.
    # Layer-1 rows of that slab are all-zero, which keeps rows B:R exactly 0.
    hs, cs = gate_math(xw_ref[pl.ds(0, R), :], jnp.zeros((R, Hp), f32))

    # ---- skewed, fully-unrolled recurrence: iteration t runs layer-0 step t
    # (rows 0:B) and layer-1 step t-1 (rows B:2B); both read the same h0_{t-1}.
    # Iteration T only finishes layer-1 (its top-row outputs are discarded).
    for t in range(1, T + 1):
        hs, cs = fused_step(hs, cs, t)

    # ---- fc on the last timestep's top-layer hidden state (runs once).
    h1_last = hs[B:2 * B, :]               # (B, Hp)
    if O == 1:
        # VPU multiply + lane reduction: avoids an MXU weight push/pop for a
        # single output column.
        out = (jnp.sum(h1_last * wfc_ref[...], axis=-1, keepdims=True)
               + bfc_ref[...])
    else:
        out = (jnp.dot(h1_last, wfc_ref[...], preferred_element_type=f32)
               + bfc_ref[...])
    out_ref[...] = out.astype(out_ref.dtype)


def _round_up(n, m):
    return ((n + m - 1) // m) * m


def _pad_gate_cols(w, h, hp):
    """(rows, 4h) with gate blocks [i|f|g|o] of width h -> (rows, 4hp)."""
    if h == hp:
        return w
    r = w.shape[0]
    out = jnp.zeros((r, 4 * hp), w.dtype)
    for k in range(4):
        out = out.at[:, k * hp:k * hp + h].set(w[:, k * h:(k + 1) * h])
    return out


def _pad_rows(w, rows):
    r = w.shape[0]
    if r == rows:
        return w
    return jnp.zeros((rows, w.shape[1]), w.dtype).at[:r, :].set(w)


def lstm_model_forward(x, params, *, mxu_dtype=jnp.bfloat16):
    """x: (B, T, I) float32 (batch_first, as in PyTorch). Returns (B, O)."""
    B, T, I = x.shape
    H = params["whh0"].shape[0]
    O = params["wfc"].shape[1]
    Hp = _round_up(H, 128)            # lane-aligned gate width
    R = max(8, _round_up(2 * B, 8))   # sublane-aligned rows per per-step slab
    Ip = _round_up(I + 2, 128)        # K dim of the projection, tile-aligned
    f32 = jnp.float32

    # Lane-aligned, gate-padded weights. Zero padding keeps the padded lanes
    # of h/c exactly 0 at every step — do not break this invariant.
    wih0_p = _pad_gate_cols(params["wih0"], H, Hp)                       # (I, 4Hp)
    b0_p = _pad_gate_cols(params["b0"], H, Hp)                           # (1, 4Hp)
    b1_p = _pad_gate_cols(params["b1"], H, Hp)                           # (1, 4Hp)
    whh0_p = _pad_rows(_pad_gate_cols(params["whh0"], H, Hp), Hp)        # (Hp, 4Hp)
    wih1_p = _pad_rows(_pad_gate_cols(params["wih1"], H, Hp), Hp)        # (Hp, 4Hp)
    whh1_p = _pad_rows(_pad_gate_cols(params["whh1"], H, Hp), Hp)        # (Hp, 4Hp)

    # Fused recurrent RHS for the block-structured per-step matmul.
    w_rec = jnp.concatenate([whh0_p, wih1_p, whh1_p], axis=0).astype(mxu_dtype)

    # Augmented input-projection operands: two indicator columns route the
    # per-layer biases, so every per-step additive slab comes from ONE matmul:
    #   slab t, rows 0:B  = x_t @ W_ih0 + b0   (layer-0, steps 0..T-1)
    #   slab t, rows B:2B = b1                  (layer-1, iterations 1..T)
    #   everything else   = 0
    x_tm = jnp.transpose(x, (1, 0, 2))                                   # (T, B, I)
    x_aug = jnp.zeros((T + 1, R, Ip), f32)
    x_aug = x_aug.at[:T, :B, :I].set(x_tm)
    x_aug = x_aug.at[:T, :B, I].set(1.0)                                 # b0 indicator
    x_aug = x_aug.at[1:, B:2 * B, I + 1].set(1.0)                        # b1 indicator
    x_aug = x_aug.reshape((T + 1) * R, Ip).astype(mxu_dtype)

    wih0_aug = jnp.zeros((Ip, 4 * Hp), f32)
    wih0_aug = wih0_aug.at[:I, :].set(wih0_p)
    wih0_aug = wih0_aug.at[I, :].set(b0_p[0])
    wih0_aug = wih0_aug.at[I + 1, :].set(b1_p[0])
    wih0_aug = wih0_aug.astype(mxu_dtype)

    # fc weights: O == 1 uses a VPU row-vector dot inside the kernel.
    if O == 1:
        wfc_k = jnp.transpose(_pad_rows(params["wfc"], Hp))              # (1, Hp)
    else:
        wfc_k = _pad_rows(params["wfc"], Hp)                             # (Hp, O)
    bfc = params["bfc"]                                                  # (1, O)

    # Everything fits in ~0.7 MiB of VMEM, far under the scoped defaults
    # (16 MiB v5e / 32 MiB v6e+v7x), and the recurrence is a serial latency
    # chain, so a single grid point is correct for all three generations.
    # Streaming the projection with a grid over T (or raising
    # vmem_limit_bytes) only matters past roughly T*R >= 8-16K rows; a much
    # larger batch would instead want a ("parallel",) batch grid axis so both
    # v7x TensorCores are used.
    vmem = pl.BlockSpec(memory_space=pltpu.MemorySpace.VMEM)
    kernel = pl.pallas_call(
        functools.partial(_lstm_kernel, T=T, B=B, R=R, Hp=Hp, O=O),
        out_shape=jax.ShapeDtypeStruct((B, O), f32),
        in_specs=[vmem] * 5,
        out_specs=vmem,
        scratch_shapes=[pltpu.VMEM(((T + 1) * R, 4 * Hp), f32)],
    )
    return kernel(x_aug, wih0_aug, w_rec, wfc_k, bfc)


def make_params(key, input_size, hidden_size, output_size):
    """Deterministic synthetic parameters (PyTorch-like uniform init)."""
    H = hidden_size
    ks = jax.random.split(key, 12)
    s = 1.0 / jnp.sqrt(H)

    def u(k, shape):
        return jax.random.uniform(k, shape, jnp.float32, -s, s)

    # layer 0
    w_ih0 = u(ks[0], (4 * H, input_size))
    w_hh0 = u(ks[1], (4 * H, H))
    b_ih0 = u(ks[2], (4 * H,))
    b_hh0 = u(ks[3], (4 * H,))
    # layer 1
    w_ih1 = u(ks[4], (4 * H, H))
    w_hh1 = u(ks[5], (4 * H, H))
    b_ih1 = u(ks[6], (4 * H,))
    b_hh1 = u(ks[7], (4 * H,))
    # fc
    w_fc = u(ks[8], (output_size, H))
    b_fc = u(ks[9], (output_size,))

    return {
        "wih0": w_ih0.T, "whh0": w_hh0.T, "b0": (b_ih0 + b_hh0)[None, :],
        "wih1": w_ih1.T, "whh1": w_hh1.T, "b1": (b_ih1 + b_hh1)[None, :],
        "wfc": w_fc.T, "bfc": b_fc[None, :],
    }


def lstm_model_reference(x, params):
    """Pure-JAX reference (lax.scan, unpadded f32 weights)."""
    H = params["whh0"].shape[0]

    def cell(x_in, h, c, wih, whh, b):
        g = x_in @ wih + h @ whh + b
        i = jax.nn.sigmoid(g[:, 0 * H:1 * H])
        f = jax.nn.sigmoid(g[:, 1 * H:2 * H])
        gg = jnp.tanh(g[:, 2 * H:3 * H])
        o = jax.nn.sigmoid(g[:, 3 * H:4 * H])
        c_new = f * c + i * gg
        return o * jnp.tanh(c_new), c_new

    B = x.shape[0]
    init = (jnp.zeros((B, H)), jnp.zeros((B, H)),
            jnp.zeros((B, H)), jnp.zeros((B, H)))

    def step(carry, x_t):
        h0, c0, h1, c1 = carry
        h0, c0 = cell(x_t, h0, c0, params["wih0"], params["whh0"], params["b0"])
        h1, c1 = cell(h0, h1, c1, params["wih1"], params["whh1"], params["b1"])
        return (h0, c0, h1, c1), None

    (h0, c0, h1, c1), _ = lax.scan(step, init, jnp.transpose(x, (1, 0, 2)))
    return h1 @ params["wfc"] + params["bfc"]


if __name__ == "__main__":
    # small shapes consistent with the module's forward: x of shape (B, T, input_size)
    B, T, INPUT, HIDDEN, OUT = 2, 8, 16, 32, 1

    key = jax.random.PRNGKey(0)
    kx, kp = jax.random.split(key)
    x = jax.random.normal(kx, (B, T, INPUT), jnp.float32)
    params = make_params(kp, INPUT, HIDDEN, OUT)

    y = lstm_model_forward(x, params)
    y = jax.block_until_ready(y)

    y_ref = lstm_model_reference(x, params)
    assert y.shape == (B, OUT)
    # bf16 MXU operands (f32 accumulation + f32 gate math) introduce ~1e-3
    # level error vs. the f32 reference; 2e-2 leaves ample margin.
    assert jnp.allclose(y, y_ref, rtol=2e-2, atol=2e-2), (y, y_ref)

    print("KERNEL_OK")
</pallas_src>

<mosaic_0001>
module attributes {stable_mosaic.version = 11 : i64} {
  func.func @_lstm_kernel(%arg0: memref<72x128xbf16, #tpu.memory_space<vmem>>, %arg1: memref<128x512xbf16, #tpu.memory_space<vmem>>, %arg2: memref<384x512xbf16, #tpu.memory_space<vmem>>, %arg3: memref<1x128xf32, #tpu.memory_space<vmem>>, %arg4: memref<1x1xf32, #tpu.memory_space<vmem>>, %arg5: memref<2x1xf32, #tpu.memory_space<vmem>>, %arg6: memref<72x512xf32, #tpu.memory_space<vmem>>) attributes {dimension_semantics = [], scalar_prefetch = 0 : i64, scratch_operands = 1 : i64, tpu.core_type = #tpu.core_type<tc>} {
    %c0 = arith.constant 0 : index
    %c0_0 = arith.constant 0 : index
    %0 = vector.load %arg0[%c0, %c0_0] : memref<72x128xbf16, #tpu.memory_space<vmem>>, vector<72x128xbf16>
    %c0_1 = arith.constant 0 : index
    %c0_2 = arith.constant 0 : index
    %1 = vector.load %arg1[%c0_1, %c0_2] : memref<128x512xbf16, #tpu.memory_space<vmem>>, vector<128x512xbf16>
    %cst = arith.constant dense<0.000000e+00> : vector<72x512xf32>
    %2 = tpu.matmul %0, %1, %cst {dimension_numbers = #tpu.dot_dimension_numbers<[1], [0], [0], [1], [0, 0, 1, 1], [], []>} : vector<72x128xbf16>, vector<128x512xbf16>, vector<72x512xf32> -> vector<72x512xf32>
    %c0_3 = arith.constant 0 : index
    %c0_4 = arith.constant 0 : index
    %3 = vector.load %arg6[%c0_3, %c0_4] : memref<72x512xf32, #tpu.memory_space<vmem>>, vector<72x512xf32>
    tpu.vector_store %arg6[%c0_3, %c0_4], %2 {strides = array<i32>} : memref<72x512xf32, #tpu.memory_space<vmem>>, vector<72x512xf32>,
    %4 = tpu.iota {dimensions = array<i32: 0>} : vector<8x128xi32>
    %c2_i32 = arith.constant 2 : i32
    %5 = vector.broadcast %c2_i32 : i32 to vector<8x128xi32>
    %6 = arith.cmpi slt, %4, %5 : vector<8x128xi32>
    %c2_i32_5 = arith.constant 2 : i32
    %7 = vector.broadcast %c2_i32_5 : i32 to vector<8x128xi32>
    %8 = arith.cmpi sge, %4, %7 : vector<8x128xi32>
    %c4_i32 = arith.constant 4 : i32
    %9 = vector.broadcast %c4_i32 : i32 to vector<8x128xi32>
    %10 = arith.cmpi slt, %4, %9 : vector<8x128xi32>
    %11 = arith.andi %8, %10 : vector<8x128xi1>
    %cst_6 = arith.constant 0.000000e+00 : f32
    %12 = vector.broadcast %cst_6 : f32 to vector<2x128xf32>
    %cst_7 = arith.constant 0.000000e+00 : f32
    %13 = vector.broadcast %cst_7 : f32 to vector<4x128xf32>
    %c0_8 = arith.constant 0 : index
    %c0_9 = arith.constant 0 : index
    %14 = vector.load %arg6[%c0_8, %c0_9] : memref<72x512xf32, #tpu.memory_space<vmem>>, vector<8x512xf32>
    %cst_10 = arith.constant 0.000000e+00 : f32
    %15 = vector.broadcast %cst_10 : f32 to vector<8x128xf32>
    %16 = vector.extract_strided_slice %14 {offsets = [0, 0], sizes = [8, 128], strides = [1, 1]} : vector<8x512xf32> to vector<8x128xf32>
    %17 = arith.negf %16 : vector<8x128xf32>
    %18 = math.exp %17 : vector<8x128xf32>
    %cst_11 = arith.constant 1.000000e+00 : f32
    %19 = vector.broadcast %cst_11 : f32 to vector<8x128xf32>
    %20 = arith.addf %19, %18 : vector<8x128xf32>
    %21 = arith.divf %19, %20 : vector<8x128xf32>
    %22 = vector.extract_strided_slice %14 {offsets = [0, 128], sizes = [8, 128], strides = [1, 1]} : vector<8x512xf32> to vector<8x128xf32>
    %23 = arith.negf %22 : vector<8x128xf32>
    %24 = math.exp %23 : vector<8x128xf32>
    %cst_12 = arith.constant 1.000000e+00 : f32
    %25 = vector.broadcast %cst_12 : f32 to vector<8x128xf32>
    %26 = arith.addf %25, %24 : vector<8x128xf32>
    %27 = arith.divf %25, %26 : vector<8x128xf32>
    %28 = vector.extract_strided_slice %14 {offsets = [0, 256], sizes = [8, 128], strides = [1, 1]} : vector<8x512xf32> to vector<8x128xf32>
    %29 = math.tanh %28 : vector<8x128xf32>
    %30 = vector.extract_strided_slice %14 {offsets = [0, 384], sizes = [8, 128], strides = [1, 1]} : vector<8x512xf32> to vector<8x128xf32>
    %31 = arith.negf %30 : vector<8x128xf32>
    %32 = math.exp %31 : vector<8x128xf32>
    %cst_13 = arith.constant 1.000000e+00 : f32
    %33 = vector.broadcast %cst_13 : f32 to vector<8x128xf32>
    %34 = arith.addf %33, %32 : vector<8x128xf32>
    %35 = arith.divf %33, %34 : vector<8x128xf32>
    %36 = arith.mulf %27, %15 : vector<8x128xf32>
    %37 = arith.mulf %21, %29 : vector<8x128xf32>
    %38 = arith.addf %36, %37 : vector<8x128xf32>
    %39 = math.tanh %38 : vector<8x128xf32>
    %40 = arith.mulf %35, %39 : vector<8x128xf32>
    %41 = vector.extract_strided_slice %40 {offsets = [0, 0], sizes = [2, 128], strides = [1, 1]} : vector<8x128xf32> to vector<2x128xf32>
    %cst_14 = arith.constant 0.000000e+00 : f32
    %42 = vector.broadcast %cst_14 : f32 to vector<8x128xf32>
    %43 = arith.select %6, %40, %42 : vector<8x128xi1>, vector<8x128xf32>
    %44 = tpu.concatenate %12, %41, %13 in 0 : vector<2x128xf32>, vector<2x128xf32>, vector<4x128xf32> -> vector<8x128xf32>
    %cst_15 = arith.constant 0.000000e+00 : f32
    %45 = vector.broadcast %cst_15 : f32 to vector<8x128xf32>
    %46 = arith.select %11, %40, %45 : vector<8x128xi1>, vector<8x128xf32>
    %47 = tpu.concatenate %43, %44, %46 in 1 : vector<8x128xf32>, vector<8x128xf32>, vector<8x128xf32> -> vector<8x384xf32>
    %48 = arith.truncf %47 : vector<8x384xf32> to vector<8x384xbf16>
    %c0_16 = arith.constant 0 : index
    %c0_17 = arith.constant 0 : index
    %49 = vector.load %arg2[%c0_16, %c0_17] : memref<384x512xbf16, #tpu.memory_space<vmem>>, vector<384x512xbf16>
    %cst_18 = arith.constant dense<0.000000e+00> : vector<8x512xf32>
    %50 = tpu.matmul %48, %49, %cst_18 {dimension_numbers = #tpu.dot_dimension_numbers<[1], [0], [0], [1], [0, 0, 1, 1], [], []>} : vector<8x384xbf16>, vector<384x512xbf16>, vector<8x512xf32> -> vector<8x512xf32>
    %c8 = arith.constant 8 : index
    %c0_19 = arith.constant 0 : index
    %51 = vector.load %arg6[%c8, %c0_19] : memref<72x512xf32, #tpu.memory_space<vmem>>, vector<8x512xf32>
    %52 = arith.addf %50, %51 : vector<8x512xf32>
    %53 = vector.extract_strided_slice %52 {offsets = [0, 0], sizes = [8, 128], strides = [1, 1]} : vector<8x512xf32> to vector<8x128xf32>
    %54 = arith.negf %53 : vector<8x128xf32>
    %55 = math.exp %54 : vector<8x128xf32>
    %cst_20 = arith.constant 1.000000e+00 : f32
    %56 = vector.broadcast %cst_20 : f32 to vector<8x128xf32>
    %57 = arith.addf %56, %55 : vector<8x128xf32>
    %58 = arith.divf %56, %57 : vector<8x128xf32>
    %59 = vector.extract_strided_slice %52 {offsets = [0, 128], sizes = [8, 128], strides = [1, 1]} : vector<8x512xf32> to vector<8x128xf32>
    %60 = arith.negf %59 : vector<8x128xf32>
    %61 = math.exp %60 : vector<8x128xf32>
    %cst_21 = arith.constant 1.000000e+00 : f32
    %62 = vector.broadcast %cst_21 : f32 to vector<8x128xf32>
    %63 = arith.addf %62, %61 : vector<8x128xf32>
    %64 = arith.divf %62, %63 : vector<8x128xf32>
    %65 = vector.extract_strided_slice %52 {offsets = [0, 256], sizes = [8, 128], strides = [1, 1]} : vector<8x512xf32> to vector<8x128xf32>
    %66 = math.tanh %65 : vector<8x128xf32>
    %67 = vector.extract_strided_slice %52 {offsets = [0, 384], sizes = [8, 128], strides = [1, 1]} : vector<8x512xf32> to vector<8x128xf32>
    %68 = arith.negf %67 : vector<8x128xf32>
    %69 = math.exp %68 : vector<8x128xf32>
    %cst_22 = arith.constant 1.000000e+00 : f32
    %70 = vector.broadcast %cst_22 : f32 to vector<8x128xf32>
    %71 = arith.addf %70, %69 : vector<8x128xf32>
    %72 = arith.divf %70, %71 : vector<8x128xf32>
    %73 = arith.mulf %64, %38 : vector<8x128xf32>
    %74 = arith.mulf %58, %66 : vector<8x128xf32>
    %75 = arith.addf %73, %74 : vector<8x128xf32>
    %76 = math.tanh %75 : vector<8x128xf32>
    %77 = arith.mulf %72, %76 : vector<8x128xf32>
    %78 = vector.extract_strided_slice %77 {offsets = [0, 0], sizes = [2, 128], strides = [1, 1]} : vector<8x128xf32> to vector<2x128xf32>
    %cst_23 = arith.constant 0.000000e+00 : f32
    %79 = vector.broadcast %cst_23 : f32 to vector<8x128xf32>
    %80 = arith.select %6, %77, %79 : vector<8x128xi1>, vector<8x128xf32>
    %81 = tpu.concatenate %12, %78, %13 in 0 : vector<2x128xf32>, vector<2x128xf32>, vector<4x128xf32> -> vector<8x128xf32>
    %cst_24 = arith.constant 0.000000e+00 : f32
    %82 = vector.broadcast %cst_24 : f32 to vector<8x128xf32>
    %83 = arith.select %11, %77, %82 : vector<8x128xi1>, vector<8x128xf32>
    %84 = tpu.concatenate %80, %81, %83 in 1 : vector<8x128xf32>, vector<8x128xf32>, vector<8x128xf32> -> vector<8x384xf32>
    %85 = arith.truncf %84 : vector<8x384xf32> to vector<8x384xbf16>
    %c0_25 = arith.constant 0 : index
    %c0_26 = arith.constant 0 : index
    %86 = vector.load %arg2[%c0_25, %c0_26] : memref<384x512xbf16, #tpu.memory_space<vmem>>, vector<384x512xbf16>
    %cst_27 = arith.constant dense<0.000000e+00> : vector<8x512xf32>
    %87 = tpu.matmul %85, %86, %cst_27 {dimension_numbers = #tpu.dot_dimension_numbers<[1], [0], [0], [1], [0, 0, 1, 1], [], []>} : vector<8x384xbf16>, vector<384x512xbf16>, vector<8x512xf32> -> vector<8x512xf32>
    %c16 = arith.constant 16 : index
    %c0_28 = arith.constant 0 : index
    %88 = vector.load %arg6[%c16, %c0_28] : memref<72x512xf32, #tpu.memory_space<vmem>>, vector<8x512xf32>
    %89 = arith.addf %87, %88 : vector<8x512xf32>
    %90 = vector.extract_strided_slice %89 {offsets = [0, 0], sizes = [8, 128], strides = [1, 1]} : vector<8x512xf32> to vector<8x128xf32>
    %91 = arith.negf %90 : vector<8x128xf32>
    %92 = math.exp %91 : vector<8x128xf32>
    %cst_29 = arith.constant 1.000000e+00 : f32
    %93 = vector.broadcast %cst_29 : f32 to vector<8x128xf32>
    %94 = arith.addf %93, %92 : vector<8x128xf32>
    %95 = arith.divf %93, %94 : vector<8x128xf32>
    %96 = vector.extract_strided_slice %89 {offsets = [0, 128], sizes = [8, 128], strides = [1, 1]} : vector<8x512xf32> to vector<8x128xf32>
    %97 = arith.negf %96 : vector<8x128xf32>
    %98 = math.exp %97 : vector<8x128xf32>
    %cst_30 = arith.constant 1.000000e+00 : f32
    %99 = vector.broadcast %cst_30 : f32 to vector<8x128xf32>
    %100 = arith.addf %99, %98 : vector<8x128xf32>
    %101 = arith.divf %99, %100 : vector<8x128xf32>
    %102 = vector.extract_strided_slice %89 {offsets = [0, 256], sizes = [8, 128], strides = [1, 1]} : vector<8x512xf32> to vector<8x128xf32>
    %103 = math.tanh %102 : vector<8x128xf32>
    %104 = vector.extract_strided_slice %89 {offsets = [0, 384], sizes = [8, 128], strides = [1, 1]} : vector<8x512xf32> to vector<8x128xf32>
    %105 = arith.negf %104 : vector<8x128xf32>
    %106 = math.exp %105 : vector<8x128xf32>
    %cst_31 = arith.constant 1.000000e+00 : f32
    %107 = vector.broadcast %cst_31 : f32 to vector<8x128xf32>
    %108 = arith.addf %107, %106 : vector<8x128xf32>
    %109 = arith.divf %107, %108 : vector<8x128xf32>
    %110 = arith.mulf %101, %75 : vector<8x128xf32>
    %111 = arith.mulf %95, %103 : vector<8x128xf32>
    %112 = arith.addf %110, %111 : vector<8x128xf32>
    %113 = math.tanh %112 : vector<8x128xf32>
    %114 = arith.mulf %109, %113 : vector<8x128xf32>
    %115 = vector.extract_strided_slice %114 {offsets = [0, 0], sizes = [2, 128], strides = [1, 1]} : vector<8x128xf32> to vector<2x128xf32>
    %cst_32 = arith.constant 0.000000e+00 : f32
    %116 = vector.broadcast %cst_32 : f32 to vector<8x128xf32>
    %117 = arith.select %6, %114, %116 : vector<8x128xi1>, vector<8x128xf32>
    %118 = tpu.concatenate %12, %115, %13 in 0 : vector<2x128xf32>, vector<2x128xf32>, vector<4x128xf32> -> vector<8x128xf32>
    %cst_33 = arith.constant 0.000000e+00 : f32
    %119 = vector.broadcast %cst_33 : f32 to vector<8x128xf32>
    %120 = arith.select %11, %114, %119 : vector<8x128xi1>, vector<8x128xf32>
    %121 = tpu.concatenate %117, %118, %120 in 1 : vector<8x128xf32>, vector<8x128xf32>, vector<8x128xf32> -> vector<8x384xf32>
    %122 = arith.truncf %121 : vector<8x384xf32> to vector<8x384xbf16>
    %c0_34 = arith.constant 0 : index
    %c0_35 = arith.constant 0 : index
    %123 = vector.load %arg2[%c0_34, %c0_35] : memref<384x512xbf16, #tpu.memory_space<vmem>>, vector<384x512xbf16>
    %cst_36 = arith.constant dense<0.000000e+00> : vector<8x512xf32>
    %124 = tpu.matmul %122, %123, %cst_36 {dimension_numbers = #tpu.dot_dimension_numbers<[1], [0], [0], [1], [0, 0, 1, 1], [], []>} : vector<8x384xbf16>, vector<384x512xbf16>, vector<8x512xf32> -> vector<8x512xf32>
    %c24 = arith.constant 24 : index
    %c0_37 = arith.constant 0 : index
    %125 = vector.load %arg6[%c24, %c0_37] : memref<72x512xf32, #tpu.memory_space<vmem>>, vector<8x512xf32>
    %126 = arith.addf %124, %125 : vector<8x512xf32>
    %127 = vector.extract_strided_slice %126 {offsets = [0, 0], sizes = [8, 128], strides = [1, 1]} : vector<8x512xf32> to vector<8x128xf32>
    %128 = arith.negf %127 : vector<8x128xf32>
    %129 = math.exp %128 : vector<8x128xf32>
    %cst_38 = arith.constant 1.000000e+00 : f32
    %130 = vector.broadcast %cst_38 : f32 to vector<8x128xf32>
    %131 = arith.addf %130, %129 : vector<8x128xf32>
    %132 = arith.divf %130, %131 : vector<8x128xf32>
    %133 = vector.extract_strided_slice %126 {offsets = [0, 128], sizes = [8, 128], strides = [1, 1]} : vector<8x512xf32> to vector<8x128xf32>
    %134 = arith.negf %133 : vector<8x128xf32>
    %135 = math.exp %134 : vector<8x128xf32>
    %cst_39 = arith.constant 1.000000e+00 : f32
    %136 = vector.broadcast %cst_39 : f32 to vector<8x128xf32>
    %137 = arith.addf %136, %135 : vector<8x128xf32>
    %138 = arith.divf %136, %137 : vector<8x128xf32>
    %139 = vector.extract_strided_slice %126 {offsets = [0, 256], sizes = [8, 128], strides = [1, 1]} : vector<8x512xf32> to vector<8x128xf32>
    %140 = math.tanh %139 : vector<8x128xf32>
    %141 = vector.extract_strided_slice %126 {offsets = [0, 384], sizes = [8, 128], strides = [1, 1]} : vector<8x512xf32> to vector<8x128xf32>
    %142 = arith.negf %141 : vector<8x128xf32>
    %143 = math.exp %142 : vector<8x128xf32>
    %cst_40 = arith.constant 1.000000e+00 : f32
    %144 = vector.broadcast %cst_40 : f32 to vector<8x128xf32>
    %145 = arith.addf %144, %143 : vector<8x128xf32>
    %146 = arith.divf %144, %145 : vector<8x128xf32>
    %147 = arith.mulf %138, %112 : vector<8x128xf32>
    %148 = arith.mulf %132, %140 : vector<8x128xf32>
    %149 = arith.addf %147, %148 : vector<8x128xf32>
    %150 = math.tanh %149 : vector<8x128xf32>
    %151 = arith.mulf %146, %150 : vector<8x128xf32>
    %152 = vector.extract_strided_slice %151 {offsets = [0, 0], sizes = [2, 128], strides = [1, 1]} : vector<8x128xf32> to vector<2x128xf32>
    %cst_41 = arith.constant 0.000000e+00 : f32
    %153 = vector.broadcast %cst_41 : f32 to vector<8x128xf32>
    %154 = arith.select %6, %151, %153 : vector<8x128xi1>, vector<8x128xf32>
    %155 = tpu.concatenate %12, %152, %13 in 0 : vector<2x128xf32>, vector<2x128xf32>, vector<4x128xf32> -> vector<8x128xf32>
    %cst_42 = arith.constant 0.000000e+00 : f32
    %156 = vector.broadcast %cst_42 : f32 to vector<8x128xf32>
    %157 = arith.select %11, %151, %156 : vector<8x128xi1>, vector<8x128xf32>
    %158 = tpu.concatenate %154, %155, %157 in 1 : vector<8x128xf32>, vector<8x128xf32>, vector<8x128xf32> -> vector<8x384xf32>
    %159 = arith.truncf %158 : vector<8x384xf32> to vector<8x384xbf16>
    %c0_43 = arith.constant 0 : index
    %c0_44 = arith.constant 0 : index
    %160 = vector.load %arg2[%c0_43, %c0_44] : memref<384x512xbf16, #tpu.memory_space<vmem>>, vector<384x512xbf16>
    %cst_45 = arith.constant dense<0.000000e+00> : vector<8x512xf32>
    %161 = tpu.matmul %159, %160, %cst_45 {dimension_numbers = #tpu.dot_dimension_numbers<[1], [0], [0], [1], [0, 0, 1, 1], [], []>} : vector<8x384xbf16>, vector<384x512xbf16>, vector<8x512xf32> -> vector<8x512xf32>
    %c32 = arith.constant 32 : index
    %c0_46 = arith.constant 0 : index
    %162 = vector.load %arg6[%c32, %c0_46] : memref<72x512xf32, #tpu.memory_space<vmem>>, vector<8x512xf32>
    %163 = arith.addf %161, %162 : vector<8x512xf32>
    %164 = vector.extract_strided_slice %163 {offsets = [0, 0], sizes = [8, 128], strides = [1, 1]} : vector<8x512xf32> to vector<8x128xf32>
    %165 = arith.negf %164 : vector<8x128xf32>
    %166 = math.exp %165 : vector<8x128xf32>
    %cst_47 = arith.constant 1.000000e+00 : f32
    %167 = vector.broadcast %cst_47 : f32 to vector<8x128xf32>
    %168 = arith.addf %167, %166 : vector<8x128xf32>
    %169 = arith.divf %167, %168 : vector<8x128xf32>
    %170 = vector.extract_strided_slice %163 {offsets = [0, 128], sizes = [8, 128], strides = [1, 1]} : vector<8x512xf32> to vector<8x128xf32>
    %171 = arith.negf %170 : vector<8x128xf32>
    %172 = math.exp %171 : vector<8x128xf32>
    %cst_48 = arith.constant 1.000000e+00 : f32
    %173 = vector.broadcast %cst_48 : f32 to vector<8x128xf32>
    %174 = arith.addf %173, %172 : vector<8x128xf32>
    %175 = arith.divf %173, %174 : vector<8x128xf32>
    %176 = vector.extract_strided_slice %163 {offsets = [0, 256], sizes = [8, 128], strides = [1, 1]} : vector<8x512xf32> to vector<8x128xf32>
    %177 = math.tanh %176 : vector<8x128xf32>
    %178 = vector.extract_strided_slice %163 {offsets = [0, 384], sizes = [8, 128], strides = [1, 1]} : vector<8x512xf32> to vector<8x128xf32>
    %179 = arith.negf %178 : vector<8x128xf32>
    %180 = math.exp %179 : vector<8x128xf32>
    %cst_49 = arith.constant 1.000000e+00 : f32
    %181 = vector.broadcast %cst_49 : f32 to vector<8x128xf32>
    %182 = arith.addf %181, %180 : vector<8x128xf32>
    %183 = arith.divf %181, %182 : vector<8x128xf32>
    %184 = arith.mulf %175, %149 : vector<8x128xf32>
    %185 = arith.mulf %169, %177 : vector<8x128xf32>
    %186 = arith.addf %184, %185 : vector<8x128xf32>
    %187 = math.tanh %186 : vector<8x128xf32>
    %188 = arith.mulf %183, %187 : vector<8x128xf32>
    %189 = vector.extract_strided_slice %188 {offsets = [0, 0], sizes = [2, 128], strides = [1, 1]} : vector<8x128xf32> to vector<2x128xf32>
    %cst_50 = arith.constant 0.000000e+00 : f32
    %190 = vector.broadcast %cst_50 : f32 to vector<8x128xf32>
    %191 = arith.select %6, %188, %190 : vector<8x128xi1>, vector<8x128xf32>
    %192 = tpu.concatenate %12, %189, %13 in 0 : vector<2x128xf32>, vector<2x128xf32>, vector<4x128xf32> -> vector<8x128xf32>
    %cst_51 = arith.constant 0.000000e+00 : f32
    %193 = vector.broadcast %cst_51 : f32 to vector<8x128xf32>
    %194 = arith.select %11, %188, %193 : vector<8x128xi1>, vector<8x128xf32>
    %195 = tpu.concatenate %191, %192, %194 in 1 : vector<8x128xf32>, vector<8x128xf32>, vector<8x128xf32> -> vector<8x384xf32>
    %196 = arith.truncf %195 : vector<8x384xf32> to vector<8x384xbf16>
    %c0_52 = arith.constant 0 : index
    %c0_53 = arith.constant 0 : index
    %197 = vector.load %arg2[%c0_52, %c0_53] : memref<384x512xbf16, #tpu.memory_space<vmem>>, vector<384x512xbf16>
    %cst_54 = arith.constant dense<0.000000e+00> : vector<8x512xf32>
    %198 = tpu.matmul %196, %197, %cst_54 {dimension_numbers = #tpu.dot_dimension_numbers<[1], [0], [0], [1], [0, 0, 1, 1], [], []>} : vector<8x384xbf16>, vector<384x512xbf16>, vector<8x512xf32> -> vector<8x512xf32>
    %c40 = arith.constant 40 : index
    %c0_55 = arith.constant 0 : index
    %199 = vector.load %arg6[%c40, %c0_55] : memref<72x512xf32, #tpu.memory_space<vmem>>, vector<8x512xf32>
    %200 = arith.addf %198, %199 : vector<8x512xf32>
    %201 = vector.extract_strided_slice %200 {offsets = [0, 0], sizes = [8, 128], strides = [1, 1]} : vector<8x512xf32> to vector<8x128xf32>
    %202 = arith.negf %201 : vector<8x128xf32>
    %203 = math.exp %202 : vector<8x128xf32>
    %cst_56 = arith.constant 1.000000e+00 : f32
    %204 = vector.broadcast %cst_56 : f32 to vector<8x128xf32>
    %205 = arith.addf %204, %203 : vector<8x128xf32>
    %206 = arith.divf %204, %205 : vector<8x128xf32>
    %207 = vector.extract_strided_slice %200 {offsets = [0, 128], sizes = [8, 128], strides = [1, 1]} : vector<8x512xf32> to vector<8x128xf32>
    %208 = arith.negf %207 : vector<8x128xf32>
    %209 = math.exp %208 : vector<8x128xf32>
    %cst_57 = arith.constant 1.000000e+00 : f32
    %210 = vector.broadcast %cst_57 : f32 to vector<8x128xf32>
    %211 = arith.addf %210, %209 : vector<8x128xf32>
    %212 = arith.divf %210, %211 : vector<8x128xf32>
    %213 = vector.extract_strided_slice %200 {offsets = [0, 256], sizes = [8, 128], strides = [1, 1]} : vector<8x512xf32> to vector<8x128xf32>
    %214 = math.tanh %213 : vector<8x128xf32>
    %215 = vector.extract_strided_slice %200 {offsets = [0, 384], sizes = [8, 128], strides = [1, 1]} : vector<8x512xf32> to vector<8x128xf32>
    %216 = arith.negf %215 : vector<8x128xf32>
    %217 = math.exp %216 : vector<8x128xf32>
    %cst_58 = arith.constant 1.000000e+00 : f32
    %218 = vector.broadcast %cst_58 : f32 to vector<8x128xf32>
    %219 = arith.addf %218, %217 : vector<8x128xf32>
    %220 = arith.divf %218, %219 : vector<8x128xf32>
    %221 = arith.mulf %212, %186 : vector<8x128xf32>
    %222 = arith.mulf %206, %214 : vector<8x128xf32>
    %223 = arith.addf %221, %222 : vector<8x128xf32>
    %224 = math.tanh %223 : vector<8x128xf32>
    %225 = arith.mulf %220, %224 : vector<8x128xf32>
    %226 = vector.extract_strided_slice %225 {offsets = [0, 0], sizes = [2, 128], strides = [1, 1]} : vector<8x128xf32> to vector<2x128xf32>
    %cst_59 = arith.constant 0.000000e+00 : f32
    %227 = vector.broadcast %cst_59 : f32 to vector<8x128xf32>
    %228 = arith.select %6, %225, %227 : vector<8x128xi1>, vector<8x128xf32>
    %229 = tpu.concatenate %12, %226, %13 in 0 : vector<2x128xf32>, vector<2x128xf32>, vector<4x128xf32> -> vector<8x128xf32>
    %cst_60 = arith.constant 0.000000e+00 : f32
    %230 = vector.broadcast %cst_60 : f32 to vector<8x128xf32>
    %231 = arith.select %11, %225, %230 : vector<8x128xi1>, vector<8x128xf32>
    %232 = tpu.concatenate %228, %229, %231 in 1 : vector<8x128xf32>, vector<8x128xf32>, vector<8x128xf32> -> vector<8x384xf32>
    %233 = arith.truncf %232 : vector<8x384xf32> to vector<8x384xbf16>
    %c0_61 = arith.constant 0 : index
    %c0_62 = arith.constant 0 : index
    %234 = vector.load %arg2[%c0_61, %c0_62] : memref<384x512xbf16, #tpu.memory_space<vmem>>, vector<384x512xbf16>
    %cst_63 = arith.constant dense<0.000000e+00> : vector<8x512xf32>
    %235 = tpu.matmul %233, %234, %cst_63 {dimension_numbers = #tpu.dot_dimension_numbers<[1], [0], [0], [1], [0, 0, 1, 1], [], []>} : vector<8x384xbf16>, vector<384x512xbf16>, vector<8x512xf32> -> vector<8x512xf32>
    %c48 = arith.constant 48 : index
    %c0_64 = arith.constant 0 : index
    %236 = vector.load %arg6[%c48, %c0_64] : memref<72x512xf32, #tpu.memory_space<vmem>>, vector<8x512xf32>
    %237 = arith.addf %235, %236 : vector<8x512xf32>
    %238 = vector.extract_strided_slice %237 {offsets = [0, 0], sizes = [8, 128], strides = [1, 1]} : vector<8x512xf32> to vector<8x128xf32>
    %239 = arith.negf %238 : vector<8x128xf32>
    %240 = math.exp %239 : vector<8x128xf32>
    %cst_65 = arith.constant 1.000000e+00 : f32
    %241 = vector.broadcast %cst_65 : f32 to vector<8x128xf32>
    %242 = arith.addf %241, %240 : vector<8x128xf32>
    %243 = arith.divf %241, %242 : vector<8x128xf32>
    %244 = vector.extract_strided_slice %237 {offsets = [0, 128], sizes = [8, 128], strides = [1, 1]} : vector<8x512xf32> to vector<8x128xf32>
    %245 = arith.negf %244 : vector<8x128xf32>
    %246 = math.exp %245 : vector<8x128xf32>
    %cst_66 = arith.constant 1.000000e+00 : f32
    %247 = vector.broadcast %cst_66 : f32 to vector<8x128xf32>
    %248 = arith.addf %247, %246 : vector<8x128xf32>
    %249 = arith.divf %247, %248 : vector<8x128xf32>
    %250 = vector.extract_strided_slice %237 {offsets = [0, 256], sizes = [8, 128], strides = [1, 1]} : vector<8x512xf32> to vector<8x128xf32>
    %251 = math.tanh %250 : vector<8x128xf32>
    %252 = vector.extract_strided_slice %237 {offsets = [0, 384], sizes = [8, 128], strides = [1, 1]} : vector<8x512xf32> to vector<8x128xf32>
    %253 = arith.negf %252 : vector<8x128xf32>
    %254 = math.exp %253 : vector<8x128xf32>
    %cst_67 = arith.constant 1.000000e+00 : f32
    %255 = vector.broadcast %cst_67 : f32 to vector<8x128xf32>
    %256 = arith.addf %255, %254 : vector<8x128xf32>
    %257 = arith.divf %255, %256 : vector<8x128xf32>
    %258 = arith.mulf %249, %223 : vector<8x128xf32>
    %259 = arith.mulf %243, %251 : vector<8x128xf32>
    %260 = arith.addf %258, %259 : vector<8x128xf32>
    %261 = math.tanh %260 : vector<8x128xf32>
    %262 = arith.mulf %257, %261 : vector<8x128xf32>
    %263 = vector.extract_strided_slice %262 {offsets = [0, 0], sizes = [2, 128], strides = [1, 1]} : vector<8x128xf32> to vector<2x128xf32>
    %cst_68 = arith.constant 0.000000e+00 : f32
    %264 = vector.broadcast %cst_68 : f32 to vector<8x128xf32>
    %265 = arith.select %6, %262, %264 : vector<8x128xi1>, vector<8x128xf32>
    %266 = tpu.concatenate %12, %263, %13 in 0 : vector<2x128xf32>, vector<2x128xf32>, vector<4x128xf32> -> vector<8x128xf32>
    %cst_69 = arith.constant 0.000000e+00 : f32
    %267 = vector.broadcast %cst_69 : f32 to vector<8x128xf32>
    %268 = arith.select %11, %262, %267 : vector<8x128xi1>, vector<8x128xf32>
    %269 = tpu.concatenate %265, %266, %268 in 1 : vector<8x128xf32>, vector<8x128xf32>, vector<8x128xf32> -> vector<8x384xf32>
    %270 = arith.truncf %269 : vector<8x384xf32> to vector<8x384xbf16>
    %c0_70 = arith.constant 0 : index
    %c0_71 = arith.constant 0 : index
    %271 = vector.load %arg2[%c0_70, %c0_71] : memref<384x512xbf16, #tpu.memory_space<vmem>>, vector<384x512xbf16>
    %cst_72 = arith.constant dense<0.000000e+00> : vector<8x512xf32>
    %272 = tpu.matmul %270, %271, %cst_72 {dimension_numbers = #tpu.dot_dimension_numbers<[1], [0], [0], [1], [0, 0, 1, 1], [], []>} : vector<8x384xbf16>, vector<384x512xbf16>, vector<8x512xf32> -> vector<8x512xf32>
    %c56 = arith.constant 56 : index
    %c0_73 = arith.constant 0 : index
    %273 = vector.load %arg6[%c56, %c0_73] : memref<72x512xf32, #tpu.memory_space<vmem>>, vector<8x512xf32>
    %274 = arith.addf %272, %273 : vector<8x512xf32>
    %275 = vector.extract_strided_slice %274 {offsets = [0, 0], sizes = [8, 128], strides = [1, 1]} : vector<8x512xf32> to vector<8x128xf32>
    %276 = arith.negf %275 : vector<8x128xf32>
    %277 = math.exp %276 : vector<8x128xf32>
    %cst_74 = arith.constant 1.000000e+00 : f32
    %278 = vector.broadcast %cst_74 : f32 to vector<8x128xf32>
    %279 = arith.addf %278, %277 : vector<8x128xf32>
    %280 = arith.divf %278, %279 : vector<8x128xf32>
    %281 = vector.extract_strided_slice %274 {offsets = [0, 128], sizes = [8, 128], strides = [1, 1]} : vector<8x512xf32> to vector<8x128xf32>
    %282 = arith.negf %281 : vector<8x128xf32>
    %283 = math.exp %282 : vector<8x128xf32>
    %cst_75 = arith.constant 1.000000e+00 : f32
    %284 = vector.broadcast %cst_75 : f32 to vector<8x128xf32>
    %285 = arith.addf %284, %283 : vector<8x128xf32>
    %286 = arith.divf %284, %285 : vector<8x128xf32>
    %287 = vector.extract_strided_slice %274 {offsets = [0, 256], sizes = [8, 128], strides = [1, 1]} : vector<8x512xf32> to vector<8x128xf32>
    %288 = math.tanh %287 : vector<8x128xf32>
    %289 = vector.extract_strided_slice %274 {offsets = [0, 384], sizes = [8, 128], strides = [1, 1]} : vector<8x512xf32> to vector<8x128xf32>
    %290 = arith.negf %289 : vector<8x128xf32>
    %291 = math.exp %290 : vector<8x128xf32>
    %cst_76 = arith.constant 1.000000e+00 : f32
    %292 = vector.broadcast %cst_76 : f32 to vector<8x128xf32>
    %293 = arith.addf %292, %291 : vector<8x128xf32>
    %294 = arith.divf %292, %293 : vector<8x128xf32>
    %295 = arith.mulf %286, %260 : vector<8x128xf32>
    %296 = arith.mulf %280, %288 : vector<8x128xf32>
    %297 = arith.addf %295, %296 : vector<8x128xf32>
    %298 = math.tanh %297 : vector<8x128xf32>
    %299 = arith.mulf %294, %298 : vector<8x128xf32>
    %300 = vector.extract_strided_slice %299 {offsets = [0, 0], sizes = [2, 128], strides = [1, 1]} : vector<8x128xf32> to vector<2x128xf32>
    %cst_77 = arith.constant 0.000000e+00 : f32
    %301 = vector.broadcast %cst_77 : f32 to vector<8x128xf32>
    %302 = arith.select %6, %299, %301 : vector<8x128xi1>, vector<8x128xf32>
    %303 = tpu.concatenate %12, %300, %13 in 0 : vector<2x128xf32>, vector<2x128xf32>, vector<4x128xf32> -> vector<8x128xf32>
    %cst_78 = arith.constant 0.000000e+00 : f32
    %304 = vector.broadcast %cst_78 : f32 to vector<8x128xf32>
    %305 = arith.select %11, %299, %304 : vector<8x128xi1>, vector<8x128xf32>
    %306 = tpu.concatenate %302, %303, %305 in 1 : vector<8x128xf32>, vector<8x128xf32>, vector<8x128xf32> -> vector<8x384xf32>
    %307 = arith.truncf %306 : vector<8x384xf32> to vector<8x384xbf16>
    %c0_79 = arith.constant 0 : index
    %c0_80 = arith.constant 0 : index
    %308 = vector.load %arg2[%c0_79, %c0_80] : memref<384x512xbf16, #tpu.memory_space<vmem>>, vector<384x512xbf16>
    %cst_81 = arith.constant dense<0.000000e+00> : vector<8x512xf32>
    %309 = tpu.matmul %307, %308, %cst_81 {dimension_numbers = #tpu.dot_dimension_numbers<[1], [0], [0], [1], [0, 0, 1, 1], [], []>} : vector<8x384xbf16>, vector<384x512xbf16>, vector<8x512xf32> -> vector<8x512xf32>
    %c64 = arith.constant 64 : index
    %c0_82 = arith.constant 0 : index
    %310 = vector.load %arg6[%c64, %c0_82] : memref<72x512xf32, #tpu.memory_space<vmem>>, vector<8x512xf32>
    %311 = arith.addf %309, %310 : vector<8x512xf32>
    %312 = vector.extract_strided_slice %311 {offsets = [0, 0], sizes = [8, 128], strides = [1, 1]} : vector<8x512xf32> to vector<8x128xf32>
    %313 = arith.negf %312 : vector<8x128xf32>
    %314 = math.exp %313 : vector<8x128xf32>
    %cst_83 = arith.constant 1.000000e+00 : f32
    %315 = vector.broadcast %cst_83 : f32 to vector<8x128xf32>
    %316 = arith.addf %315, %314 : vector<8x128xf32>
    %317 = arith.divf %315, %316 : vector<8x128xf32>
    %318 = vector.extract_strided_slice %311 {offsets = [0, 128], sizes = [8, 128], strides = [1, 1]} : vector<8x512xf32> to vector<8x128xf32>
    %319 = arith.negf %318 : vector<8x128xf32>
    %320 = math.exp %319 : vector<8x128xf32>
    %cst_84 = arith.constant 1.000000e+00 : f32
    %321 = vector.broadcast %cst_84 : f32 to vector<8x128xf32>
    %322 = arith.addf %321, %320 : vector<8x128xf32>
    %323 = arith.divf %321, %322 : vector<8x128xf32>
    %324 = vector.extract_strided_slice %311 {offsets = [0, 256], sizes = [8, 128], strides = [1, 1]} : vector<8x512xf32> to vector<8x128xf32>
    %325 = math.tanh %324 : vector<8x128xf32>
    %326 = vector.extract_strided_slice %311 {offsets = [0, 384], sizes = [8, 128], strides = [1, 1]} : vector<8x512xf32> to vector<8x128xf32>
    %327 = arith.negf %326 : vector<8x128xf32>
    %328 = math.exp %327 : vector<8x128xf32>
    %cst_85 = arith.constant 1.000000e+00 : f32
    %329 = vector.broadcast %cst_85 : f32 to vector<8x128xf32>
    %330 = arith.addf %329, %328 : vector<8x128xf32>
    %331 = arith.divf %329, %330 : vector<8x128xf32>
    %332 = arith.mulf %323, %297 : vector<8x128xf32>
    %333 = arith.mulf %317, %325 : vector<8x128xf32>
    %334 = arith.addf %332, %333 : vector<8x128xf32>
    %335 = math.tanh %334 : vector<8x128xf32>
    %336 = arith.mulf %331, %335 : vector<8x128xf32>
    %337 = vector.extract_strided_slice %336 {offsets = [2, 0], sizes = [2, 128], strides = [1, 1]} : vector<8x128xf32> to vector<2x128xf32>
    %c0_86 = arith.constant 0 : index
    %c0_87 = arith.constant 0 : index
    %338 = vector.load %arg3[%c0_86, %c0_87] : memref<1x128xf32, #tpu.memory_space<vmem>>, vector<1x128xf32>
    %339 = vector.broadcast %338 : vector<1x128xf32> to vector<2x128xf32>
    %340 = arith.mulf %337, %339 : vector<2x128xf32>
    %cst_88 = arith.constant dense<0.000000e+00> : vector<2xf32>
    %341 = vector.multi_reduction <add>, %340, %cst_88 [1] : vector<2x128xf32> to vector<2xf32>
    %342 = vector.shape_cast %341 : vector<2xf32> to vector<2x1xf32>
    %c0_89 = arith.constant 0 : index
    %c0_90 = arith.constant 0 : index
    %343 = vector.load %arg4[%c0_89, %c0_90] : memref<1x1xf32, #tpu.memory_space<vmem>>, vector<1x1xf32>
    %344 = vector.broadcast %343 : vector<1x1xf32> to vector<2x1xf32>
    %345 = arith.addf %342, %344 : vector<2x1xf32>
    %c0_91 = arith.constant 0 : index
    %c0_92 = arith.constant 0 : index
    %346 = vector.load %arg5[%c0_91, %c0_92] : memref<2x1xf32, #tpu.memory_space<vmem>>, vector<2x1xf32>
    tpu.vector_store %arg5[%c0_91, %c0_92], %345 {strides = array<i32>} : memref<2x1xf32, #tpu.memory_space<vmem>>, vector<2x1xf32>,
    return
  }
}

</mosaic_0001>

<bundles_post_ra>
// kernel: tpu_custom_call.1
= control target key start
LH: loop header
LB: loop body
LE: loop exit
PB: predicated region body
PF: predicated region fallthrough
CT: control target
= control target key end

     0   :  { %s5146_s0 = inlined_call_operand.hbm [shape: bf16[72,128], index: 0, kind: input, shape index: {}]   ;;  %s5147_s1 = inlined_call_operand.hbm [shape: bf16[128,512], index: 1, kind: input, shape index: {}]   ;;  %s5148_s2 = inlined_call_operand.hbm [shape: bf16[384,512], index: 2, kind: input, shape index: {}]   ;;  %s5149_s3 = inlined_call_operand.vmem [shape: f32[1,128], index: 3, kind: input, shape index: {}]   ;;  %s5150_s4 = inlined_call_operand.<no memory space> [shape: f32[1,1], index: 4, kind: input, shape index: {}]   ;;  %s5151_s5 = inlined_call_operand.vmem [shape: f32[2,1], index: 5, kind: output, shape index: {}]  }
   0x1   :  { %v10_v0 = vstv %s5150_s4 }
   0x2   :  { %11 = vst [vmem:[#allocation3] sm:$0x1] %v10_v0 }
   0x3   :  { %12 = vsyncpa [#allocation5], 0 }
   0x4   :  { %13 = vsyncpa [#allocation7], 0  ;;  %s3670_s20 = smov [#allocation6]   ;;  %s3600_s24 = scalar_lea.hbm %s5147_s1, 4096 }
   0x5   :  { %s31_s21 = sshll.u32 %s3670_s20, 4  ;;  %p3601_p0 = scmp.ne.s32.totalorder %s5147_s1, %s3600_s24  ;;  %s32_s21 = int_to_ptr.vmem [resolvable:$true] %s31_s21 }
   0x6   :  { %p3604_p1 = scmp.lt.u32.totalorder %s3600_s24, %s5147_s1 }
   0x8   :  { %p3606_p2 = pnand %p3604_p1, %p3601_p0 }
   0xa   :  { %3609 = shalt.err (!%p3606_p2)
}
   0xb   :  { %s3610_s4 = scalar_lea.vmem %s32_s21, 4096  ;;  %p3615_p4 = scmp.lt.s32.totalorder %s32_s21, %s32_s21 }
   0xc   :  { %p3611_p3 = scmp.ne.s32.totalorder %s32_s21, %s3610_s4  ;;  %p3616_p5 = scmp.lt.s32.totalorder %s3610_s4, %s3610_s4 }
   0xe   :  { %p3617_p6 = por %p3616_p5, %p3615_p4 }
  0x10   :  { %p3618_p7 = pnand %p3617_p6, %p3611_p3 }
  0x12   :  { %3621 = shalt.err (!%p3618_p7)
}
  0x13   :  { %s3671_s29 = smov 256   ;;  %s3672_s30 = smov 16  }
  0x14   :  { %37 = dma.hbm_to_vmem [thread:$0]  %s5147_s1, 4096, %s32_s21, [#allocation7], %s3671_s29, %s3671_s29, %s3672_s30  }
  0x15   :  { %s3673_s8 = smov [#allocation4]   ;;  %s3622_s12 = scalar_lea.hbm %s5146_s0, 576 }
  0x16   :  { %s19_s9 = sshll.u32 %s3673_s8, 4  ;;  %p3623_p8 = scmp.ne.s32.totalorder %s5146_s0, %s3622_s12  ;;  %s20_s9 = int_to_ptr.vmem [resolvable:$true] %s19_s9 }
  0x17   :  { %p3626_p9 = scmp.lt.u32.totalorder %s3622_s12, %s5146_s0 }
  0x19   :  { %p3628_p10 = pnand %p3626_p9, %p3623_p8 }
  0x1b   :  { %3631 = shalt.err (!%p3628_p10)
}
  0x1c   :  { %s3632_s17 = scalar_lea.vmem %s20_s9, 576  ;;  %p3637_p12 = scmp.lt.s32.totalorder %s20_s9, %s20_s9 }
  0x1d   :  { %p3633_p11 = scmp.ne.s32.totalorder %s20_s9, %s3632_s17  ;;  %p3638_p13 = scmp.lt.s32.totalorder %s3632_s17, %s3632_s17 }
  0x1f   :  { %p3639_p0 = por %p3638_p13, %p3637_p12 }
  0x21   :  { %p3640_p1 = pnand %p3639_p0, %p3633_p11 }
  0x23   :  { %3643 = shalt.err (!%p3640_p1)
}
  0x24   :  { %s3674_s1 = smov 64   ;;  %s3675_s18 = smov 4  }
  0x25   :  { %25 = dma.hbm_to_vmem [thread:$0]  %s5146_s0, 576, %s20_s9, [#allocation5], %s3674_s1, %s3674_s1, %s3675_s18  }
  0x26   :  { %s3676_s21 = smov [#allocation8]   ;;  %s3644_s25 = scalar_lea.hbm %s5148_s2, 12288 }
  0x27   :  { %s43_s22 = sshll.u32 %s3676_s21, 4  ;;  %p3645_p2 = scmp.ne.s32.totalorder %s5148_s2, %s3644_s25  ;;  %s44_s22 = int_to_ptr.vmem [resolvable:$true] %s43_s22 }
  0x28   :  { %p3648_p3 = scmp.lt.u32.totalorder %s3644_s25, %s5148_s2 }
  0x2a   :  { %p3650_p4 = pnand %p3648_p3, %p3645_p2 }
  0x2c   :  { %3653 = shalt.err (!%p3650_p4)
}
  0x2d   :  { %s3654_s6 = scalar_lea.vmem %s44_s22, 12288  ;;  %p3659_p6 = scmp.lt.s32.totalorder %s44_s22, %s44_s22 }
  0x2e   :  { %p3655_p5 = scmp.ne.s32.totalorder %s44_s22, %s3654_s6  ;;  %p3660_p7 = scmp.lt.s32.totalorder %s3654_s6, %s3654_s6 }
  0x30   :  { %p3661_p8 = por %p3660_p7, %p3659_p6 }
  0x32   :  { %p3662_p9 = pnand %p3661_p8, %p3655_p5 }
  0x34   :  { %3665 = shalt.err (!%p3662_p9)
}
  0x35   :  { %49 = dma.hbm_to_vmem [thread:$0]  %s5148_s2, 12288, %s44_s22, [#allocation7], %s3671_s29, %s3671_s29, %s3672_s30  }
  0x36   :  { %3666 = dma.done.wait [#allocation5], 576  }
  0x37   :  { %3667 = vsyncadd [#allocation5], 4294966720 }
  0x38   :  { %3668 = dma.done.wait [#allocation7], 16384  }
  0x39   :  { %3669 = vsyncadd [#allocation7], 4294950912  ;;  %v5152_v1 = vmov 0   ;;  %v3077_v2 = vld [vmem:[#allocation6 + $0x4] ss:$16 sps:$4 sm:$0xff]   ;;  %v3116_v34 = vld [vmem:[#allocation4] sm:$0xff]  }
  0x3a   :  { %325 = vmatprep.mubr.bf16.mxu0 %v5152_v1  ;;  %406 = vmatprep.mubr.bf16.mxu1 %v5152_v1  ;;  %v3079_v3 = vld [vmem:[#allocation6] ss:$16 sps:$4 sm:$0xff]   ;;  %v3080_v4 = vld [vmem:[#allocation6 + $0x24] ss:$16 sps:$4 sm:$0xff]   ;;  %v3088_v7 = vld [vmem:[#allocation6 + $0xc] ss:$16 sps:$4 sm:$0xff]  }
  0x3b   :  { %293 = vmatprep.subr.bf16.mxu0 %v3077_v2  ;;  %v3082_v5 = vld [vmem:[#allocation6 + $0x20] ss:$16 sps:$4 sm:$0xff]   ;;  %v3083_v6 = vld [vmem:[#allocation6 + $0x44] ss:$16 sps:$4 sm:$0xff]   ;;  %v3091_v8 = vld [vmem:[#allocation6 + $0x8] ss:$16 sps:$4 sm:$0xff]   ;;  %374 = vmatprep.subr.bf16.mxu1 %v3088_v7 }
  0x3c   :  { %294 = vmatpush1.bf16.msra.mxu0 %v3079_v3  ;;  %v3085_v9 = vld [vmem:[#allocation6 + $0x40] ss:$16 sps:$4 sm:$0xff]   ;;  %v3086_v10 = vld [vmem:[#allocation6 + $0x64] ss:$16 sps:$4 sm:$0xff]   ;;  %375 = vmatpush1.bf16.msra.mxu1 %v3091_v8  ;;  %v3094_v11 = vld [vmem:[#allocation6 + $0x2c] ss:$16 sps:$4 sm:$0xff]  }
  0x3d   :  { %295 = vmatprep.subr.bf16.mxu0 %v3080_v4  ;;  %v3097_v12 = vld [vmem:[#allocation6 + $0x28] ss:$16 sps:$4 sm:$0xff]   ;;  %376 = vmatprep.subr.bf16.mxu1 %v3094_v11  ;;  %v3090_v13 = vld [vmem:[#allocation6 + $0x60] ss:$16 sps:$4 sm:$0xff]   ;;  %v3092_v14 = vld [vmem:[#allocation6 + $0x84] ss:$16 sps:$4 sm:$0xff]  }
  0x3e   :  { %v3100_v15 = vld [vmem:[#allocation6 + $0x4c] ss:$16 sps:$4 sm:$0xff]   ;;  %v3103_v16 = vld [vmem:[#allocation6 + $0x48] ss:$16 sps:$4 sm:$0xff]   ;;  %v3096_v18 = vld [vmem:[#allocation6 + $0x80] ss:$16 sps:$4 sm:$0xff]  }
  0x3f   :  { %v3106_v17 = vld [vmem:[#allocation6 + $0x6c] ss:$16 sps:$4 sm:$0xff]   ;;  %v3098_v19 = vld [vmem:[#allocation6 + $0xa4] ss:$16 sps:$4 sm:$0xff]   ;;  %v3109_v20 = vld [vmem:[#allocation6 + $0x68] ss:$16 sps:$4 sm:$0xff]  }
  0x40   :  { %296 = vmatpush1.bf16.msra.mxu0 %v3082_v5  ;;  %377 = vmatpush1.bf16.msra.mxu1 %v3097_v12  ;;  %v3112_v21 = vld [vmem:[#allocation6 + $0x8c] ss:$16 sps:$4 sm:$0xff]   ;;  %v3102_v22 = vld [vmem:[#allocation6 + $0xa0] ss:$16 sps:$4 sm:$0xff]   ;;  %v3104_v23 = vld [vmem:[#allocation6 + $0xc4] ss:$16 sps:$4 sm:$0xff]  }
  0x41   :  { %297 = vmatprep.subr.bf16.mxu0 %v3083_v6  ;;  %378 = vmatprep.subr.bf16.mxu1 %v3100_v15  ;;  %v3115_v24 = vld [vmem:[#allocation6 + $0x88] ss:$16 sps:$4 sm:$0xff]   ;;  %v3117_v25 = vld [vmem:[#allocation6 + $0xac] ss:$16 sps:$4 sm:$0xff]   ;;  %v3108_v26 = vld [vmem:[#allocation6 + $0xc0] ss:$16 sps:$4 sm:$0xff]  }
  0x42   :  { %v3110_v27 = vld [vmem:[#allocation6 + $0xe4] ss:$16 sps:$4 sm:$0xff]   ;;  %v3119_v28 = vld [vmem:[#allocation6 + $0xa8] ss:$16 sps:$4 sm:$0xff]   ;;  %v3114_v29 = vld [vmem:[#allocation6 + $0xe0] ss:$16 sps:$4 sm:$0xff]  }
  0x43   :  { %v3120_v30 = vld [vmem:[#allocation6 + $0xcc] ss:$16 sps:$4 sm:$0xff]   ;;  %v3122_v31 = vld [vmem:[#allocation6 + $0xc8] ss:$16 sps:$4 sm:$0xff]   ;;  %v3755_v33 = vld [vmem:[#allocation8 + $0x4] ss:$16 sps:$4 sm:$0xff]  }
  0x44   :  { %298 = vmatpush1.bf16.msra.mxu0 %v3085_v9  ;;  %379 = vmatpush1.bf16.msra.mxu1 %v3103_v16  ;;  %v3123_v32 = vld [vmem:[#allocation6 + $0xec] ss:$16 sps:$4 sm:$0xff]   ;;  %v3757_v35 = vld [vmem:[#allocation8] ss:$16 sps:$4 sm:$0xff]   ;;  %v3125_v36 = vld [vmem:[#allocation6 + $0xe8] ss:$16 sps:$4 sm:$0xff]  }
  0x45   :  { %299 = vmatprep.subr.bf16.mxu0 %v3086_v10  ;;  %380 = vmatprep.subr.bf16.mxu1 %v3106_v17  ;;  %v3759_v37 = vld [vmem:[#allocation8 + $0x24] ss:$16 sps:$4 sm:$0xff]   ;;  %v3762_v38 = vld [vmem:[#allocation8 + $0x20] ss:$16 sps:$4 sm:$0xff]   ;;  %v3191_v16 = vld [vmem:[#allocation4 + $0x20] ss:$0 sps:$4 sm:$0xff]  }
  0x46   :  { %v3764_v39 = vld [vmem:[#allocation8 + $0x44] ss:$16 sps:$4 sm:$0xff]   ;;  %v3769_v40 = vld [vmem:[#allocation8 + $0x40] ss:$16 sps:$4 sm:$0xff]   ;;  %vm529_vm4 = vcmask 1041408   ;;  %vm531_vm5 = vcmask 1043456  }
  0x47   :  { %5393 = vst [vmem:[#allocation11_spill] sm:$0xff] %v3769_v40  ;;  %v3771_v41 = vld [vmem:[#allocation8 + $0x64] ss:$16 sps:$4 sm:$0xff]   ;;  %v3776_v42 = vld [vmem:[#allocation8 + $0x60] ss:$16 sps:$4 sm:$0xff]   ;;  %vm3939_vm7 = vmpackc.low %vm531_vm5, %vm531_vm5  ;;  %vm2727_vm9 = vcmask 1043458  }
  0x48   :  { %300 = vmatpush1.bf16.msra.mxu0 %v3090_v13  ;;  %381 = vmatpush1.bf16.msra.mxu1 %v3109_v20  ;;  %5394 = vst [vmem:[#allocation12_spill] sm:$0xff] %v3771_v41  ;;  %v3781_v43 = vld [vmem:[#allocation8 + $0x84] ss:$16 sps:$4 sm:$0xff]   ;;  %v3783_v44 = vld [vmem:[#allocation8 + $0x80] ss:$16 sps:$4 sm:$0xff]   ;;  %vm2739_vm10 = vcmask 3074  }
  0x49   :  { %301 = vmatprep.subr.bf16.mxu0 %v3092_v14  ;;  %382 = vmatprep.subr.bf16.mxu1 %v3112_v21  ;;  %5395 = vst [vmem:[#allocation13_spill] sm:$0xff] %v3783_v44  ;;  %v3787_v45 = vld [vmem:[#allocation8 + $0xa4] ss:$16 sps:$4 sm:$0xff]   ;;  %v3789_v46 = vld [vmem:[#allocation8 + $0xa0] ss:$16 sps:$4 sm:$0xff]  }
  0x4a   :  { %v3793_v47 = vld [vmem:[#allocation8 + $0xc4] ss:$16 sps:$4 sm:$0xff]   ;;  %v3795_v48 = vld [vmem:[#allocation8 + $0xc0] ss:$16 sps:$4 sm:$0xff]  }
  0x4b   :  { %v3152_v49 = vld [vmem:[#allocation4 + $0x8] sm:$0xff]   ;;  %v3803_v52 = vld [vmem:[#allocation8 + $0x200] ss:$16 sps:$4 sm:$0xff]   ;;  %v3176_v4 = vld [vmem:[#allocation4 + $0x18] sm:$0xff]  }
  0x4c   :  { %302 = vmatpush1.bf16.msra.mxu0 %v3096_v18  ;;  %383 = vmatpush1.bf16.msra.mxu1 %v3115_v24  ;;  %v3799_v50 = vld [vmem:[#allocation8 + $0x204] ss:$16 sps:$4 sm:$0xff]   ;;  %v3805_v53 = vld [vmem:[#allocation8 + $0xe0] ss:$16 sps:$4 sm:$0xff]  }
  0x4d   :  { %303 = vmatprep.subr.bf16.mxu0 %v3098_v19  ;;  %384 = vmatprep.subr.bf16.mxu1 %v3117_v25  ;;  %v3801_v51 = vld [vmem:[#allocation8 + $0xe4] ss:$16 sps:$4 sm:$0xff]   ;;  %v3817_v56 = vld [vmem:[#allocation8 + $0x220] ss:$16 sps:$4 sm:$0xff]   ;;  %v3911_v25 = vld [vmem:[#allocation8 + $0x20c] ss:$16 sps:$4 sm:$0xff]  }
  0x4e   :  { %v3813_v54 = vld [vmem:[#allocation8 + $0x224] ss:$16 sps:$4 sm:$0xff]   ;;  %v3819_v57 = vld [vmem:[#allocation8 + $0x100] ss:$16 sps:$4 sm:$0xff]   ;;  %5413 = vst [vmem:[#allocation31_spill] sm:$0xff] %v3911_v25 }
  0x4f   :  { %v3815_v55 = vld [vmem:[#allocation8 + $0x104] ss:$16 sps:$4 sm:$0xff]   ;;  %v3163_v58 = vld [vmem:[#allocation4 + $0x10] sm:$0xff]  }
  0x50   :  { %304 = vmatpush1.bf16.msra.mxu0 %v3102_v22  ;;  %385 = vmatpush1.bf16.msra.mxu1 %v3119_v28  ;;  %v3825_v59 = vld [vmem:[#allocation8 + $0x244] ss:$16 sps:$4 sm:$0xff]   ;;  %v3829_v61 = vld [vmem:[#allocation8 + $0x240] ss:$16 sps:$4 sm:$0xff]  }
  0x51   :  { %305 = vmatprep.subr.bf16.mxu0 %v3104_v23  ;;  %386 = vmatprep.subr.bf16.mxu1 %v3120_v30  ;;  %v3827_v60 = vld [vmem:[#allocation8 + $0x124] ss:$16 sps:$4 sm:$0xff]   ;;  %v3831_v62 = vld [vmem:[#allocation8 + $0x120] ss:$16 sps:$4 sm:$0xff]   ;;  %v3904_v23 = vld [vmem:[#allocation8 + $0xc] ss:$16 sps:$4 sm:$0xff]  }
  0x52   :  { %v3839_v63 = vld [vmem:[#allocation8 + $0x264] ss:$16 sps:$4 sm:$0xff]   ;;  %v3843_v2 = vld [vmem:[#allocation8 + $0x260] ss:$16 sps:$4 sm:$0xff]   ;;  %5411 = vst [vmem:[#allocation29_spill] sm:$0xff] %v3904_v23 }
  0x53   :  { %v3841_v0 = vld [vmem:[#allocation8 + $0x144] ss:$16 sps:$4 sm:$0xff]   ;;  %v3845_v3 = vld [vmem:[#allocation8 + $0x140] ss:$16 sps:$4 sm:$0xff]  }
  0x54   :  { %306 = vmatpush1.bf16.msra.mxu0 %v3108_v26  ;;  %387 = vmatpush1.bf16.msra.mxu1 %v3122_v31  ;;  %v3851_v5 = vld [vmem:[#allocation8 + $0x284] ss:$16 sps:$4 sm:$0xff]   ;;  %v3855_v7 = vld [vmem:[#allocation8 + $0x280] ss:$16 sps:$4 sm:$0xff]  }
  0x55   :  { %307 = vmatprep.subr.bf16.mxu0 %v3110_v27  ;;  %388 = vmatprep.subr.bf16.mxu1 %v3123_v32  ;;  %v3853_v6 = vld [vmem:[#allocation8 + $0x164] ss:$16 sps:$4 sm:$0xff]   ;;  %5396 = vst [vmem:[#allocation14_spill] sm:$0xff] %v3855_v7  ;;  %v3857_v8 = vld [vmem:[#allocation8 + $0x160] ss:$16 sps:$4 sm:$0xff]  }
  0x56   :  { %5397 = vst [vmem:[#allocation15_spill] sm:$0xff] %v3857_v8  ;;  %v3865_v9 = vld [vmem:[#allocation8 + $0x2a4] ss:$16 sps:$4 sm:$0xff]   ;;  %v3869_v11 = vld [vmem:[#allocation8 + $0x2a0] ss:$16 sps:$4 sm:$0xff]  }
  0x57   :  { %5398 = vst [vmem:[#allocation16_spill] sm:$0xff] %v3865_v9  ;;  %v3867_v10 = vld [vmem:[#allocation8 + $0x184] ss:$16 sps:$4 sm:$0xff]   ;;  %5400 = vst [vmem:[#allocation18_spill] sm:$0xff] %v3869_v11  ;;  %v3871_v12 = vld [vmem:[#allocation8 + $0x180] ss:$16 sps:$4 sm:$0xff]  }
  0x58   :  { %308 = vmatpush1.bf16.msra.mxu0 %v3114_v29  ;;  %389 = vmatpush1.bf16.msra.mxu1 %v3125_v36  ;;  %5399 = vst [vmem:[#allocation17_spill] sm:$0xff] %v3867_v10  ;;  %5401 = vst [vmem:[#allocation19_spill] sm:$0xff] %v3871_v12  ;;  %v3877_v13 = vld [vmem:[#allocation8 + $0x2c4] ss:$16 sps:$4 sm:$0xff]   ;;  %v3881_v15 = vld [vmem:[#allocation8 + $0x2c0] ss:$16 sps:$4 sm:$0xff]  }
  0x59   :  { %1117 = vmatprep.subr.bf16.mxu0 %v3755_v33  ;;  %1158 = vmatprep.subr.bf16.mxu1 %v3799_v50  ;;  %5402 = vst [vmem:[#allocation20_spill] sm:$0xff] %v3877_v13  ;;  %v3879_v14 = vld [vmem:[#allocation8 + $0x1a4] ss:$16 sps:$4 sm:$0xff]   ;;  %5404 = vst [vmem:[#allocation22_spill] sm:$0xff] %v3881_v15  ;;  %v3883_v17 = vld [vmem:[#allocation8 + $0x1a0] ss:$16 sps:$4 sm:$0xff]  }
  0x5a   :  { %5403 = vst [vmem:[#allocation21_spill] sm:$0xff] %v3879_v14  ;;  %5405 = vst [vmem:[#allocation23_spill] sm:$0xff] %v3883_v17  ;;  %v3889_v18 = vld [vmem:[#allocation8 + $0x2e4] ss:$16 sps:$4 sm:$0xff]   ;;  %v3893_v20 = vld [vmem:[#allocation8 + $0x2e0] ss:$16 sps:$4 sm:$0xff]  }
  0x5b   :  { %326 = vmatmul.mubr.bf16.vlgmr.msra.gmra.mrb[0].mxu0 %v3116_v34  ;;  %407 = vmatmul.mubr.bf16.vlgmr.msra.gmra.mrb[0].mxu1 %v3116_v34  ;;  %5406 = vst [vmem:[#allocation24_spill] sm:$0xff] %v3889_v18  ;;  %v3891_v19 = vld [vmem:[#allocation8 + $0x1c4] ss:$16 sps:$4 sm:$0xff]   ;;  %5408 = vst [vmem:[#allocation26_spill] sm:$0xff] %v3893_v20  ;;  %v3895_v21 = vld [vmem:[#allocation8 + $0x1c0] ss:$16 sps:$4 sm:$0xff]  }
  0x5c   :  { %1118 = vmatpush1.bf16.msra.mxu0 %v3757_v35  ;;  %335 = vmatprep.mubr.bf16.mxu0 %v5152_v1  ;;  %5407 = vst [vmem:[#allocation25_spill] sm:$0xff] %v3891_v19  ;;  %5409 = vst [vmem:[#allocation27_spill] sm:$0xff] %v3895_v21  ;;  %v3902_v22 = vld [vmem:[#allocation8 + $0x1e4] ss:$16 sps:$4 sm:$0xff]   ;;  %v3906_v24 = vld [vmem:[#allocation8 + $0x1e0] ss:$16 sps:$4 sm:$0xff]  }
  0x5d   :  { %1119 = vmatprep.subr.bf16.mxu0 %v3759_v37  ;;  %416 = vmatprep.mubr.bf16.mxu1 %v5152_v1  ;;  %5410 = vst [vmem:[#allocation28_spill] sm:$0xff] %v3902_v22  ;;  %5412 = vst [vmem:[#allocation30_spill] sm:$0xff] %v3906_v24 }
  0x5e   :  { %1159 = vmatpush1.bf16.msra.mxu1 %v3803_v52 }
  0x5f   :  { %1160 = vmatprep.subr.bf16.mxu1 %v3813_v54 }
  0x60   :  { %1120 = vmatpush1.bf16.msra.mxu0 %v3762_v38 }
  0x61   :  { %1121 = vmatprep.subr.bf16.mxu0 %v3764_v39 }
  0x62   :  { %1161 = vmatpush1.bf16.msra.mxu1 %v3817_v56 }
  0x63   :  { %417 = vmatmul.mubr.bf16.gmra.mrb[4].mxu1 %v3152_v49  ;;  %336 = vmatmul.mubr.bf16.gmra.mrb[4].mxu0 %v3152_v49 }
  0x64   :  { %1122 = vmatpush1.bf16.msra.mxu0 %v3769_v40  ;;  %426 = vmatprep.mubr.bf16.mxu1 %v5152_v1 }
  0x65   :  { %1123 = vmatprep.subr.bf16.mxu0 %v3771_v41  ;;  %345 = vmatprep.mubr.bf16.mxu0 %v5152_v1 }
  0x66   :  { %1162 = vmatprep.subr.bf16.mxu1 %v3825_v59 }
  0x67   :  { %1163 = vmatpush1.bf16.msra.mxu1 %v3829_v61 }
  0x68   :  { %1124 = vmatpush1.bf16.msra.mxu0 %v3776_v42  ;;  %1164 = vmatprep.subr.bf16.mxu1 %v3839_v63 }
  0x69   :  { %1125 = vmatprep.subr.bf16.mxu0 %v3781_v43 }
  0x6b   :  { %427 = vmatmul.mubr.bf16.gmra.mrb[8].mxu1 %v3163_v58  ;;  %346 = vmatmul.mubr.bf16.gmra.mrb[8].mxu0 %v3163_v58 }
  0x6c   :  { %1126 = vmatpush1.bf16.msra.mxu0 %v3783_v44  ;;  %436 = vmatprep.mubr.bf16.mxu1 %v5152_v1 }
  0x6d   :  { %1127 = vmatprep.subr.bf16.mxu0 %v3787_v45  ;;  %355 = vmatprep.mubr.bf16.mxu0 %v5152_v1 }
  0x6e   :  { %1165 = vmatpush1.bf16.msra.mxu1 %v3843_v2 }
  0x6f   :  { %1166 = vmatprep.subr.bf16.mxu1 %v3851_v5 }
  0x70   :  { %1128 = vmatpush1.bf16.msra.mxu0 %v3789_v46 }
  0x71   :  { %1129 = vmatprep.subr.bf16.mxu0 %v3793_v47 }
  0x72   :  { %1167 = vmatpush1.bf16.msra.mxu1 %v3855_v7 }
  0x73   :  { %437 = vmatmul.mubr.bf16.gmra.mrb[12].mxu1 %v3176_v4  ;;  %356 = vmatmul.mubr.bf16.gmra.mrb[12].mxu0 %v3176_v4 }
  0x74   :  { %1130 = vmatpush1.bf16.msra.mxu0 %v3795_v48  ;;  %446 = vmatprep.mubr.bf16.mxu1 %v5152_v1 }
  0x75   :  { %1131 = vmatprep.subr.bf16.mxu0 %v3801_v51  ;;  %365 = vmatprep.mubr.bf16.mxu0 %v5152_v1 }
  0x76   :  { %1168 = vmatprep.subr.bf16.mxu1 %v3865_v9 }
  0x77   :  { %1169 = vmatpush1.bf16.msra.mxu1 %v3869_v11 }
  0x78   :  { %1132 = vmatpush1.bf16.msra.mxu0 %v3805_v53  ;;  %1170 = vmatprep.subr.bf16.mxu1 %v3877_v13 }
  0x79   :  { %1133 = vmatprep.subr.bf16.mxu0 %v3815_v55 }
  0x7b   :  { %1171 = vmatpush1.bf16.msra.mxu1 %v3881_v15  ;;  %366 = vmatmul.mubr.bf16.gmra.mrb[16].mxu0 %v3191_v16 }
  0x7c   :  { %1134 = vmatpush1.bf16.msra.mxu0 %v3819_v57  ;;  %447 = vmatmul.mubr.bf16.gmra.mrb[16].mxu1 %v3191_v16 }
  0x7d   :  { %1135 = vmatprep.subr.bf16.mxu0 %v3827_v60  ;;  %1190 = vmatprep.mubr.bf16.mxu1 %v5152_v1 }
  0x7e   :  { %1172 = vmatprep.subr.bf16.mxu1 %v3889_v18 }
  0x7f   :  { %1173 = vmatpush1.bf16.msra.mxu1 %v3893_v20 }
  0x80   :  { %1136 = vmatpush1.bf16.msra.mxu0 %v3831_v62  ;;  %1199 = vmatprep.subr.bf16.mxu1 %v3904_v23 }
  0x81   :  { %1137 = vmatprep.subr.bf16.mxu0 %v3841_v0 }
  0x84   :  { %1138 = vmatpush1.bf16.msra.mxu0 %v3845_v3 }
  0x85   :  { %1139 = vmatprep.subr.bf16.mxu0 %v3853_v6 }
  0x88   :  { %1140 = vmatpush1.bf16.msra.mxu0 %v3857_v8 }
  0x89   :  { %1141 = vmatprep.subr.bf16.mxu0 %v3867_v10 }
  0x8c   :  { %1142 = vmatpush1.bf16.msra.mxu0 %v3871_v12 }
  0x8d   :  { %1143 = vmatprep.subr.bf16.mxu0 %v3879_v14 }
  0x90   :  { %1144 = vmatpush1.bf16.msra.mxu0 %v3883_v17 }
  0x91   :  { %1145 = vmatprep.subr.bf16.mxu0 %v3891_v19 }
  0x94   :  { %1146 = vmatpush1.bf16.msra.mxu0 %v3895_v21 }
  0x95   :  { %1147 = vmatprep.subr.bf16.mxu0 %v3902_v22 }
  0x98   :  { %1148 = vmatpush1.bf16.msra.mxu0 %v3906_v24 }
  0x99   :  { %1240 = vmatprep.subr.bf16.mxu0 %v3911_v25 }
 0x12e   :  { %v327_v26 = vpop.f32.mrb[0].mxu0  ;;  %v408_v32 = vpop.f32.mrb[0].mxu1 }
 0x12f   :  { %v2784_v27 = vmul.f32 -1.442695, %v327_v26  ;;  %v329_v28 = vpop.f32.mrb[1].mxu0  ;;  %v410_v34 = vpop.f32.mrb[1].mxu1 }
 0x130   :  { %v2785_v29 = vmul.f32 -1.442695, %v329_v28  ;;  %v3914_v30 = vpop.f32.mrb[2].mxu0  ;;  %v3918_v36 = vpop.f32.mrb[2].mxu1  ;;  %v2786_v58 = vmul.f32 -1.442695, %v410_v34 }
 0x131   :  { %5414 = vst [vmem:[#allocation32_spill] sm:$0xff] %v3914_v30  ;;  %3274 = vpow2.f32 %v2784_v27  ;;  %v3916_v31 = vpop.f32.mrb[3].mxu0  ;;  %v3920_v49 = vpop.f32.mrb[3].mxu1 }
 0x132   :  { %5415 = vst [vmem:[#allocation33_spill] sm:$0xff] %v3916_v31  ;;  %3276 = vpow2.f32 %v2785_v29  ;;  %5416 = vst [vmem:[#allocation34_spill] sm:$0xff] %v3920_v49  ;;  %v491_v49 = vlaneseq }
 0x133   :  { %3278 = vpow2.f32 %v2786_v58 }
 0x134   :  { %3280 = vtanh.f32 %v408_v32  ;;  %v492_v34 = vshrl.u32 %v491_v49, 7  ;;  %v5419_v49 = vmov 0 }
 0x135   :  { %v5420_v49 = vsel %vm3939_vm7, 4294967295, %v5419_v49 }
 0x136   :  { %vm494_vm0 = vcmp.ge.s32.totalorder %v492_v34, 2  ;;  %vm495_vm1 = vcmp.lt.s32.totalorder %v492_v34, 4  ;;  %vm493_vm6 = vcmp.lt.s32.totalorder %v492_v34, 2  ;;  %5421 = vst [vmem:[#allocation35_spill] sm:$0xff] %v5420_v49  ;;  %v3953_v34 = vld [vmem:[#allocation8 + $0x4c] ss:$16 sps:$4 sm:$0xff]  }
 0x137   :  { %vm496_vm2 = vmand %vm494_vm0, %vm495_vm1  ;;  %5426 = vst [vmem:[#allocation38_spill] sm:$0xff] %v3953_v34  ;;  %v3991_v49 = vld [vmem:[#allocation8 + $0x88] ss:$16 sps:$4 sm:$0xff]  }
 0x138   :  { %vm3925_vm3 = vmpackc.low %vm496_vm2, %vm496_vm2  ;;  %5437 = vst [vmem:[#allocation48_spill] sm:$0xff] %v3991_v49 }
 0x139   :  { %vm3944_vm8 = vmpackc.low %vm493_vm6, %vm493_vm6 }
 0x13b   :  { %v3275_v4 = vpop.eup %3274 }
 0x13c   :  { %v3277_v16 = vpop.eup %3276  ;;  %v504_v1 = vadd.f32 1.0, %v3275_v4 }
 0x13d   :  { %v510_v26 = vadd.f32 1.0, %v3277_v16  ;;  %v3279_v28 = vpop.eup %3278  ;;  %v3929_v16 = vld [vmem:[#allocation8 + $0x8] ss:$16 sps:$4 sm:$0xff]  }
 0x13e   :  { %3282 = vrcp.f32 %v504_v1  ;;  %v3281_v27 = vpop.eup %3280  ;;  %v517_v31 = vadd.f32 1.0, %v3279_v28  ;;  %v3577_v28 = vld [vmem:[#allocation8 + $0x24c] ss:$16 sps:$4 sm:$0xff]  }
 0x13f   :  { %3284 = vrcp.f32 %v510_v26 }
 0x140   :  { %3286 = vrcp.f32 %v517_v31 }
 0x148   :  { %v3283_v30 = vpop.eup %3282 }
 0x149   :  { %v3285_v29 = vpop.eup %3284  ;;  %v521_v25 = vmul.f32 %v3283_v30, %v3281_v27  ;;  %v3933_v30 = vld [vmem:[#allocation8 + $0x2c] ss:$16 sps:$4 sm:$0xff]   ;;  %v3948_v27 = vld [vmem:[#allocation8 + $0x28] ss:$16 sps:$4 sm:$0xff]  }
 0x14a   :  { %v520_v24 = vmul.f32 0.0, %v3285_v29  ;;  %v3287_v32 = vpop.eup %3286  ;;  %5424 = vst [vmem:[#allocation36_spill] sm:$0xff] %v3948_v27  ;;  %v3950_v29 = vld [vmem:[#allocation8 + $0x208] ss:$16 sps:$4 sm:$0xff]  }
 0x14b   :  { %5425 = vst [vmem:[#allocation37_spill] sm:$0xff] %v3950_v29 }
 0x14c   :  { %v3922_v23 = vadd.f32 %v521_v25, %v520_v24 }
 0x14e   :  { %3288 = vtanh.f32 %v3922_v23 }
 0x158   :  { %v3289_v1 = vpop.eup %3288 }
 0x159   :  { %v524_v58 = vmul.f32 %v3289_v1, %v3287_v32  ;;  %v3955_v32 = vld [vmem:[#allocation8 + $0x22c] ss:$16 sps:$4 sm:$0xff]   ;;  %v3966_v1 = vld [vmem:[#allocation8 + $0x48] ss:$16 sps:$4 sm:$0xff]  }
 0x15a   :  { %5427 = vst [vmem:[#allocation39_spill] sm:$0xff] %v3955_v32  ;;  %5428 = vst [vmem:[#allocation40_spill] sm:$0xff] %v3966_v1 }
 0x15b   :  { %v3931_v24 = vpack.c.bf16 %v524_v58, %v524_v58  ;;  %v527_v25 = vrot.slane %v524_v58, 6  ;;  %v3968_v58 = vld [vmem:[#allocation8 + $0x228] ss:$16 sps:$4 sm:$0xff]  }
 0x15c   :  { %5429 = vst [vmem:[#allocation41_spill] sm:$0xff] %v3968_v58 }
 0x15d   :  { %2891 = vmatmul.mubr.msk.bf16.vlgmr.msra.gmra.mrb[20].mxu1 %vm3925_vm3, %v3931_v24  ;;  %v530_v31 = vsel %vm529_vm4, 0.0, %v527_v25  ;;  %v3972_v25 = vld [vmem:[#allocation8 + $0x6c] ss:$16 sps:$4 sm:$0xff]  }
 0x15e   :  { %1200 = vmatpush1.bf16.msra.mxu1 %v3929_v16  ;;  %v2884_v26 = vpack.c.bf16 %v530_v31, %v530_v31  ;;  %5430 = vst [vmem:[#allocation42_spill] sm:$0xff] %v3972_v25  ;;  %v3974_v31 = vld [vmem:[#allocation8 + $0x24c] ss:$16 sps:$4 sm:$0xff]  }
 0x15f   :  { %1201 = vmatprep.subr.bf16.mxu1 %v3933_v30  ;;  %5431 = vst [vmem:[#allocation43_spill] sm:$0xff] %v3974_v31 }
 0x160   :  { %2885 = vmatprep.mubr.msk.bf16.mxu0 %vm3939_vm7, %v2884_v26  ;;  %2894 = vmatprep.mubr.msk.bf16.mxu1 %vm3939_vm7, %v2884_v26  ;;  %v5432_v26 = vmov 0  }
 0x161   :  { %2888 = vmatmul.mubr.msk.bf16.vlgmr.msra.gmra.mrb[20].mxu0 %vm3944_vm8, %v3931_v24 }
 0x162   :  { %1202 = vmatpush1.bf16.msra.mxu1 %v3948_v27  ;;  %1241 = vmatpush1.bf16.msra.mxu0 %v3950_v29  ;;  %v3979_v27 = vld [vmem:[#allocation8 + $0x68] ss:$16 sps:$4 sm:$0xff]  }
 0x163   :  { %1203 = vmatprep.subr.bf16.mxu1 %v3953_v34  ;;  %1242 = vmatprep.subr.bf16.mxu0 %v3955_v32  ;;  %5433 = vst [vmem:[#allocation44_spill] sm:$0xff] %v3979_v27  ;;  %v3981_v29 = vld [vmem:[#allocation8 + $0x248] ss:$16 sps:$4 sm:$0xff]   ;;  %v3985_v34 = vld [vmem:[#allocation8 + $0x8c] ss:$16 sps:$4 sm:$0xff]  }
 0x164   :  { %1272 = vmatprep.mubr.bf16.mxu0 %v5432_v26  ;;  %5434 = vst [vmem:[#allocation45_spill] sm:$0xff] %v3981_v29  ;;  %5435 = vst [vmem:[#allocation46_spill] sm:$0xff] %v3985_v34  ;;  %v3987_v32 = vld [vmem:[#allocation8 + $0x26c] ss:$16 sps:$4 sm:$0xff]  }
 0x165   :  { %5436 = vst [vmem:[#allocation47_spill] sm:$0xff] %v3987_v32 }
 0x166   :  { %1204 = vmatpush1.bf16.msra.mxu1 %v3966_v1  ;;  %1243 = vmatpush1.bf16.msra.mxu0 %v3968_v58  ;;  %v3993_v1 = vld [vmem:[#allocation8 + $0x268] ss:$16 sps:$4 sm:$0xff]   ;;  %v3997_v58 = vld [vmem:[#allocation8 + $0xac] ss:$16 sps:$4 sm:$0xff]  }
 0x167   :  { %1205 = vmatprep.subr.bf16.mxu1 %v3972_v25  ;;  %1244 = vmatprep.subr.bf16.mxu0 %v3974_v31  ;;  %5438 = vst [vmem:[#allocation49_spill] sm:$0xff] %v3993_v1  ;;  %5439 = vst [vmem:[#allocation50_spill] sm:$0xff] %v3997_v58  ;;  %v3999_v25 = vld [vmem:[#allocation8 + $0x28c] ss:$16 sps:$4 sm:$0xff]   ;;  %v4003_v31 = vld [vmem:[#allocation8 + $0xa8] ss:$16 sps:$4 sm:$0xff]  }
 0x168   :  { %5440 = vst [vmem:[#allocation51_spill] sm:$0xff] %v3999_v25  ;;  %5441 = vst [vmem:[#allocation52_spill] sm:$0xff] %v4003_v31 }
 0x16a   :  { %1206 = vmatpush1.bf16.msra.mxu1 %v3979_v27  ;;  %1245 = vmatpush1.bf16.msra.mxu0 %v3981_v29  ;;  %v4005_v27 = vld [vmem:[#allocation8 + $0x288] ss:$16 sps:$4 sm:$0xff]   ;;  %v4009_v29 = vld [vmem:[#allocation8 + $0xcc] ss:$16 sps:$4 sm:$0xff]  }
 0x16b   :  { %1207 = vmatprep.subr.bf16.mxu1 %v3985_v34  ;;  %1246 = vmatprep.subr.bf16.mxu0 %v3987_v32  ;;  %5442 = vst [vmem:[#allocation53_spill] sm:$0xff] %v4005_v27  ;;  %5443 = vst [vmem:[#allocation54_spill] sm:$0xff] %v4009_v29  ;;  %v4011_v34 = vld [vmem:[#allocation8 + $0x2ac] ss:$16 sps:$4 sm:$0xff]   ;;  %v4015_v32 = vld [vmem:[#allocation8 + $0xc8] ss:$16 sps:$4 sm:$0xff]  }
 0x16c   :  { %5444 = vst [vmem:[#allocation55_spill] sm:$0xff] %v4011_v34  ;;  %5445 = vst [vmem:[#allocation56_spill] sm:$0xff] %v4015_v32 }
 0x16e   :  { %1208 = vmatpush1.bf16.msra.mxu1 %v3991_v49  ;;  %1247 = vmatpush1.bf16.msra.mxu0 %v3993_v1  ;;  %v4017_v49 = vld [vmem:[#allocation8 + $0x2a8] ss:$16 sps:$4 sm:$0xff]   ;;  %v4021_v1 = vld [vmem:[#allocation8 + $0xec] ss:$16 sps:$4 sm:$0xff]  }
 0x16f   :  { %1209 = vmatprep.subr.bf16.mxu1 %v3997_v58  ;;  %1248 = vmatprep.subr.bf16.mxu0 %v3999_v25  ;;  %5446 = vst [vmem:[#allocation57_spill] sm:$0xff] %v4017_v49  ;;  %v4023_v58 = vld [vmem:[#allocation8 + $0x2cc] ss:$16 sps:$4 sm:$0xff]   ;;  %v4027_v25 = vld [vmem:[#allocation8 + $0xe8] ss:$16 sps:$4 sm:$0xff]  }
 0x170   :  { %5447 = vst [vmem:[#allocation58_spill] sm:$0xff] %v4023_v58  ;;  %5448 = vst [vmem:[#allocation59_spill] sm:$0xff] %v4027_v25 }
 0x172   :  { %1210 = vmatpush1.bf16.msra.mxu1 %v4003_v31  ;;  %1249 = vmatpush1.bf16.msra.mxu0 %v4005_v27  ;;  %v4029_v31 = vld [vmem:[#allocation8 + $0x2c8] ss:$16 sps:$4 sm:$0xff]   ;;  %v4033_v27 = vld [vmem:[#allocation8 + $0x10c] ss:$16 sps:$4 sm:$0xff]  }
 0x173   :  { %1211 = vmatprep.subr.bf16.mxu1 %v4009_v29  ;;  %1250 = vmatprep.subr.bf16.mxu0 %v4011_v34  ;;  %5449 = vst [vmem:[#allocation60_spill] sm:$0xff] %v4029_v31  ;;  %5450 = vst [vmem:[#allocation61_spill] sm:$0xff] %v4033_v27  ;;  %v4035_v29 = vld [vmem:[#allocation8 + $0x2ec] ss:$16 sps:$4 sm:$0xff]   ;;  %v4039_v34 = vld [vmem:[#allocation8 + $0x108] ss:$16 sps:$4 sm:$0xff]  }
 0x174   :  { %5451 = vst [vmem:[#allocation62_spill] sm:$0xff] %v4035_v29  ;;  %5452 = vst [vmem:[#allocation63_spill] sm:$0xff] %v4039_v34 }
 0x176   :  { %1212 = vmatpush1.bf16.msra.mxu1 %v4015_v32  ;;  %1251 = vmatpush1.bf16.msra.mxu0 %v4017_v49  ;;  %v4041_v32 = vld [vmem:[#allocation8 + $0x2e8] ss:$16 sps:$4 sm:$0xff]   ;;  %v4045_v49 = vld [vmem:[#allocation8 + $0x12c] ss:$16 sps:$4 sm:$0xff]  }
 0x177   :  { %1213 = vmatprep.subr.bf16.mxu1 %v4021_v1  ;;  %1252 = vmatprep.subr.bf16.mxu0 %v4023_v58  ;;  %5453 = vst [vmem:[#allocation64_spill] sm:$0xff] %v4041_v32  ;;  %5454 = vst [vmem:[#allocation65_spill] sm:$0xff] %v4045_v49  ;;  %v4049_v58 = vld [vmem:[#allocation8 + $0x128] ss:$16 sps:$4 sm:$0xff]  }
 0x178   :  { %5455 = vst [vmem:[#allocation66_spill] sm:$0xff] %v4049_v58 }
 0x17a   :  { %1214 = vmatpush1.bf16.msra.mxu1 %v4027_v25  ;;  %1253 = vmatpush1.bf16.msra.mxu0 %v4029_v31  ;;  %v4052_v25 = vld [vmem:[#allocation8 + $0x14c] ss:$16 sps:$4 sm:$0xff]  }
 0x17b   :  { %1215 = vmatprep.subr.bf16.mxu1 %v4033_v27  ;;  %1254 = vmatprep.subr.bf16.mxu0 %v4035_v29  ;;  %5456 = vst [vmem:[#allocation67_spill] sm:$0xff] %v4052_v25  ;;  %v4059_v29 = vld [vmem:[#allocation8 + $0x148] ss:$16 sps:$4 sm:$0xff]  }
 0x17c   :  { %5457 = vst [vmem:[#allocation68_spill] sm:$0xff] %v4059_v29 }
 0x17e   :  { %1216 = vmatpush1.bf16.msra.mxu1 %v4039_v34  ;;  %1255 = vmatpush1.bf16.msra.mxu0 %v4041_v32  ;;  %v4063_v32 = vld [vmem:[#allocation8 + $0x16c] ss:$16 sps:$4 sm:$0xff]  }
 0x17f   :  { %1217 = vmatprep.subr.bf16.mxu1 %v4045_v49  ;;  %1319 = vmatprep.subr.bf16.mxu0 %v3755_v33  ;;  %5458 = vst [vmem:[#allocation69_spill] sm:$0xff] %v4063_v32  ;;  %v4067_v49 = vld [vmem:[#allocation8 + $0x168] ss:$16 sps:$4 sm:$0xff]   ;;  %v4071_v33 = vld [vmem:[#allocation8 + $0x18c] ss:$16 sps:$4 sm:$0xff]  }
 0x180   :  { %5459 = vst [vmem:[#allocation70_spill] sm:$0xff] %v4067_v49  ;;  %5460 = vst [vmem:[#allocation71_spill] sm:$0xff] %v4071_v33 }
 0x181   :  { %2900 = vmatmul.mubr.msk.bf16.vlgmr.msra.gmra.mrb[24].mxu0 %vm3925_vm3, %v3931_v24 }
 0x182   :  { %1218 = vmatpush1.bf16.msra.mxu1 %v4049_v58  ;;  %1320 = vmatpush1.bf16.msra.mxu0 %v3757_v35  ;;  %v4075_v35 = vld [vmem:[#allocation8 + $0x188] ss:$16 sps:$4 sm:$0xff]  }
 0x183   :  { %1219 = vmatprep.subr.bf16.mxu1 %v4052_v25  ;;  %1321 = vmatprep.subr.bf16.mxu0 %v3759_v37  ;;  %v4079_v37 = vld [vmem:[#allocation8 + $0x1ac] ss:$16 sps:$4 sm:$0xff]  }
 0x186   :  { %1220 = vmatpush1.bf16.msra.mxu1 %v4059_v29  ;;  %1322 = vmatpush1.bf16.msra.mxu0 %v3762_v38  ;;  %v4082_v29 = vpop.f32.mrb[4].mxu1  ;;  %v4084_v38 = vpop.f32.mrb[4].mxu0 }
 0x187   :  { %1221 = vmatprep.subr.bf16.mxu1 %v4063_v32  ;;  %1323 = vmatprep.subr.bf16.mxu0 %v3764_v39  ;;  %5461 = vst [vmem:[#allocation72_spill] sm:$0xff] %v4082_v29  ;;  %5462 = vst [vmem:[#allocation73_spill] sm:$0xff] %v4084_v38  ;;  %v4087_v32 = vld [vmem:[#allocation8 + $0x1a8] ss:$16 sps:$4 sm:$0xff]   ;;  %v4089_v39 = vpop.f32.mrb[5].mxu1 }
 0x188   :  { %5463 = vst [vmem:[#allocation74_spill] sm:$0xff] %v4087_v32  ;;  %5464 = vst [vmem:[#allocation75_spill] sm:$0xff] %v4089_v39  ;;  %v4107_v39 = vld [vmem:[#allocation8 + $0x1c8] ss:$16 sps:$4 sm:$0xff]  }
 0x18a   :  { %1222 = vmatpush1.bf16.msra.mxu1 %v4067_v49  ;;  %1324 = vmatpush1.bf16.msra.mxu0 %v3769_v40  ;;  %v4091_v49 = vpop.f32.mrb[5].mxu0  ;;  %v4097_v40 = vpop.f32.mrb[6].mxu1 }
 0x18b   :  { %1223 = vmatprep.subr.bf16.mxu1 %v4071_v33  ;;  %1325 = vmatprep.subr.bf16.mxu0 %v3771_v41  ;;  %5465 = vst [vmem:[#allocation76_spill] sm:$0xff] %v4091_v49  ;;  %v4095_v33 = vld [vmem:[#allocation8 + $0x1cc] ss:$16 sps:$4 sm:$0xff]   ;;  %5467 = vst [vmem:[#allocation78_spill] sm:$0xff] %v4097_v40  ;;  %v4099_v41 = vpop.f32.mrb[6].mxu0  ;;  %v4102_v29 = vpop.f32.mrb[7].mxu1 }
 0x18c   :  { %5466 = vst [vmem:[#allocation77_spill] sm:$0xff] %v4095_v33  ;;  %5468 = vst [vmem:[#allocation79_spill] sm:$0xff] %v4099_v41  ;;  %v4104_v38 = vpop.f32.mrb[7].mxu0  ;;  %v4111_v49 = vld [vmem:[#allocation8 + $0x1ec] ss:$16 sps:$4 sm:$0xff]   ;;  %v4114_v40 = vpop.f32.mrb[8].mxu1 }
 0x18d   :  { %5469 = vst [vmem:[#allocation80_spill] sm:$0xff] %v4102_v29  ;;  %5470 = vst [vmem:[#allocation81_spill] sm:$0xff] %v4104_v38  ;;  %v4116_v41 = vpop.f32.mrb[8].mxu0  ;;  %v4119_v29 = vld [vmem:[#allocation8 + $0x1e8] ss:$16 sps:$4 sm:$0xff]   ;;  %v4121_v38 = vpop.f32.mrb[9].mxu1 }
 0x18e   :  { %1224 = vmatpush1.bf16.msra.mxu1 %v4075_v35  ;;  %1326 = vmatpush1.bf16.msra.mxu0 %v3776_v42  ;;  %5471 = vst [vmem:[#allocation82_spill] sm:$0xff] %v4114_v40  ;;  %5472 = vst [vmem:[#allocation83_spill] sm:$0xff] %v4116_v41 }
 0x18f   :  { %1225 = vmatprep.subr.bf16.mxu1 %v4079_v37  ;;  %1327 = vmatprep.subr.bf16.mxu0 %v3781_v43  ;;  %5473 = vst [vmem:[#allocation84_spill] sm:$0xff] %v4121_v38 }
 0x192   :  { %1226 = vmatpush1.bf16.msra.mxu1 %v4087_v32  ;;  %1328 = vmatpush1.bf16.msra.mxu0 %v3783_v44  ;;  %v4123_v32 = vpop.f32.mrb[9].mxu0 }
 0x193   :  { %1227 = vmatprep.subr.bf16.mxu1 %v4095_v33  ;;  %1329 = vmatprep.subr.bf16.mxu0 %v3787_v45  ;;  %5474 = vst [vmem:[#allocation85_spill] sm:$0xff] %v4123_v32  ;;  %v4127_v33 = vpop.f32.mrb[10].mxu1  ;;  %v4129_v44 = vpop.f32.mrb[10].mxu0 }
 0x194   :  { %5475 = vst [vmem:[#allocation86_spill] sm:$0xff] %v4127_v33  ;;  %5476 = vst [vmem:[#allocation87_spill] sm:$0xff] %v4129_v44  ;;  %v4132_v40 = vpop.f32.mrb[11].mxu1  ;;  %v4134_v41 = vpop.f32.mrb[11].mxu0 }
 0x195   :  { %5477 = vst [vmem:[#allocation88_spill] sm:$0xff] %v4132_v40  ;;  %5478 = vst [vmem:[#allocation89_spill] sm:$0xff] %v4134_v41  ;;  %v4143_v33 = vpop.f32.mrb[12].mxu1  ;;  %v4145_v44 = vpop.f32.mrb[12].mxu0 }
 0x196   :  { %1228 = vmatpush1.bf16.msra.mxu1 %v4107_v39  ;;  %1330 = vmatpush1.bf16.msra.mxu0 %v3789_v46  ;;  %5479 = vst [vmem:[#allocation90_spill] sm:$0xff] %v4143_v33  ;;  %5480 = vst [vmem:[#allocation91_spill] sm:$0xff] %v4145_v44  ;;  %v4147_v38 = vpop.f32.mrb[13].mxu1 }
 0x197   :  { %1229 = vmatprep.subr.bf16.mxu1 %v4111_v49  ;;  %1331 = vmatprep.subr.bf16.mxu0 %v3793_v47  ;;  %5481 = vst [vmem:[#allocation92_spill] sm:$0xff] %v4147_v38  ;;  %v4151_v40 = vpop.f32.mrb[14].mxu1  ;;  %v5489_v38 = vld [vmem:[#allocation31_spill] sm:$0xff] }
 0x198   :  { %5482 = vst [vmem:[#allocation93_spill] sm:$0xff] %v4151_v40  ;;  %v4155_v41 = vpop.f32.mrb[15].mxu1 }
 0x199   :  { %5483 = vst [vmem:[#allocation94_spill] sm:$0xff] %v4155_v41 }
 0x19a   :  { %1230 = vmatpush1.bf16.msra.mxu1 %v4119_v29  ;;  %1332 = vmatpush1.bf16.msra.mxu0 %v3795_v48 }
 0x19b   :  { %1333 = vmatprep.subr.bf16.mxu0 %v3801_v51  ;;  %1360 = vmatprep.subr.bf16.mxu1 %v3799_v50 }
 0x19d   :  { %2897 = vmatmul.mubr.msk.bf16.vlgmr.msra.gmra.mrb[24].mxu1 %vm3944_vm8, %v3931_v24  ;;  %v4174_v24 = vpop.f32.mrb[13].mxu0 }
 0x19e   :  { %1334 = vmatpush1.bf16.msra.mxu0 %v3805_v53  ;;  %1361 = vmatpush1.bf16.msra.mxu1 %v3803_v52  ;;  %5484 = vst [vmem:[#allocation95_spill] sm:$0xff] %v4174_v24  ;;  %v4176_v41 = vpop.f32.mrb[14].mxu0 }
 0x19f   :  { %1335 = vmatprep.subr.bf16.mxu0 %v3815_v55  ;;  %1362 = vmatprep.subr.bf16.mxu1 %v3813_v54  ;;  %5485 = vst [vmem:[#allocation96_spill] sm:$0xff] %v4176_v41  ;;  %v4178_v40 = vpop.f32.mrb[15].mxu0  ;;  %v5488_v41 = vld [vmem:[#allocation30_spill] sm:$0xff] }
 0x1a0   :  { %1392 = vmatprep.mubr.bf16.mxu1 %v5432_v26  ;;  %5486 = vst [vmem:[#allocation97_spill] sm:$0xff] %v4178_v40  ;;  %v5487_v40 = vld [vmem:[#allocation29_spill] sm:$0xff] }
 0x1a2   :  { %1336 = vmatpush1.bf16.msra.mxu0 %v3819_v57  ;;  %1363 = vmatpush1.bf16.msra.mxu1 %v3817_v56 }
 0x1a3   :  { %1337 = vmatprep.subr.bf16.mxu0 %v3827_v60  ;;  %1364 = vmatprep.subr.bf16.mxu1 %v3825_v59 }
 0x1a6   :  { %1338 = vmatpush1.bf16.msra.mxu0 %v3831_v62  ;;  %1365 = vmatpush1.bf16.msra.mxu1 %v3829_v61 }
 0x1a7   :  { %1339 = vmatprep.subr.bf16.mxu0 %v3841_v0  ;;  %1366 = vmatprep.subr.bf16.mxu1 %v3839_v63 }
 0x1aa   :  { %1340 = vmatpush1.bf16.msra.mxu0 %v3845_v3  ;;  %1367 = vmatpush1.bf16.msra.mxu1 %v3843_v2 }
 0x1ab   :  { %1341 = vmatprep.subr.bf16.mxu0 %v3853_v6  ;;  %1368 = vmatprep.subr.bf16.mxu1 %v3851_v5 }
 0x1ae   :  { %1342 = vmatpush1.bf16.msra.mxu0 %v3857_v8  ;;  %1369 = vmatpush1.bf16.msra.mxu1 %v3855_v7 }
 0x1af   :  { %1343 = vmatprep.subr.bf16.mxu0 %v3867_v10  ;;  %1370 = vmatprep.subr.bf16.mxu1 %v3865_v9 }
 0x1b2   :  { %1344 = vmatpush1.bf16.msra.mxu0 %v3871_v12  ;;  %1371 = vmatpush1.bf16.msra.mxu1 %v3869_v11 }
 0x1b3   :  { %1345 = vmatprep.subr.bf16.mxu0 %v3879_v14  ;;  %1372 = vmatprep.subr.bf16.mxu1 %v3877_v13  ;;  %v5491_v13 = vld [vmem:[#allocation33_spill] sm:$0xff] }
 0x1b6   :  { %1346 = vmatpush1.bf16.msra.mxu0 %v3883_v17  ;;  %1373 = vmatpush1.bf16.msra.mxu1 %v3881_v15 }
 0x1b7   :  { %1347 = vmatprep.subr.bf16.mxu0 %v3891_v19  ;;  %1374 = vmatprep.subr.bf16.mxu1 %v3889_v18  ;;  %v5490_v19 = vld [vmem:[#allocation32_spill] sm:$0xff] }
 0x1ba   :  { %1348 = vmatpush1.bf16.msra.mxu0 %v3895_v21  ;;  %1375 = vmatpush1.bf16.msra.mxu1 %v3893_v20 }
 0x1bb   :  { %1349 = vmatprep.subr.bf16.mxu0 %v3902_v22  ;;  %1401 = vmatprep.subr.bf16.mxu1 %v5487_v40 }
 0x1be   :  { %1350 = vmatpush1.bf16.msra.mxu0 %v5488_v41 }
 0x1bf   :  { %1442 = vmatprep.subr.bf16.mxu0 %v5489_v38 }
 0x230   :  { %v1192_v33 = vpop.f32.mrb[20].mxu1 }
 0x231   :  { %v1194_v24 = vpop.f32.mrb[21].mxu1 }
 0x232   :  { %v1196_v44 = vpop.f32.mrb[22].mxu1 }
 0x233   :  { %v1197_v32 = vpop.f32.mrb[23].mxu1 }
 0x234   :  { %v1151_v15 = vpop.f32.mrb[20].mxu0 }
 0x235   :  { %v1152_v17 = vadd.f32 %v1151_v15, %v5490_v19  ;;  %v1153_v18 = vpop.f32.mrb[21].mxu0 }
 0x236   :  { %v1154_v21 = vadd.f32 %v1153_v18, %v5491_v13  ;;  %v1155_v14 = vpop.f32.mrb[22].mxu0 }
 0x237   :  { %v1193_v20 = vadd.f32 %v1192_v33, %v1152_v17  ;;  %v1156_v11 = vpop.f32.mrb[23].mxu0  ;;  %v5492_v14 = vld [vmem:[#allocation34_spill] sm:$0xff] }
 0x238   :  { %v1195_v22 = vadd.f32 %v1194_v24, %v1154_v21 }
 0x239   :  { %v2901_v38 = vmul.f32 -1.442695, %v1193_v20 }
 0x23a   :  { %v2902_v10 = vmul.f32 -1.442695, %v1195_v22 }
 0x23c   :  { %3290 = vpow2.f32 %v2902_v10 }
 0x23d   :  { %3292 = vpow2.f32 %v2901_v38 }
 0x246   :  { %v3291_v44 = vpop.eup %3290 }
 0x247   :  { %v3293_v32 = vpop.eup %3292  ;;  %v1290_v7 = vadd.f32 1.0, %v3291_v44 }
 0x248   :  { %v1284_v8 = vadd.f32 1.0, %v3293_v32 }
 0x249   :  { %3294 = vrcp.f32 %v1290_v7 }
 0x24a   :  { %3296 = vrcp.f32 %v1284_v8 }
 0x253   :  { %v3295_v10 = vpop.eup %3294 }
 0x254   :  { %v1274_v12 = vpop.f32.mrb[24].mxu0  ;;  %v3297_v20 = vpop.eup %3296  ;;  %v1300_v33 = vmul.f32 %v3295_v10, %v3922_v23  ;;  %v5502_v10 = vld [vmem:[#allocation44_spill] sm:$0xff] }
 0x255   :  { %v1276_v40 = vpop.f32.mrb[25].mxu0 }
 0x256   :  { %v1278_v9 = vpop.f32.mrb[26].mxu0 }
 0x257   :  { %v1279_v41 = vpop.f32.mrb[27].mxu0 }
 0x270   :  { %v1233_v15 = vpop.f32.mrb[24].mxu1 }
 0x271   :  { %v1234_v19 = vadd.f32 %v1233_v15, %v3918_v36  ;;  %v1235_v13 = vpop.f32.mrb[25].mxu1 }
 0x272   :  { %v1236_v17 = vadd.f32 %v1235_v13, %v5492_v14  ;;  %v1237_v11 = vpop.f32.mrb[26].mxu1  ;;  %v5494_v13 = vld [vmem:[#allocation36_spill] sm:$0xff]  ;;  %v5495_v14 = vld [vmem:[#allocation37_spill] sm:$0xff] }
 0x273   :  { %v1275_v18 = vadd.f32 %v1274_v12, %v1234_v19  ;;  %v1238_v21 = vpop.f32.mrb[27].mxu1  ;;  %v5497_v11 = vld [vmem:[#allocation39_spill] sm:$0xff] }
 0x274   :  { %v1277_v41 = vadd.f32 %v1276_v40, %v1236_v17  ;;  %v5496_v17 = vld [vmem:[#allocation38_spill] sm:$0xff]  ;;  %v5499_v21 = vld [vmem:[#allocation41_spill] sm:$0xff] }
 0x275   :  { %3298 = vtanh.f32 %v1275_v18  ;;  %v5498_v18 = vld [vmem:[#allocation40_spill] sm:$0xff]  ;;  %v3574_v19 = vld [vmem:[#allocation8 + $0x220] ss:$16 sps:$4 sm:$0xff]  }
 0x276   :  { %v2903_v9 = vmul.f32 -1.442695, %v1277_v41  ;;  %v5500_v41 = vld [vmem:[#allocation42_spill] sm:$0xff] }
 0x278   :  { %3300 = vpow2.f32 %v2903_v9  ;;  %v5501_v9 = vld [vmem:[#allocation43_spill] sm:$0xff] }
 0x27f   :  { %v3299_v22 = vpop.eup %3298 }
 0x280   :  { %v1301_v38 = vmul.f32 %v3299_v22, %v3297_v20  ;;  %v5503_v20 = vld [vmem:[#allocation45_spill] sm:$0xff]  ;;  %v5504_v22 = vld [vmem:[#allocation46_spill] sm:$0xff] }
 0x282   :  { %v3301_v24 = vpop.eup %3300  ;;  %v4199_v36 = vadd.f32 %v1301_v38, %v1300_v33  ;;  %v5505_v33 = vld [vmem:[#allocation47_spill] sm:$0xff]  ;;  %v5506_v38 = vld [vmem:[#allocation48_spill] sm:$0xff] }
 0x283   :  { %v1297_v44 = vadd.f32 1.0, %v3301_v24  ;;  %v5507_v24 = vld [vmem:[#allocation49_spill] sm:$0xff] }
 0x284   :  { %3302 = vtanh.f32 %v4199_v36 }
 0x285   :  { %3304 = vrcp.f32 %v1297_v44  ;;  %v5508_v44 = vld [vmem:[#allocation50_spill] sm:$0xff] }
 0x28e   :  { %v3303_v7 = vpop.eup %3302 }
 0x28f   :  { %v3305_v12 = vpop.eup %3304 }
 0x290   :  { %v1304_v8 = vmul.f32 %v3305_v12, %v3303_v7  ;;  %v5509_v7 = vld [vmem:[#allocation51_spill] sm:$0xff]  ;;  %v5510_v12 = vld [vmem:[#allocation52_spill] sm:$0xff] }
 0x292   :  { %v4202_v40 = vpack.c.bf16 %v1304_v8, %v1304_v8  ;;  %v1307_v32 = vrot.slane %v1304_v8, 6  ;;  %v5511_v8 = vld [vmem:[#allocation53_spill] sm:$0xff] }
 0x294   :  { %2912 = vmatmul.mubr.msk.bf16.vlgmr.msra.gmra.mrb[28].mxu1 %vm3925_vm3, %v4202_v40  ;;  %v1309_v23 = vsel %vm529_vm4, 0.0, %v1307_v32  ;;  %v5512_v32 = vld [vmem:[#allocation54_spill] sm:$0xff] }
 0x295   :  { %1402 = vmatpush1.bf16.msra.mxu1 %v3929_v16  ;;  %v2905_v15 = vpack.c.bf16 %v1309_v23, %v1309_v23  ;;  %v5513_v23 = vld [vmem:[#allocation55_spill] sm:$0xff] }
 0x296   :  { %1403 = vmatprep.subr.bf16.mxu1 %v3933_v30 }
 0x297   :  { %2906 = vmatprep.mubr.msk.bf16.mxu0 %vm3939_vm7, %v2905_v15  ;;  %2915 = vmatprep.mubr.msk.bf16.mxu1 %vm3939_vm7, %v2905_v15  ;;  %v5514_v15 = vld [vmem:[#allocation56_spill] sm:$0xff] }
 0x298   :  { %2909 = vmatmul.mubr.msk.bf16.vlgmr.msra.gmra.mrb[28].mxu0 %vm3944_vm8, %v4202_v40 }
 0x299   :  { %1404 = vmatpush1.bf16.msra.mxu1 %v5494_v13  ;;  %1443 = vmatpush1.bf16.msra.mxu0 %v5495_v14 }
 0x29a   :  { %1405 = vmatprep.subr.bf16.mxu1 %v5496_v17  ;;  %1444 = vmatprep.subr.bf16.mxu0 %v5497_v11 }
 0x29b   :  { %1474 = vmatprep.mubr.bf16.mxu0 %v5432_v26 }
 0x29d   :  { %1406 = vmatpush1.bf16.msra.mxu1 %v5498_v18  ;;  %1445 = vmatpush1.bf16.msra.mxu0 %v5499_v21 }
 0x29e   :  { %1407 = vmatprep.subr.bf16.mxu1 %v5500_v41  ;;  %1446 = vmatprep.subr.bf16.mxu0 %v5501_v9 }
 0x2a1   :  { %1408 = vmatpush1.bf16.msra.mxu1 %v5502_v10  ;;  %1447 = vmatpush1.bf16.msra.mxu0 %v5503_v20 }
 0x2a2   :  { %1409 = vmatprep.subr.bf16.mxu1 %v5504_v22  ;;  %1448 = vmatprep.subr.bf16.mxu0 %v5505_v33  ;;  %v5515_v22 = vld [vmem:[#allocation57_spill] sm:$0xff] }
 0x2a5   :  { %1410 = vmatpush1.bf16.msra.mxu1 %v5506_v38  ;;  %1449 = vmatpush1.bf16.msra.mxu0 %v5507_v24  ;;  %v5516_v38 = vld [vmem:[#allocation58_spill] sm:$0xff]  ;;  %v5517_v24 = vld [vmem:[#allocation59_spill] sm:$0xff] }
 0x2a6   :  { %1411 = vmatprep.subr.bf16.mxu1 %v5508_v44  ;;  %1450 = vmatprep.subr.bf16.mxu0 %v5509_v7 }
 0x2a9   :  { %1412 = vmatpush1.bf16.msra.mxu1 %v5510_v12  ;;  %1451 = vmatpush1.bf16.msra.mxu0 %v5511_v8  ;;  %v5518_v12 = vld [vmem:[#allocation62_spill] sm:$0xff] }
 0x2aa   :  { %1413 = vmatprep.subr.bf16.mxu1 %v5512_v32  ;;  %1452 = vmatprep.subr.bf16.mxu0 %v5513_v23  ;;  %v5519_v32 = vld [vmem:[#allocation64_spill] sm:$0xff]  ;;  %v5520_v23 = vld [vmem:[#allocation65_spill] sm:$0xff] }
 0x2ad   :  { %1414 = vmatpush1.bf16.msra.mxu1 %v5514_v15  ;;  %1453 = vmatpush1.bf16.msra.mxu0 %v5515_v22  ;;  %v4249_v15 = vld [vmem:[#allocation8 + $0x4] ss:$16 sps:$4 sm:$0xff]  }
 0x2ae   :  { %1415 = vmatprep.subr.bf16.mxu1 %v4021_v1  ;;  %1454 = vmatprep.subr.bf16.mxu0 %v5516_v38  ;;  %5521 = vst [vmem:[#allocation32_spill] sm:$0xff] %v4249_v15 }
 0x2b1   :  { %1416 = vmatpush1.bf16.msra.mxu1 %v5517_v24  ;;  %1455 = vmatpush1.bf16.msra.mxu0 %v4029_v31  ;;  %v4256_v31 = vld [vmem:[#allocation8] ss:$16 sps:$4 sm:$0xff]  }
 0x2b2   :  { %1417 = vmatprep.subr.bf16.mxu1 %v4033_v27  ;;  %1456 = vmatprep.subr.bf16.mxu0 %v5518_v12  ;;  %5522 = vst [vmem:[#allocation33_spill] sm:$0xff] %v4256_v31  ;;  %v4268_v12 = vld [vmem:[#allocation8 + $0x44] ss:$16 sps:$4 sm:$0xff]   ;;  %v5530_v27 = vld [vmem:[#allocation12_spill] sm:$0xff] }
 0x2b3   :  { %5526 = vst [vmem:[#allocation35_spill] sm:$0xff] %v4268_v12 }
 0x2b5   :  { %1418 = vmatpush1.bf16.msra.mxu1 %v4039_v34  ;;  %1457 = vmatpush1.bf16.msra.mxu0 %v5519_v32  ;;  %v4260_v34 = vld [vmem:[#allocation8 + $0x24] ss:$16 sps:$4 sm:$0xff]   ;;  %v4264_v32 = vld [vmem:[#allocation8 + $0x20] ss:$16 sps:$4 sm:$0xff]  }
 0x2b6   :  { %1419 = vmatprep.subr.bf16.mxu1 %v5520_v23  ;;  %1521 = vmatprep.subr.bf16.mxu0 %v4249_v15  ;;  %v5523_v23 = vld [vmem:[#allocation68_spill] sm:$0xff]  ;;  %5524 = vst [vmem:[#allocation34_spill] sm:$0xff] %v4264_v32  ;;  %v5525_v15 = vld [vmem:[#allocation69_spill] sm:$0xff] }
 0x2b8   :  { %2921 = vmatmul.mubr.msk.bf16.vlgmr.msra.gmra.mrb[32].mxu0 %vm3925_vm3, %v4202_v40 }
 0x2b9   :  { %1420 = vmatpush1.bf16.msra.mxu1 %v4049_v58  ;;  %1522 = vmatpush1.bf16.msra.mxu0 %v4256_v31  ;;  %v5527_v58 = vld [vmem:[#allocation70_spill] sm:$0xff]  ;;  %v5528_v31 = vld [vmem:[#allocation11_spill] sm:$0xff] }
 0x2ba   :  { %1421 = vmatprep.subr.bf16.mxu1 %v4052_v25  ;;  %1523 = vmatprep.subr.bf16.mxu0 %v4260_v34  ;;  %v5529_v25 = vld [vmem:[#allocation71_spill] sm:$0xff] }
 0x2bd   :  { %1422 = vmatpush1.bf16.msra.mxu1 %v5523_v23  ;;  %1524 = vmatpush1.bf16.msra.mxu0 %v4264_v32  ;;  %v5532_v32 = vld [vmem:[#allocation13_spill] sm:$0xff] }
 0x2be   :  { %1423 = vmatprep.subr.bf16.mxu1 %v5525_v15  ;;  %1525 = vmatprep.subr.bf16.mxu0 %v4268_v12  ;;  %v5531_v15 = vld [vmem:[#allocation74_spill] sm:$0xff]  ;;  %v5533_v12 = vld [vmem:[#allocation77_spill] sm:$0xff] }
 0x2c1   :  { %1424 = vmatpush1.bf16.msra.mxu1 %v5527_v58  ;;  %1526 = vmatpush1.bf16.msra.mxu0 %v5528_v31 }
 0x2c2   :  { %1425 = vmatprep.subr.bf16.mxu1 %v5529_v25  ;;  %1527 = vmatprep.subr.bf16.mxu0 %v5530_v27 }
 0x2c5   :  { %1426 = vmatpush1.bf16.msra.mxu1 %v4075_v35  ;;  %1528 = vmatpush1.bf16.msra.mxu0 %v3776_v42  ;;  %v5534_v42 = vld [vmem:[#allocation15_spill] sm:$0xff] }
 0x2c6   :  { %1427 = vmatprep.subr.bf16.mxu1 %v4079_v37  ;;  %1529 = vmatprep.subr.bf16.mxu0 %v3781_v43  ;;  %v5535_v43 = vld [vmem:[#allocation14_spill] sm:$0xff] }
 0x2c9   :  { %1428 = vmatpush1.bf16.msra.mxu1 %v5531_v15  ;;  %1530 = vmatpush1.bf16.msra.mxu0 %v5532_v32 }
 0x2ca   :  { %1429 = vmatprep.subr.bf16.mxu1 %v5533_v12  ;;  %1531 = vmatprep.subr.bf16.mxu0 %v3787_v45  ;;  %v5536_v45 = vld [vmem:[#allocation17_spill] sm:$0xff] }
 0x2cd   :  { %1430 = vmatpush1.bf16.msra.mxu1 %v4107_v39  ;;  %1532 = vmatpush1.bf16.msra.mxu0 %v3789_v46  ;;  %v5537_v46 = vld [vmem:[#allocation16_spill] sm:$0xff] }
 0x2ce   :  { %1431 = vmatprep.subr.bf16.mxu1 %v4111_v49  ;;  %1533 = vmatprep.subr.bf16.mxu0 %v3793_v47  ;;  %v5538_v47 = vld [vmem:[#allocation19_spill] sm:$0xff] }
 0x2d1   :  { %1432 = vmatpush1.bf16.msra.mxu1 %v4119_v29  ;;  %1534 = vmatpush1.bf16.msra.mxu0 %v3795_v48  ;;  %v5539_v48 = vld [vmem:[#allocation18_spill] sm:$0xff] }
 0x2d2   :  { %1535 = vmatprep.subr.bf16.mxu0 %v3801_v51  ;;  %1562 = vmatprep.subr.bf16.mxu1 %v3799_v50  ;;  %v5540_v50 = vld [vmem:[#allocation21_spill] sm:$0xff]  ;;  %v5541_v51 = vld [vmem:[#allocation20_spill] sm:$0xff] }
 0x2d4   :  { %2918 = vmatmul.mubr.msk.bf16.vlgmr.msra.gmra.mrb[32].mxu1 %vm3944_vm8, %v4202_v40  ;;  %v5553_v40 = vld [vmem:[#allocation76_spill] sm:$0xff] }
 0x2d5   :  { %1536 = vmatpush1.bf16.msra.mxu0 %v3805_v53  ;;  %1563 = vmatpush1.bf16.msra.mxu1 %v3803_v52  ;;  %v5542_v52 = vld [vmem:[#allocation23_spill] sm:$0xff]  ;;  %v5543_v53 = vld [vmem:[#allocation22_spill] sm:$0xff] }
 0x2d6   :  { %1537 = vmatprep.subr.bf16.mxu0 %v3815_v55  ;;  %1564 = vmatprep.subr.bf16.mxu1 %v3813_v54  ;;  %v5544_v54 = vld [vmem:[#allocation25_spill] sm:$0xff]  ;;  %v5545_v55 = vld [vmem:[#allocation24_spill] sm:$0xff] }
 0x2d7   :  { %1594 = vmatprep.mubr.bf16.mxu1 %v5432_v26 }
 0x2d9   :  { %1538 = vmatpush1.bf16.msra.mxu0 %v3819_v57  ;;  %1565 = vmatpush1.bf16.msra.mxu1 %v3817_v56  ;;  %v5546_v56 = vld [vmem:[#allocation27_spill] sm:$0xff]  ;;  %v5547_v57 = vld [vmem:[#allocation26_spill] sm:$0xff] }
 0x2da   :  { %1539 = vmatprep.subr.bf16.mxu0 %v3827_v60  ;;  %1566 = vmatprep.subr.bf16.mxu1 %v3825_v59  ;;  %v5548_v59 = vld [vmem:[#allocation28_spill] sm:$0xff]  ;;  %v5549_v60 = vld [vmem:[#allocation29_spill] sm:$0xff] }
 0x2dd   :  { %1540 = vmatpush1.bf16.msra.mxu0 %v3831_v62  ;;  %1567 = vmatpush1.bf16.msra.mxu1 %v3829_v61  ;;  %v5550_v61 = vld [vmem:[#allocation30_spill] sm:$0xff]  ;;  %v5551_v62 = vld [vmem:[#allocation31_spill] sm:$0xff] }
 0x2de   :  { %1541 = vmatprep.subr.bf16.mxu0 %v3841_v0  ;;  %1568 = vmatprep.subr.bf16.mxu1 %v3839_v63 }
 0x2e1   :  { %1542 = vmatpush1.bf16.msra.mxu0 %v3845_v3  ;;  %1569 = vmatpush1.bf16.msra.mxu1 %v3843_v2 }
 0x2e2   :  { %1543 = vmatprep.subr.bf16.mxu0 %v3853_v6  ;;  %1570 = vmatprep.subr.bf16.mxu1 %v3851_v5  ;;  %v5552_v6 = vld [vmem:[#allocation73_spill] sm:$0xff] }
 0x2e5   :  { %1544 = vmatpush1.bf16.msra.mxu0 %v5534_v42  ;;  %1571 = vmatpush1.bf16.msra.mxu1 %v5535_v43 }
 0x2e6   :  { %1545 = vmatprep.subr.bf16.mxu0 %v5536_v45  ;;  %1572 = vmatprep.subr.bf16.mxu1 %v5537_v46 }
 0x2e9   :  { %1546 = vmatpush1.bf16.msra.mxu0 %v5538_v47  ;;  %1573 = vmatpush1.bf16.msra.mxu1 %v5539_v48 }
 0x2ea   :  { %1547 = vmatprep.subr.bf16.mxu0 %v5540_v50  ;;  %1574 = vmatprep.subr.bf16.mxu1 %v5541_v51 }
 0x2ed   :  { %1548 = vmatpush1.bf16.msra.mxu0 %v5542_v52  ;;  %1575 = vmatpush1.bf16.msra.mxu1 %v5543_v53 }
 0x2ee   :  { %1549 = vmatprep.subr.bf16.mxu0 %v5544_v54  ;;  %1576 = vmatprep.subr.bf16.mxu1 %v5545_v55 }
 0x2f1   :  { %1550 = vmatpush1.bf16.msra.mxu0 %v5546_v56  ;;  %1577 = vmatpush1.bf16.msra.mxu1 %v5547_v57 }
 0x2f2   :  { %1551 = vmatprep.subr.bf16.mxu0 %v5548_v59  ;;  %1603 = vmatprep.subr.bf16.mxu1 %v5549_v60  ;;  %v5554_v60 = vld [vmem:[#allocation72_spill] sm:$0xff] }
 0x2f5   :  { %1552 = vmatpush1.bf16.msra.mxu0 %v5550_v61 }
 0x2f6   :  { %1644 = vmatprep.subr.bf16.mxu0 %v5551_v62 }
 0x367   :  { %v1394_v63 = vpop.f32.mrb[28].mxu1 }
 0x368   :  { %v1396_v0 = vpop.f32.mrb[29].mxu1 }
 0x369   :  { %v1398_v2 = vpop.f32.mrb[30].mxu1 }
 0x36a   :  { %v1399_v3 = vpop.f32.mrb[31].mxu1  ;;  %v5555_v2 = vld [vmem:[#allocation75_spill] sm:$0xff] }
 0x36b   :  { %v1353_v5 = vpop.f32.mrb[28].mxu0 }
 0x36c   :  { %v1354_v27 = vadd.f32 %v1353_v5, %v5552_v6  ;;  %v1355_v31 = vpop.f32.mrb[29].mxu0 }
 0x36d   :  { %v1356_v32 = vadd.f32 %v1355_v31, %v5553_v40  ;;  %v1357_v42 = vpop.f32.mrb[30].mxu0 }
 0x36e   :  { %v1395_v43 = vadd.f32 %v1394_v63, %v1354_v27  ;;  %v1358_v45 = vpop.f32.mrb[31].mxu0 }
 0x36f   :  { %v1397_v46 = vadd.f32 %v1396_v0, %v1356_v32 }
 0x370   :  { %v2922_v53 = vmul.f32 -1.442695, %v1395_v43 }
 0x371   :  { %v2923_v52 = vmul.f32 -1.442695, %v1397_v46 }
 0x373   :  { %3306 = vpow2.f32 %v2923_v52 }
 0x374   :  { %3308 = vpow2.f32 %v2922_v53 }
 0x37d   :  { %v3307_v54 = vpop.eup %3306 }
 0x37e   :  { %v3309_v55 = vpop.eup %3308  ;;  %v1492_v56 = vadd.f32 1.0, %v3307_v54 }
 0x37f   :  { %v1486_v57 = vadd.f32 1.0, %v3309_v55  ;;  %v4397_v55 = vld [vmem:[#allocation8 + $0x40] ss:$16 sps:$4 sm:$0xff]  }
 0x380   :  { %3310 = vrcp.f32 %v1492_v56  ;;  %5576 = vst [vmem:[#allocation36_spill] sm:$0xff] %v4397_v55  ;;  %v4401_v56 = vld [vmem:[#allocation8 + $0x64] ss:$16 sps:$4 sm:$0xff]  }
 0x381   :  { %3312 = vrcp.f32 %v1486_v57  ;;  %5577 = vst [vmem:[#allocation37_spill] sm:$0xff] %v4401_v56  ;;  %v4409_v57 = vld [vmem:[#allocation8 + $0x84] ss:$16 sps:$4 sm:$0xff]  }
 0x382   :  { %5579 = vst [vmem:[#allocation39_spill] sm:$0xff] %v4409_v57 }
 0x38a   :  { %v3311_v31 = vpop.eup %3310 }
 0x38b   :  { %v1476_v47 = vpop.f32.mrb[32].mxu0  ;;  %v3313_v40 = vpop.eup %3312  ;;  %v1502_v42 = vmul.f32 %v3311_v31, %v4199_v36  ;;  %v4454_v31 = vld [vmem:[#allocation8 + $0x100] ss:$16 sps:$4 sm:$0xff]  }
 0x38c   :  { %v1478_v48 = vpop.f32.mrb[33].mxu0  ;;  %5591 = vst [vmem:[#allocation58_spill] sm:$0xff] %v4454_v31 }
 0x38d   :  { %v1480_v50 = vpop.f32.mrb[34].mxu0 }
 0x38e   :  { %v1481_v51 = vpop.f32.mrb[35].mxu0 }
 0x3a7   :  { %v1435_v59 = vpop.f32.mrb[32].mxu1 }
 0x3a8   :  { %v1436_v61 = vadd.f32 %v1435_v59, %v5554_v60  ;;  %v1437_v62 = vpop.f32.mrb[33].mxu1  ;;  %v4413_v59 = vld [vmem:[#allocation8 + $0x80] ss:$16 sps:$4 sm:$0xff]   ;;  %v4417_v60 = vld [vmem:[#allocation8 + $0xa4] ss:$16 sps:$4 sm:$0xff]  }
 0x3a9   :  { %v1438_v63 = vadd.f32 %v1437_v62, %v5555_v2  ;;  %v1439_v3 = vpop.f32.mrb[34].mxu1  ;;  %5580 = vst [vmem:[#allocation40_spill] sm:$0xff] %v4413_v59  ;;  %5581 = vst [vmem:[#allocation41_spill] sm:$0xff] %v4417_v60  ;;  %v4425_v62 = vld [vmem:[#allocation8 + $0xc4] ss:$16 sps:$4 sm:$0xff]  }
 0x3aa   :  { %v1477_v0 = vadd.f32 %v1476_v47, %v1436_v61  ;;  %v1440_v5 = vpop.f32.mrb[35].mxu1  ;;  %v4421_v61 = vld [vmem:[#allocation8 + $0xa0] ss:$16 sps:$4 sm:$0xff]   ;;  %5583 = vst [vmem:[#allocation43_spill] sm:$0xff] %v4425_v62  ;;  %v4435_v3 = vld [vmem:[#allocation8 + $0x204] ss:$16 sps:$4 sm:$0xff]  }
 0x3ab   :  { %v1479_v6 = vadd.f32 %v1478_v48, %v1438_v63  ;;  %5582 = vst [vmem:[#allocation42_spill] sm:$0xff] %v4421_v61  ;;  %v4429_v2 = vld [vmem:[#allocation8 + $0xc0] ss:$16 sps:$4 sm:$0xff]   ;;  %v4432_v63 = vld [vmem:[#allocation8 + $0xe4] ss:$16 sps:$4 sm:$0xff]   ;;  %5586 = vst [vmem:[#allocation47_spill] sm:$0xff] %v4435_v3 }
 0x3ac   :  { %3314 = vtanh.f32 %v1477_v0  ;;  %5584 = vst [vmem:[#allocation44_spill] sm:$0xff] %v4429_v2  ;;  %5585 = vst [vmem:[#allocation45_spill] sm:$0xff] %v4432_v63  ;;  %v4441_v0 = vld [vmem:[#allocation8 + $0xe0] ss:$16 sps:$4 sm:$0xff]  }
 0x3ad   :  { %v2924_v27 = vmul.f32 -1.442695, %v1479_v6  ;;  %5587 = vst [vmem:[#allocation50_spill] sm:$0xff] %v4441_v0  ;;  %v4444_v5 = vld [vmem:[#allocation8 + $0x200] ss:$16 sps:$4 sm:$0xff]  }
 0x3ae   :  { %5588 = vst [vmem:[#allocation51_spill] sm:$0xff] %v4444_v5  ;;  %v4447_v6 = vld [vmem:[#allocation8 + $0x104] ss:$16 sps:$4 sm:$0xff]  }
 0x3af   :  { %3316 = vpow2.f32 %v2924_v27  ;;  %5589 = vst [vmem:[#allocation53_spill] sm:$0xff] %v4447_v6  ;;  %v4450_v27 = vld [vmem:[#allocation8 + $0x224] ss:$16 sps:$4 sm:$0xff]  }
 0x3b0   :  { %5590 = vst [vmem:[#allocation57_spill] sm:$0xff] %v4450_v27 }
 0x3b6   :  { %v3315_v32 = vpop.eup %3314 }
 0x3b7   :  { %v1503_v43 = vmul.f32 %v3315_v32, %v3313_v40  ;;  %v4457_v40 = vld [vmem:[#allocation8 + $0x220] ss:$16 sps:$4 sm:$0xff]   ;;  %v4460_v32 = vld [vmem:[#allocation8 + $0x124] ss:$16 sps:$4 sm:$0xff]  }
 0x3b8   :  { %5592 = vst [vmem:[#allocation59_spill] sm:$0xff] %v4457_v40  ;;  %5593 = vst [vmem:[#allocation68_spill] sm:$0xff] %v4460_v32 }
 0x3b9   :  { %v3317_v45 = vpop.eup %3316  ;;  %v4334_v46 = vadd.f32 %v1503_v43, %v1502_v42  ;;  %v4463_v42 = vld [vmem:[#allocation8 + $0x244] ss:$16 sps:$4 sm:$0xff]   ;;  %v4466_v43 = vld [vmem:[#allocation8 + $0x120] ss:$16 sps:$4 sm:$0xff]  }
 0x3ba   :  { %v1499_v50 = vadd.f32 1.0, %v3317_v45  ;;  %5594 = vst [vmem:[#allocation70_spill] sm:$0xff] %v4463_v42  ;;  %5595 = vst [vmem:[#allocation11_spill] sm:$0xff] %v4466_v43  ;;  %v4469_v45 = vld [vmem:[#allocation8 + $0x240] ss:$16 sps:$4 sm:$0xff]  }
 0x3bb   :  { %3318 = vtanh.f32 %v4334_v46  ;;  %5596 = vst [vmem:[#allocation71_spill] sm:$0xff] %v4469_v45 }
 0x3bc   :  { %3320 = vrcp.f32 %v1499_v50  ;;  %v4472_v50 = vld [vmem:[#allocation8 + $0x144] ss:$16 sps:$4 sm:$0xff]  }
 0x3bd   :  { %5597 = vst [vmem:[#allocation12_spill] sm:$0xff] %v4472_v50 }
 0x3c5   :  { %v3319_v47 = vpop.eup %3318 }
 0x3c6   :  { %v3321_v51 = vpop.eup %3320 }
 0x3c7   :  { %v1506_v52 = vmul.f32 %v3321_v51, %v3319_v47  ;;  %v4475_v47 = vld [vmem:[#allocation8 + $0x264] ss:$16 sps:$4 sm:$0xff]   ;;  %v4478_v51 = vld [vmem:[#allocation8 + $0x140] ss:$16 sps:$4 sm:$0xff]  }
 0x3c8   :  { %5598 = vst [vmem:[#allocation74_spill] sm:$0xff] %v4475_v47  ;;  %5599 = vst [vmem:[#allocation13_spill] sm:$0xff] %v4478_v51 }
 0x3c9   :  { %v4337_v48 = vpack.c.bf16 %v1506_v52, %v1506_v52  ;;  %v1509_v53 = vrot.slane %v1506_v52, 6  ;;  %v4481_v52 = vld [vmem:[#allocation8 + $0x260] ss:$16 sps:$4 sm:$0xff]  }
 0x3ca   :  { %5600 = vst [vmem:[#allocation77_spill] sm:$0xff] %v4481_v52 }
 0x3cb   :  { %2933 = vmatmul.mubr.msk.bf16.vlgmr.msra.gmra.mrb[36].mxu1 %vm3925_vm3, %v4337_v48  ;;  %v1511_v36 = vsel %vm529_vm4, 0.0, %v1509_v53  ;;  %v4487_v53 = vld [vmem:[#allocation8 + $0x284] ss:$16 sps:$4 sm:$0xff]  }
 0x3cc   :  { %1604 = vmatpush1.bf16.msra.mxu1 %v3929_v16  ;;  %v2926_v54 = vpack.c.bf16 %v1511_v36, %v1511_v36  ;;  %v5556_v16 = vld [vmem:[#allocation46_spill] sm:$0xff]  ;;  %5602 = vst [vmem:[#allocation14_spill] sm:$0xff] %v4487_v53  ;;  %v4490_v36 = vld [vmem:[#allocation8 + $0x160] ss:$16 sps:$4 sm:$0xff]  }
 0x3cd   :  { %1605 = vmatprep.subr.bf16.mxu1 %v3933_v30  ;;  %v5557_v30 = vld [vmem:[#allocation48_spill] sm:$0xff]  ;;  %5603 = vst [vmem:[#allocation17_spill] sm:$0xff] %v4490_v36 }
 0x3ce   :  { %2927 = vmatprep.mubr.msk.bf16.mxu0 %vm3939_vm7, %v2926_v54  ;;  %2936 = vmatprep.mubr.msk.bf16.mxu1 %vm3939_vm7, %v2926_v54  ;;  %v4493_v54 = vld [vmem:[#allocation8 + $0x280] ss:$16 sps:$4 sm:$0xff]  }
 0x3cf   :  { %2930 = vmatmul.mubr.msk.bf16.vlgmr.msra.gmra.mrb[36].mxu0 %vm3944_vm8, %v4337_v48  ;;  %5604 = vst [vmem:[#allocation16_spill] sm:$0xff] %v4493_v54 }
 0x3d0   :  { %1606 = vmatpush1.bf16.msra.mxu1 %v5494_v13  ;;  %1645 = vmatpush1.bf16.msra.mxu0 %v5495_v14  ;;  %v5558_v13 = vld [vmem:[#allocation49_spill] sm:$0xff]  ;;  %v5559_v14 = vld [vmem:[#allocation52_spill] sm:$0xff] }
 0x3d1   :  { %1607 = vmatprep.subr.bf16.mxu1 %v5496_v17  ;;  %1646 = vmatprep.subr.bf16.mxu0 %v5497_v11  ;;  %v5560_v17 = vld [vmem:[#allocation54_spill] sm:$0xff]  ;;  %v5561_v11 = vld [vmem:[#allocation55_spill] sm:$0xff] }
 0x3d2   :  { %1676 = vmatprep.mubr.bf16.mxu0 %v5432_v26 }
 0x3d4   :  { %1608 = vmatpush1.bf16.msra.mxu1 %v5498_v18  ;;  %1647 = vmatpush1.bf16.msra.mxu0 %v5499_v21  ;;  %v5562_v18 = vld [vmem:[#allocation56_spill] sm:$0xff] }
 0x3d5   :  { %1609 = vmatprep.subr.bf16.mxu1 %v5500_v41  ;;  %1648 = vmatprep.subr.bf16.mxu0 %v5501_v9  ;;  %v5563_v21 = vld [vmem:[#allocation60_spill] sm:$0xff]  ;;  %v5564_v41 = vld [vmem:[#allocation61_spill] sm:$0xff]  ;;  %v5565_v9 = vld [vmem:[#allocation62_spill] sm:$0xff] }
 0x3d8   :  { %1610 = vmatpush1.bf16.msra.mxu1 %v5502_v10  ;;  %1649 = vmatpush1.bf16.msra.mxu0 %v5503_v20  ;;  %v5566_v10 = vld [vmem:[#allocation63_spill] sm:$0xff]  ;;  %v5567_v20 = vld [vmem:[#allocation64_spill] sm:$0xff] }
 0x3d9   :  { %1611 = vmatprep.subr.bf16.mxu1 %v5556_v16  ;;  %1650 = vmatprep.subr.bf16.mxu0 %v5505_v33  ;;  %v5568_v33 = vld [vmem:[#allocation65_spill] sm:$0xff] }
 0x3da   :  { %v4496_v16 = vld [vmem:[#allocation8 + $0x184] ss:$16 sps:$4 sm:$0xff]  }
 0x3db   :  { %5605 = vst [vmem:[#allocation19_spill] sm:$0xff] %v4496_v16 }
 0x3dc   :  { %1612 = vmatpush1.bf16.msra.mxu1 %v5557_v30  ;;  %1651 = vmatpush1.bf16.msra.mxu0 %v5558_v13  ;;  %v4499_v30 = vld [vmem:[#allocation8 + $0x2a4] ss:$16 sps:$4 sm:$0xff]   ;;  %v4502_v13 = vld [vmem:[#allocation8 + $0x180] ss:$16 sps:$4 sm:$0xff]  }
 0x3dd   :  { %1613 = vmatprep.subr.bf16.mxu1 %v5508_v44  ;;  %1652 = vmatprep.subr.bf16.mxu0 %v5509_v7  ;;  %v5569_v44 = vld [vmem:[#allocation32_spill] sm:$0xff]  ;;  %v5574_v7 = vld [vmem:[#allocation69_spill] sm:$0xff]  ;;  %5606 = vst [vmem:[#allocation18_spill] sm:$0xff] %v4499_v30  ;;  %5607 = vst [vmem:[#allocation21_spill] sm:$0xff] %v4502_v13 }
 0x3e0   :  { %1614 = vmatpush1.bf16.msra.mxu1 %v5559_v14  ;;  %1653 = vmatpush1.bf16.msra.mxu0 %v5511_v8  ;;  %v5575_v8 = vld [vmem:[#allocation35_spill] sm:$0xff] }
 0x3e1   :  { %1615 = vmatprep.subr.bf16.mxu1 %v5560_v17  ;;  %1654 = vmatprep.subr.bf16.mxu0 %v5561_v11  ;;  %v4505_v14 = vld [vmem:[#allocation8 + $0x2a0] ss:$16 sps:$4 sm:$0xff]   ;;  %v4508_v17 = vld [vmem:[#allocation8 + $0x1a4] ss:$16 sps:$4 sm:$0xff]  }
 0x3e2   :  { %5608 = vst [vmem:[#allocation20_spill] sm:$0xff] %v4505_v14  ;;  %5609 = vst [vmem:[#allocation23_spill] sm:$0xff] %v4508_v17  ;;  %v4511_v11 = vld [vmem:[#allocation8 + $0x2c4] ss:$16 sps:$4 sm:$0xff]  }
 0x3e3   :  { %5610 = vst [vmem:[#allocation22_spill] sm:$0xff] %v4511_v11 }
 0x3e4   :  { %1616 = vmatpush1.bf16.msra.mxu1 %v5562_v18  ;;  %1655 = vmatpush1.bf16.msra.mxu0 %v5515_v22  ;;  %v5571_v22 = vld [vmem:[#allocation33_spill] sm:$0xff] }
 0x3e5   :  { %1617 = vmatprep.subr.bf16.mxu1 %v4021_v1  ;;  %1656 = vmatprep.subr.bf16.mxu0 %v5516_v38  ;;  %v5570_v1 = vld [vmem:[#allocation66_spill] sm:$0xff]  ;;  %v5572_v38 = vld [vmem:[#allocation67_spill] sm:$0xff] }
 0x3e6   :  { %v4514_v18 = vld [vmem:[#allocation8 + $0x1a0] ss:$16 sps:$4 sm:$0xff]  }
 0x3e7   :  { %5611 = vst [vmem:[#allocation25_spill] sm:$0xff] %v4514_v18 }
 0x3e8   :  { %1618 = vmatpush1.bf16.msra.mxu1 %v5517_v24  ;;  %1657 = vmatpush1.bf16.msra.mxu0 %v5563_v21  ;;  %v5573_v24 = vld [vmem:[#allocation34_spill] sm:$0xff]  ;;  %v4517_v21 = vld [vmem:[#allocation8 + $0x2c0] ss:$16 sps:$4 sm:$0xff]  }
 0x3e9   :  { %1619 = vmatprep.subr.bf16.mxu1 %v5564_v41  ;;  %1658 = vmatprep.subr.bf16.mxu0 %v5565_v9  ;;  %5612 = vst [vmem:[#allocation24_spill] sm:$0xff] %v4517_v21  ;;  %v4520_v41 = vld [vmem:[#allocation8 + $0x1c4] ss:$16 sps:$4 sm:$0xff]  }
 0x3ea   :  { %5613 = vst [vmem:[#allocation27_spill] sm:$0xff] %v4520_v41  ;;  %v4523_v9 = vld [vmem:[#allocation8 + $0x2e4] ss:$16 sps:$4 sm:$0xff]  }
 0x3eb   :  { %5614 = vst [vmem:[#allocation26_spill] sm:$0xff] %v4523_v9 }
 0x3ec   :  { %1620 = vmatpush1.bf16.msra.mxu1 %v5566_v10  ;;  %1659 = vmatpush1.bf16.msra.mxu0 %v5567_v20  ;;  %v4526_v10 = vld [vmem:[#allocation8 + $0x1c0] ss:$16 sps:$4 sm:$0xff]  }
 0x3ed   :  { %1621 = vmatprep.subr.bf16.mxu1 %v5568_v33  ;;  %1723 = vmatprep.subr.bf16.mxu0 %v5569_v44  ;;  %5615 = vst [vmem:[#allocation28_spill] sm:$0xff] %v4526_v10  ;;  %v4529_v20 = vld [vmem:[#allocation8 + $0x2e0] ss:$16 sps:$4 sm:$0xff]   ;;  %v4532_v33 = vld [vmem:[#allocation8 + $0x1e4] ss:$16 sps:$4 sm:$0xff]  }
 0x3ee   :  { %5616 = vst [vmem:[#allocation29_spill] sm:$0xff] %v4529_v20  ;;  %5617 = vst [vmem:[#allocation30_spill] sm:$0xff] %v4532_v33 }
 0x3ef   :  { %2942 = vmatmul.mubr.msk.bf16.vlgmr.msra.gmra.mrb[40].mxu0 %vm3925_vm3, %v4337_v48 }
 0x3f0   :  { %1622 = vmatpush1.bf16.msra.mxu1 %v5570_v1  ;;  %1724 = vmatpush1.bf16.msra.mxu0 %v5571_v22  ;;  %v4535_v1 = vld [vmem:[#allocation8 + $0xc] ss:$16 sps:$4 sm:$0xff]  }
 0x3f1   :  { %1623 = vmatprep.subr.bf16.mxu1 %v5572_v38  ;;  %1725 = vmatprep.subr.bf16.mxu0 %v4260_v34  ;;  %5618 = vst [vmem:[#allocation31_spill] sm:$0xff] %v4535_v1  ;;  %v4538_v38 = vld [vmem:[#allocation8 + $0x1e0] ss:$16 sps:$4 sm:$0xff]  }
 0x3f2   :  { %5619 = vst [vmem:[#allocation73_spill] sm:$0xff] %v4538_v38 }
 0x3f4   :  { %1624 = vmatpush1.bf16.msra.mxu1 %v5523_v23  ;;  %1726 = vmatpush1.bf16.msra.mxu0 %v5573_v24  ;;  %v4405_v23 = vld [vmem:[#allocation8 + $0x60] ss:$16 sps:$4 sm:$0xff]  }
 0x3f5   :  { %1625 = vmatprep.subr.bf16.mxu1 %v5574_v7  ;;  %1727 = vmatprep.subr.bf16.mxu0 %v5575_v8  ;;  %5578 = vst [vmem:[#allocation38_spill] sm:$0xff] %v4405_v23 }
 0x3f8   :  { %1626 = vmatpush1.bf16.msra.mxu1 %v5527_v58  ;;  %1728 = vmatpush1.bf16.msra.mxu0 %v4397_v55 }
 0x3f9   :  { %1627 = vmatprep.subr.bf16.mxu1 %v5529_v25  ;;  %1729 = vmatprep.subr.bf16.mxu0 %v4401_v56 }
 0x3fc   :  { %1628 = vmatpush1.bf16.msra.mxu1 %v4075_v35  ;;  %1730 = vmatpush1.bf16.msra.mxu0 %v4405_v23 }
 0x3fd   :  { %1629 = vmatprep.subr.bf16.mxu1 %v4079_v37  ;;  %1731 = vmatprep.subr.bf16.mxu0 %v4409_v57 }
 0x400   :  { %1630 = vmatpush1.bf16.msra.mxu1 %v5531_v15  ;;  %1732 = vmatpush1.bf16.msra.mxu0 %v4413_v59 }
 0x401   :  { %1631 = vmatprep.subr.bf16.mxu1 %v5533_v12  ;;  %1733 = vmatprep.subr.bf16.mxu0 %v4417_v60 }
 0x404   :  { %1632 = vmatpush1.bf16.msra.mxu1 %v4107_v39  ;;  %1734 = vmatpush1.bf16.msra.mxu0 %v4421_v61 }
 0x405   :  { %1633 = vmatprep.subr.bf16.mxu1 %v4111_v49  ;;  %1735 = vmatprep.subr.bf16.mxu0 %v4425_v62 }
 0x408   :  { %1634 = vmatpush1.bf16.msra.mxu1 %v4119_v29  ;;  %1736 = vmatpush1.bf16.msra.mxu0 %v4429_v2 }
 0x409   :  { %1737 = vmatprep.subr.bf16.mxu0 %v4432_v63  ;;  %1764 = vmatprep.subr.bf16.mxu1 %v4435_v3 }
 0x40b   :  { %2939 = vmatmul.mubr.msk.bf16.vlgmr.msra.gmra.mrb[40].mxu1 %vm3944_vm8, %v4337_v48  ;;  %v4484_v48 = vld [vmem:[#allocation8 + $0x164] ss:$16 sps:$4 sm:$0xff]  }
 0x40c   :  { %1738 = vmatpush1.bf16.msra.mxu0 %v4441_v0  ;;  %1765 = vmatpush1.bf16.msra.mxu1 %v4444_v5  ;;  %5601 = vst [vmem:[#allocation15_spill] sm:$0xff] %v4484_v48 }
 0x40d   :  { %1739 = vmatprep.subr.bf16.mxu0 %v4447_v6  ;;  %1766 = vmatprep.subr.bf16.mxu1 %v4450_v27 }
 0x40e   :  { %1796 = vmatprep.mubr.bf16.mxu1 %v5432_v26 }
 0x410   :  { %1740 = vmatpush1.bf16.msra.mxu0 %v4454_v31  ;;  %1767 = vmatpush1.bf16.msra.mxu1 %v4457_v40 }
 0x411   :  { %1741 = vmatprep.subr.bf16.mxu0 %v4460_v32  ;;  %1768 = vmatprep.subr.bf16.mxu1 %v4463_v42 }
 0x414   :  { %1742 = vmatpush1.bf16.msra.mxu0 %v4466_v43  ;;  %1769 = vmatpush1.bf16.msra.mxu1 %v4469_v45 }
 0x415   :  { %1743 = vmatprep.subr.bf16.mxu0 %v4472_v50  ;;  %1770 = vmatprep.subr.bf16.mxu1 %v4475_v47 }
 0x418   :  { %1744 = vmatpush1.bf16.msra.mxu0 %v4478_v51  ;;  %1771 = vmatpush1.bf16.msra.mxu1 %v4481_v52 }
 0x419   :  { %1745 = vmatprep.subr.bf16.mxu0 %v4484_v48  ;;  %1772 = vmatprep.subr.bf16.mxu1 %v4487_v53 }
 0x41c   :  { %1746 = vmatpush1.bf16.msra.mxu0 %v4490_v36  ;;  %1773 = vmatpush1.bf16.msra.mxu1 %v4493_v54 }
 0x41d   :  { %1747 = vmatprep.subr.bf16.mxu0 %v4496_v16  ;;  %1774 = vmatprep.subr.bf16.mxu1 %v4499_v30 }
 0x420   :  { %1748 = vmatpush1.bf16.msra.mxu0 %v4502_v13  ;;  %1775 = vmatpush1.bf16.msra.mxu1 %v4505_v14  ;;  %v5622_v14 = vld [vmem:[#allocation81_spill] sm:$0xff] }
 0x421   :  { %1749 = vmatprep.subr.bf16.mxu0 %v4508_v17  ;;  %1776 = vmatprep.subr.bf16.mxu1 %v4511_v11  ;;  %v5621_v11 = vld [vmem:[#allocation79_spill] sm:$0xff] }
 0x424   :  { %1750 = vmatpush1.bf16.msra.mxu0 %v4514_v18  ;;  %1777 = vmatpush1.bf16.msra.mxu1 %v4517_v21 }
 0x425   :  { %1751 = vmatprep.subr.bf16.mxu0 %v4520_v41  ;;  %1778 = vmatprep.subr.bf16.mxu1 %v4523_v9  ;;  %v4541_v9 = vld [vmem:[#allocation8 + $0x20c] ss:$16 sps:$4 sm:$0xff]  }
 0x426   :  { %5620 = vst [vmem:[#allocation76_spill] sm:$0xff] %v4541_v9 }
 0x428   :  { %1752 = vmatpush1.bf16.msra.mxu0 %v4526_v10  ;;  %1779 = vmatpush1.bf16.msra.mxu1 %v4529_v20 }
 0x429   :  { %1753 = vmatprep.subr.bf16.mxu0 %v4532_v33  ;;  %1805 = vmatprep.subr.bf16.mxu1 %v4535_v1 }
 0x42c   :  { %1754 = vmatpush1.bf16.msra.mxu0 %v4538_v38 }
 0x42d   :  { %1846 = vmatprep.subr.bf16.mxu0 %v4541_v9 }
 0x49e   :  { %v1596_v10 = vpop.f32.mrb[36].mxu1 }
 0x49f   :  { %v1598_v41 = vpop.f32.mrb[37].mxu1 }
 0x4a0   :  { %v1600_v21 = vpop.f32.mrb[38].mxu1 }
 0x4a1   :  { %v1601_v20 = vpop.f32.mrb[39].mxu1 }
 0x4a2   :  { %v1555_v18 = vpop.f32.mrb[36].mxu0 }
 0x4a3   :  { %v1556_v17 = vadd.f32 %v1555_v18, %v5621_v11  ;;  %v1557_v33 = vpop.f32.mrb[37].mxu0  ;;  %v5623_v18 = vld [vmem:[#allocation78_spill] sm:$0xff] }
 0x4a4   :  { %v1558_v13 = vadd.f32 %v1557_v33, %v5622_v14  ;;  %v1559_v30 = vpop.f32.mrb[38].mxu0 }
 0x4a5   :  { %v1597_v1 = vadd.f32 %v1596_v10, %v1556_v17  ;;  %v1560_v16 = vpop.f32.mrb[39].mxu0  ;;  %v5624_v30 = vld [vmem:[#allocation80_spill] sm:$0xff] }
 0x4a6   :  { %v1599_v54 = vadd.f32 %v1598_v41, %v1558_v13 }
 0x4a7   :  { %v2943_v9 = vmul.f32 -1.442695, %v1597_v1 }
 0x4a8   :  { %v2944_v52 = vmul.f32 -1.442695, %v1599_v54 }
 0x4aa   :  { %3322 = vpow2.f32 %v2944_v52 }
 0x4ab   :  { %3324 = vpow2.f32 %v2943_v9 }
 0x4b4   :  { %v3323_v21 = vpop.eup %3322 }
 0x4b5   :  { %v3325_v20 = vpop.eup %3324  ;;  %v1694_v51 = vadd.f32 1.0, %v3323_v21 }
 0x4b6   :  { %v1688_v47 = vadd.f32 1.0, %v3325_v20 }
 0x4b7   :  { %3326 = vrcp.f32 %v1694_v51 }
 0x4b8   :  { %3328 = vrcp.f32 %v1688_v47 }
 0x4c1   :  { %v3327_v52 = vpop.eup %3326 }
 0x4c2   :  { %v1678_v36 = vpop.f32.mrb[40].mxu0  ;;  %v3329_v54 = vpop.eup %3328  ;;  %v1704_v10 = vmul.f32 %v3327_v52, %v4334_v46  ;;  %v4593_v52 = vld [vmem:[#allocation8 + $0x24c] ss:$16 sps:$4 sm:$0xff]  }
 0x4c3   :  { %v1680_v38 = vpop.f32.mrb[41].mxu0 }
 0x4c4   :  { %v1682_v53 = vpop.f32.mrb[42].mxu0 }
 0x4c5   :  { %v1683_v48 = vpop.f32.mrb[43].mxu0 }
 0x4de   :  { %v1637_v11 = vpop.f32.mrb[40].mxu1 }
 0x4df   :  { %v1638_v50 = vadd.f32 %v1637_v11, %v5623_v18  ;;  %v1639_v14 = vpop.f32.mrb[41].mxu1  ;;  %v4558_v11 = vld [vmem:[#allocation8 + $0x8] ss:$16 sps:$4 sm:$0xff]  }
 0x4e0   :  { %v1640_v17 = vadd.f32 %v1639_v14, %v5624_v30  ;;  %v1641_v16 = vpop.f32.mrb[42].mxu1  ;;  %v4561_v14 = vld [vmem:[#allocation8 + $0x2c] ss:$16 sps:$4 sm:$0xff]   ;;  %v4571_v30 = vld [vmem:[#allocation8 + $0x28] ss:$16 sps:$4 sm:$0xff]  }
 0x4e1   :  { %v1679_v13 = vadd.f32 %v1678_v36, %v1638_v50  ;;  %v1642_v41 = vpop.f32.mrb[43].mxu1  ;;  %v4577_v16 = vld [vmem:[#allocation8 + $0x4c] ss:$16 sps:$4 sm:$0xff]  }
 0x4e2   :  { %v1681_v48 = vadd.f32 %v1680_v38, %v1640_v17  ;;  %v4574_v17 = vld [vmem:[#allocation8 + $0x208] ss:$16 sps:$4 sm:$0xff]  }
 0x4e3   :  { %3330 = vtanh.f32 %v1679_v13  ;;  %v4580_v13 = vld [vmem:[#allocation8 + $0x22c] ss:$16 sps:$4 sm:$0xff]   ;;  %v4584_v41 = vld [vmem:[#allocation8 + $0x48] ss:$16 sps:$4 sm:$0xff]  }
 0x4e4   :  { %v2945_v53 = vmul.f32 -1.442695, %v1681_v48  ;;  %v4587_v48 = vld [vmem:[#allocation8 + $0x228] ss:$16 sps:$4 sm:$0xff]  }
 0x4e6   :  { %3332 = vpow2.f32 %v2945_v53  ;;  %v4590_v53 = vld [vmem:[#allocation8 + $0x6c] ss:$16 sps:$4 sm:$0xff]  }
 0x4ed   :  { %v3331_v9 = vpop.eup %3330 }
 0x4ee   :  { %v1705_v33 = vmul.f32 %v3331_v9, %v3329_v54  ;;  %v4596_v54 = vld [vmem:[#allocation8 + $0x68] ss:$16 sps:$4 sm:$0xff]  }
 0x4ef   :  { %v4599_v9 = vld [vmem:[#allocation8 + $0x248] ss:$16 sps:$4 sm:$0xff]  }
 0x4f0   :  { %v3333_v1 = vpop.eup %3332  ;;  %v4549_v21 = vadd.f32 %v1705_v33, %v1704_v10  ;;  %v4602_v10 = vld [vmem:[#allocation8 + $0x8c] ss:$16 sps:$4 sm:$0xff]  }
 0x4f1   :  { %v1701_v20 = vadd.f32 1.0, %v3333_v1  ;;  %v4605_v33 = vld [vmem:[#allocation8 + $0x26c] ss:$16 sps:$4 sm:$0xff]   ;;  %v4608_v1 = vld [vmem:[#allocation8 + $0x88] ss:$16 sps:$4 sm:$0xff]  }
 0x4f2   :  { %3334 = vtanh.f32 %v4549_v21 }
 0x4f3   :  { %3336 = vrcp.f32 %v1701_v20  ;;  %v4611_v20 = vld [vmem:[#allocation8 + $0x268] ss:$16 sps:$4 sm:$0xff]  }
 0x4fc   :  { %v3335_v50 = vpop.eup %3334 }
 0x4fd   :  { %v3337_v51 = vpop.eup %3336 }
 0x4fe   :  { %v1708_v47 = vmul.f32 %v3337_v51, %v3335_v50  ;;  %v4614_v50 = vld [vmem:[#allocation8 + $0xac] ss:$16 sps:$4 sm:$0xff]  }
 0x4ff   :  { %5625 = vst [vmem:[#allocation72_spill] sm:$0xff] %v4614_v50  ;;  %v4617_v51 = vld [vmem:[#allocation8 + $0x28c] ss:$16 sps:$4 sm:$0xff]  }
 0x500   :  { %v4552_v36 = vpack.c.bf16 %v1708_v47, %v1708_v47  ;;  %v1711_v38 = vrot.slane %v1708_v47, 6  ;;  %5626 = vst [vmem:[#allocation75_spill] sm:$0xff] %v4617_v51  ;;  %v4620_v47 = vld [vmem:[#allocation8 + $0xa8] ss:$16 sps:$4 sm:$0xff]  }
 0x501   :  { %5627 = vst [vmem:[#allocation46_spill] sm:$0xff] %v4620_v47 }
 0x502   :  { %2954 = vmatmul.mubr.msk.bf16.vlgmr.msra.gmra.mrb[44].mxu1 %vm3925_vm3, %v4552_v36  ;;  %v1713_v46 = vsel %vm529_vm4, 0.0, %v1711_v38  ;;  %v4623_v38 = vld [vmem:[#allocation8 + $0x288] ss:$16 sps:$4 sm:$0xff]  }
 0x503   :  { %1806 = vmatpush1.bf16.msra.mxu1 %v4558_v11  ;;  %v2947_v18 = vpack.c.bf16 %v1713_v46, %v1713_v46  ;;  %5628 = vst [vmem:[#allocation48_spill] sm:$0xff] %v4623_v38  ;;  %v4626_v46 = vld [vmem:[#allocation8 + $0xcc] ss:$16 sps:$4 sm:$0xff]  }
 0x504   :  { %1807 = vmatprep.subr.bf16.mxu1 %v4561_v14  ;;  %5629 = vst [vmem:[#allocation49_spill] sm:$0xff] %v4626_v46 }
 0x505   :  { %2948 = vmatprep.mubr.msk.bf16.mxu0 %vm3939_vm7, %v2947_v18  ;;  %2957 = vmatprep.mubr.msk.bf16.mxu1 %vm3939_vm7, %v2947_v18  ;;  %v4629_v18 = vld [vmem:[#allocation8 + $0x2ac] ss:$16 sps:$4 sm:$0xff]  }
 0x506   :  { %2951 = vmatmul.mubr.msk.bf16.vlgmr.msra.gmra.mrb[44].mxu0 %vm3944_vm8, %v4552_v36  ;;  %5630 = vst [vmem:[#allocation52_spill] sm:$0xff] %v4629_v18 }
 0x507   :  { %1808 = vmatpush1.bf16.msra.mxu1 %v4571_v30  ;;  %1847 = vmatpush1.bf16.msra.mxu0 %v4574_v17 }
 0x508   :  { %1809 = vmatprep.subr.bf16.mxu1 %v4577_v16  ;;  %1848 = vmatprep.subr.bf16.mxu0 %v4580_v13 }
 0x509   :  { %1878 = vmatprep.mubr.bf16.mxu0 %v5432_v26 }
 0x50b   :  { %1810 = vmatpush1.bf16.msra.mxu1 %v4584_v41  ;;  %1849 = vmatpush1.bf16.msra.mxu0 %v4587_v48 }
 0x50c   :  { %1811 = vmatprep.subr.bf16.mxu1 %v4590_v53  ;;  %1850 = vmatprep.subr.bf16.mxu0 %v4593_v52 }
 0x50f   :  { %1812 = vmatpush1.bf16.msra.mxu1 %v4596_v54  ;;  %1851 = vmatpush1.bf16.msra.mxu0 %v4599_v9 }
 0x510   :  { %1813 = vmatprep.subr.bf16.mxu1 %v4602_v10  ;;  %1852 = vmatprep.subr.bf16.mxu0 %v4605_v33 }
 0x513   :  { %1814 = vmatpush1.bf16.msra.mxu1 %v4608_v1  ;;  %1853 = vmatpush1.bf16.msra.mxu0 %v4611_v20 }
 0x514   :  { %1815 = vmatprep.subr.bf16.mxu1 %v4614_v50  ;;  %1854 = vmatprep.subr.bf16.mxu0 %v4617_v51  ;;  %v4632_v50 = vld [vmem:[#allocation8 + $0xc8] ss:$16 sps:$4 sm:$0xff]  }
 0x515   :  { %5631 = vst [vmem:[#allocation54_spill] sm:$0xff] %v4632_v50  ;;  %v4635_v51 = vld [vmem:[#allocation8 + $0x2a8] ss:$16 sps:$4 sm:$0xff]  }
 0x516   :  { %5632 = vst [vmem:[#allocation55_spill] sm:$0xff] %v4635_v51 }
 0x517   :  { %1816 = vmatpush1.bf16.msra.mxu1 %v4620_v47  ;;  %1855 = vmatpush1.bf16.msra.mxu0 %v4623_v38  ;;  %v4638_v47 = vld [vmem:[#allocation8 + $0xec] ss:$16 sps:$4 sm:$0xff]  }
 0x518   :  { %1817 = vmatprep.subr.bf16.mxu1 %v4626_v46  ;;  %1856 = vmatprep.subr.bf16.mxu0 %v4629_v18  ;;  %5633 = vst [vmem:[#allocation56_spill] sm:$0xff] %v4638_v47  ;;  %v4641_v38 = vld [vmem:[#allocation8 + $0x2cc] ss:$16 sps:$4 sm:$0xff]   ;;  %v4644_v46 = vld [vmem:[#allocation8 + $0xe8] ss:$16 sps:$4 sm:$0xff]  }
 0x519   :  { %5634 = vst [vmem:[#allocation60_spill] sm:$0xff] %v4641_v38  ;;  %5635 = vst [vmem:[#allocation61_spill] sm:$0xff] %v4644_v46  ;;  %v4647_v18 = vld [vmem:[#allocation8 + $0x2c8] ss:$16 sps:$4 sm:$0xff]  }
 0x51b   :  { %1818 = vmatpush1.bf16.msra.mxu1 %v4632_v50  ;;  %1857 = vmatpush1.bf16.msra.mxu0 %v4635_v51  ;;  %v4650_v50 = vld [vmem:[#allocation8 + $0x10c] ss:$16 sps:$4 sm:$0xff]  }
 0x51c   :  { %1819 = vmatprep.subr.bf16.mxu1 %v4638_v47  ;;  %1858 = vmatprep.subr.bf16.mxu0 %v4641_v38  ;;  %5636 = vst [vmem:[#allocation62_spill] sm:$0xff] %v4650_v50  ;;  %v4653_v51 = vld [vmem:[#allocation8 + $0x2ec] ss:$16 sps:$4 sm:$0xff]   ;;  %v4656_v47 = vld [vmem:[#allocation8 + $0x108] ss:$16 sps:$4 sm:$0xff]  }
 0x51d   :  { %5637 = vst [vmem:[#allocation63_spill] sm:$0xff] %v4656_v47  ;;  %v4659_v38 = vld [vmem:[#allocation8 + $0x2e8] ss:$16 sps:$4 sm:$0xff]  }
 0x51e   :  { %5638 = vst [vmem:[#allocation64_spill] sm:$0xff] %v4659_v38 }
 0x51f   :  { %1820 = vmatpush1.bf16.msra.mxu1 %v4644_v46  ;;  %1859 = vmatpush1.bf16.msra.mxu0 %v4647_v18  ;;  %v4662_v46 = vld [vmem:[#allocation8 + $0x12c] ss:$16 sps:$4 sm:$0xff]  }
 0x520   :  { %1821 = vmatprep.subr.bf16.mxu1 %v4650_v50  ;;  %1860 = vmatprep.subr.bf16.mxu0 %v4653_v51  ;;  %v4669_v50 = vld [vmem:[#allocation8 + $0x128] ss:$16 sps:$4 sm:$0xff]  }
 0x523   :  { %1822 = vmatpush1.bf16.msra.mxu1 %v4656_v47  ;;  %1861 = vmatpush1.bf16.msra.mxu0 %v4659_v38  ;;  %v4673_v47 = vld [vmem:[#allocation8 + $0x14c] ss:$16 sps:$4 sm:$0xff]   ;;  %v4677_v38 = vld [vmem:[#allocation8 + $0x148] ss:$16 sps:$4 sm:$0xff]  }
 0x524   :  { %1823 = vmatprep.subr.bf16.mxu1 %v4662_v46  ;;  %1925 = vmatprep.subr.bf16.mxu0 %v5569_v44  ;;  %5639 = vst [vmem:[#allocation65_spill] sm:$0xff] %v4673_v47  ;;  %5640 = vst [vmem:[#allocation32_spill] sm:$0xff] %v4677_v38 }
 0x526   :  { %2963 = vmatmul.mubr.msk.bf16.vlgmr.msra.gmra.mrb[48].mxu0 %vm3925_vm3, %v4552_v36 }
 0x527   :  { %1824 = vmatpush1.bf16.msra.mxu1 %v4669_v50  ;;  %1926 = vmatpush1.bf16.msra.mxu0 %v5571_v22 }
 0x528   :  { %1825 = vmatprep.subr.bf16.mxu1 %v4673_v47  ;;  %1927 = vmatprep.subr.bf16.mxu0 %v4260_v34 }
 0x52b   :  { %1826 = vmatpush1.bf16.msra.mxu1 %v4677_v38  ;;  %1928 = vmatpush1.bf16.msra.mxu0 %v5573_v24 }
 0x52c   :  { %1827 = vmatprep.subr.bf16.mxu1 %v5574_v7  ;;  %1929 = vmatprep.subr.bf16.mxu0 %v5575_v8  ;;  %v5650_v7 = vld [vmem:[#allocation18_spill] sm:$0xff] }
 0x52f   :  { %1828 = vmatpush1.bf16.msra.mxu1 %v5527_v58  ;;  %1930 = vmatpush1.bf16.msra.mxu0 %v4397_v55  ;;  %v5643_v58 = vld [vmem:[#allocation13_spill] sm:$0xff] }
 0x530   :  { %1829 = vmatprep.subr.bf16.mxu1 %v5529_v25  ;;  %1931 = vmatprep.subr.bf16.mxu0 %v4401_v56  ;;  %v5644_v25 = vld [vmem:[#allocation77_spill] sm:$0xff] }
 0x533   :  { %1830 = vmatpush1.bf16.msra.mxu1 %v4075_v35  ;;  %1932 = vmatpush1.bf16.msra.mxu0 %v4405_v23  ;;  %v5645_v35 = vld [vmem:[#allocation15_spill] sm:$0xff] }
 0x534   :  { %1831 = vmatprep.subr.bf16.mxu1 %v4079_v37  ;;  %1933 = vmatprep.subr.bf16.mxu0 %v4409_v57  ;;  %v5646_v37 = vld [vmem:[#allocation14_spill] sm:$0xff] }
 0x537   :  { %1832 = vmatpush1.bf16.msra.mxu1 %v5531_v15  ;;  %1934 = vmatpush1.bf16.msra.mxu0 %v4413_v59  ;;  %v5649_v15 = vld [vmem:[#allocation19_spill] sm:$0xff] }
 0x538   :  { %1833 = vmatprep.subr.bf16.mxu1 %v5533_v12  ;;  %1935 = vmatprep.subr.bf16.mxu0 %v4417_v60  ;;  %v5648_v12 = vld [vmem:[#allocation16_spill] sm:$0xff] }
 0x53b   :  { %1834 = vmatpush1.bf16.msra.mxu1 %v4107_v39  ;;  %1936 = vmatpush1.bf16.msra.mxu0 %v4421_v61  ;;  %v5647_v39 = vld [vmem:[#allocation17_spill] sm:$0xff] }
 0x53c   :  { %1835 = vmatprep.subr.bf16.mxu1 %v4111_v49  ;;  %1937 = vmatprep.subr.bf16.mxu0 %v4425_v62  ;;  %v5641_v49 = vld [vmem:[#allocation12_spill] sm:$0xff] }
 0x53f   :  { %1836 = vmatpush1.bf16.msra.mxu1 %v4119_v29  ;;  %1938 = vmatpush1.bf16.msra.mxu0 %v4429_v2  ;;  %v5642_v29 = vld [vmem:[#allocation74_spill] sm:$0xff] }
 0x540   :  { %1939 = vmatprep.subr.bf16.mxu0 %v4432_v63  ;;  %1966 = vmatprep.subr.bf16.mxu1 %v4435_v3 }
 0x542   :  { %2960 = vmatmul.mubr.msk.bf16.vlgmr.msra.gmra.mrb[48].mxu1 %vm3944_vm8, %v4552_v36  ;;  %v5651_v36 = vld [vmem:[#allocation21_spill] sm:$0xff] }
 0x543   :  { %1940 = vmatpush1.bf16.msra.mxu0 %v4441_v0  ;;  %1967 = vmatpush1.bf16.msra.mxu1 %v4444_v5 }
 0x544   :  { %1941 = vmatprep.subr.bf16.mxu0 %v4447_v6  ;;  %1968 = vmatprep.subr.bf16.mxu1 %v4450_v27 }
 0x545   :  { %1998 = vmatprep.mubr.bf16.mxu1 %v5432_v26 }
 0x547   :  { %1942 = vmatpush1.bf16.msra.mxu0 %v4454_v31  ;;  %1969 = vmatpush1.bf16.msra.mxu1 %v4457_v40 }
 0x548   :  { %1943 = vmatprep.subr.bf16.mxu0 %v4460_v32  ;;  %1970 = vmatprep.subr.bf16.mxu1 %v4463_v42  ;;  %v5666_v32 = vld [vmem:[#allocation85_spill] sm:$0xff] }
 0x54b   :  { %1944 = vmatpush1.bf16.msra.mxu0 %v4466_v43  ;;  %1971 = vmatpush1.bf16.msra.mxu1 %v4469_v45 }
 0x54c   :  { %1945 = vmatprep.subr.bf16.mxu0 %v5641_v49  ;;  %1972 = vmatprep.subr.bf16.mxu1 %v5642_v29  ;;  %v5652_v49 = vld [vmem:[#allocation20_spill] sm:$0xff]  ;;  %v5653_v29 = vld [vmem:[#allocation23_spill] sm:$0xff] }
 0x54f   :  { %1946 = vmatpush1.bf16.msra.mxu0 %v5643_v58  ;;  %1973 = vmatpush1.bf16.msra.mxu1 %v5644_v25  ;;  %v5654_v58 = vld [vmem:[#allocation22_spill] sm:$0xff]  ;;  %v5655_v25 = vld [vmem:[#allocation25_spill] sm:$0xff] }
 0x550   :  { %1947 = vmatprep.subr.bf16.mxu0 %v5645_v35  ;;  %1974 = vmatprep.subr.bf16.mxu1 %v5646_v37  ;;  %v5656_v35 = vld [vmem:[#allocation24_spill] sm:$0xff]  ;;  %v5657_v37 = vld [vmem:[#allocation27_spill] sm:$0xff] }
 0x553   :  { %1948 = vmatpush1.bf16.msra.mxu0 %v5647_v39  ;;  %1975 = vmatpush1.bf16.msra.mxu1 %v5648_v12  ;;  %v5658_v39 = vld [vmem:[#allocation26_spill] sm:$0xff]  ;;  %v5659_v12 = vld [vmem:[#allocation28_spill] sm:$0xff] }
 0x554   :  { %1949 = vmatprep.subr.bf16.mxu0 %v5649_v15  ;;  %1976 = vmatprep.subr.bf16.mxu1 %v5650_v7  ;;  %v5660_v15 = vld [vmem:[#allocation29_spill] sm:$0xff]  ;;  %v5661_v7 = vld [vmem:[#allocation30_spill] sm:$0xff] }
 0x557   :  { %1950 = vmatpush1.bf16.msra.mxu0 %v5651_v36  ;;  %1977 = vmatpush1.bf16.msra.mxu1 %v5652_v49  ;;  %v5662_v36 = vld [vmem:[#allocation31_spill] sm:$0xff]  ;;  %v5663_v49 = vld [vmem:[#allocation73_spill] sm:$0xff] }
 0x558   :  { %1951 = vmatprep.subr.bf16.mxu0 %v5653_v29  ;;  %1978 = vmatprep.subr.bf16.mxu1 %v5654_v58  ;;  %v5664_v29 = vld [vmem:[#allocation76_spill] sm:$0xff] }
 0x55b   :  { %1952 = vmatpush1.bf16.msra.mxu0 %v5655_v25  ;;  %1979 = vmatpush1.bf16.msra.mxu1 %v5656_v35 }
 0x55c   :  { %1953 = vmatprep.subr.bf16.mxu0 %v5657_v37  ;;  %1980 = vmatprep.subr.bf16.mxu1 %v5658_v39  ;;  %v5665_v37 = vld [vmem:[#allocation83_spill] sm:$0xff] }
 0x55f   :  { %1954 = vmatpush1.bf16.msra.mxu0 %v5659_v12  ;;  %1981 = vmatpush1.bf16.msra.mxu1 %v5660_v15 }
 0x560   :  { %1955 = vmatprep.subr.bf16.mxu0 %v5661_v7  ;;  %2007 = vmatprep.subr.bf16.mxu1 %v5662_v36 }
 0x563   :  { %1956 = vmatpush1.bf16.msra.mxu0 %v5663_v49 }
 0x564   :  { %2048 = vmatprep.subr.bf16.mxu0 %v5664_v29 }
 0x5d5   :  { %v1798_v58 = vpop.f32.mrb[44].mxu1 }
 0x5d6   :  { %v1800_v25 = vpop.f32.mrb[45].mxu1 }
 0x5d7   :  { %v1802_v45 = vpop.f32.mrb[46].mxu1 }
 0x5d8   :  { %v1803_v35 = vpop.f32.mrb[47].mxu1 }
 0x5d9   :  { %v1757_v43 = vpop.f32.mrb[44].mxu0 }
 0x5da   :  { %v1758_v42 = vadd.f32 %v1757_v43, %v5665_v37  ;;  %v1759_v39 = vpop.f32.mrb[45].mxu0  ;;  %v5667_v37 = vld [vmem:[#allocation82_spill] sm:$0xff] }
 0x5db   :  { %v1760_v12 = vadd.f32 %v1759_v39, %v5666_v32  ;;  %v1761_v40 = vpop.f32.mrb[46].mxu0 }
 0x5dc   :  { %v1799_v15 = vadd.f32 %v1798_v58, %v1758_v42  ;;  %v1762_v31 = vpop.f32.mrb[47].mxu0  ;;  %v5668_v40 = vld [vmem:[#allocation84_spill] sm:$0xff] }
 0x5dd   :  { %v1801_v7 = vadd.f32 %v1800_v25, %v1760_v12 }
 0x5de   :  { %v2964_v29 = vmul.f32 -1.442695, %v1799_v15 }
 0x5df   :  { %v2965_v5 = vmul.f32 -1.442695, %v1801_v7 }
 0x5e1   :  { %3338 = vpow2.f32 %v2965_v5 }
 0x5e2   :  { %3340 = vpow2.f32 %v2964_v29 }
 0x5eb   :  { %v3339_v45 = vpop.eup %3338 }
 0x5ec   :  { %v3341_v35 = vpop.eup %3340  ;;  %v1896_v0 = vadd.f32 1.0, %v3339_v45 }
 0x5ed   :  { %v1890_v3 = vadd.f32 1.0, %v3341_v35 }
 0x5ee   :  { %3342 = vrcp.f32 %v1896_v0 }
 0x5ef   :  { %3344 = vrcp.f32 %v1890_v3 }
 0x5f8   :  { %v3343_v5 = vpop.eup %3342 }
 0x5f9   :  { %v1880_v27 = vpop.f32.mrb[48].mxu0  ;;  %v3345_v29 = vpop.eup %3344  ;;  %v1906_v12 = vmul.f32 %v3343_v5, %v4549_v21  ;;  %v5678_v5 = vld [vmem:[#allocation60_spill] sm:$0xff] }
 0x5fa   :  { %v1882_v36 = vpop.f32.mrb[49].mxu0 }
 0x5fb   :  { %v1884_v6 = vpop.f32.mrb[50].mxu0 }
 0x5fc   :  { %v1885_v49 = vpop.f32.mrb[51].mxu0 }
 0x615   :  { %v1839_v43 = vpop.f32.mrb[48].mxu1 }
 0x616   :  { %v1840_v63 = vadd.f32 %v1839_v43, %v5667_v37  ;;  %v1841_v32 = vpop.f32.mrb[49].mxu1  ;;  %v5669_v37 = vld [vmem:[#allocation72_spill] sm:$0xff] }
 0x617   :  { %v1842_v42 = vadd.f32 %v1841_v32, %v5668_v40  ;;  %v1843_v31 = vpop.f32.mrb[50].mxu1  ;;  %v5670_v32 = vld [vmem:[#allocation75_spill] sm:$0xff]  ;;  %v5671_v40 = vld [vmem:[#allocation46_spill] sm:$0xff] }
 0x618   :  { %v1881_v58 = vadd.f32 %v1880_v27, %v1840_v63  ;;  %v1844_v25 = vpop.f32.mrb[51].mxu1  ;;  %v5673_v31 = vld [vmem:[#allocation49_spill] sm:$0xff] }
 0x619   :  { %v1883_v6 = vadd.f32 %v1882_v36, %v1842_v42  ;;  %v5672_v42 = vld [vmem:[#allocation48_spill] sm:$0xff]  ;;  %v5675_v25 = vld [vmem:[#allocation54_spill] sm:$0xff] }
 0x61a   :  { %3346 = vtanh.f32 %v1881_v58  ;;  %v5674_v58 = vld [vmem:[#allocation52_spill] sm:$0xff] }
 0x61b   :  { %v2966_v49 = vmul.f32 -1.442695, %v1883_v6  ;;  %v5676_v6 = vld [vmem:[#allocation55_spill] sm:$0xff] }
 0x61d   :  { %3348 = vpow2.f32 %v2966_v49  ;;  %v5677_v49 = vld [vmem:[#allocation56_spill] sm:$0xff] }
 0x624   :  { %v3347_v39 = vpop.eup %3346 }
 0x625   :  { %v1907_v15 = vmul.f32 %v3347_v39, %v3345_v29  ;;  %v5679_v29 = vld [vmem:[#allocation61_spill] sm:$0xff]  ;;  %v5680_v39 = vld [vmem:[#allocation62_spill] sm:$0xff] }
 0x627   :  { %v3349_v7 = vpop.eup %3348  ;;  %v4746_v45 = vadd.f32 %v1907_v15, %v1906_v12  ;;  %v5681_v12 = vld [vmem:[#allocation63_spill] sm:$0xff]  ;;  %v5682_v15 = vld [vmem:[#allocation64_spill] sm:$0xff] }
 0x628   :  { %v1903_v35 = vadd.f32 1.0, %v3349_v7  ;;  %v4806_v7 = vld [vmem:[#allocation8 + $0x16c] ss:$16 sps:$4 sm:$0xff]  }
 0x629   :  { %3350 = vtanh.f32 %v4746_v45  ;;  %5683 = vst [vmem:[#allocation66_spill] sm:$0xff] %v4806_v7 }
 0x62a   :  { %3352 = vrcp.f32 %v1903_v35  ;;  %v4830_v35 = vld [vmem:[#allocation8 + $0x1cc] ss:$16 sps:$4 sm:$0xff]  }
 0x62b   :  { %5689 = vst [vmem:[#allocation79_spill] sm:$0xff] %v4830_v35 }
 0x633   :  { %v3351_v63 = vpop.eup %3350 }
 0x634   :  { %v3353_v0 = vpop.eup %3352 }
 0x635   :  { %v1910_v3 = vmul.f32 %v3353_v0, %v3351_v63  ;;  %v4834_v63 = vld [vmem:[#allocation8 + $0x1c8] ss:$16 sps:$4 sm:$0xff]   ;;  %v4838_v0 = vld [vmem:[#allocation8 + $0x1ec] ss:$16 sps:$4 sm:$0xff]  }
 0x636   :  { %5690 = vst [vmem:[#allocation81_spill] sm:$0xff] %v4834_v63  ;;  %5691 = vst [vmem:[#allocation78_spill] sm:$0xff] %v4838_v0 }
 0x637   :  { %v4749_v27 = vpack.c.bf16 %v1910_v3, %v1910_v3  ;;  %v1913_v36 = vrot.slane %v1910_v3, 6  ;;  %v4842_v3 = vld [vmem:[#allocation8 + $0x1e8] ss:$16 sps:$4 sm:$0xff]  }
 0x638   :  { %5692 = vst [vmem:[#allocation80_spill] sm:$0xff] %v4842_v3 }
 0x639   :  { %2975 = vmatmul.mubr.msk.bf16.vlgmr.msra.gmra.mrb[52].mxu1 %vm3925_vm3, %v4749_v27  ;;  %v1915_v21 = vsel %vm529_vm4, 0.0, %v1913_v36  ;;  %v5693_v36 = vld [vmem:[#allocation45_spill] sm:$0xff] }
 0x63a   :  { %2008 = vmatpush1.bf16.msra.mxu1 %v4558_v11  ;;  %v2968_v43 = vpack.c.bf16 %v1915_v21, %v1915_v21  ;;  %v5694_v21 = vld [vmem:[#allocation47_spill] sm:$0xff] }
 0x63b   :  { %2009 = vmatprep.subr.bf16.mxu1 %v4561_v14 }
 0x63c   :  { %2969 = vmatprep.mubr.msk.bf16.mxu0 %vm3939_vm7, %v2968_v43  ;;  %2978 = vmatprep.mubr.msk.bf16.mxu1 %vm3939_vm7, %v2968_v43  ;;  %v5695_v43 = vld [vmem:[#allocation50_spill] sm:$0xff] }
 0x63d   :  { %2972 = vmatmul.mubr.msk.bf16.vlgmr.msra.gmra.mrb[52].mxu0 %vm3944_vm8, %v4749_v27 }
 0x63e   :  { %2010 = vmatpush1.bf16.msra.mxu1 %v4571_v30  ;;  %2049 = vmatpush1.bf16.msra.mxu0 %v4574_v17 }
 0x63f   :  { %2011 = vmatprep.subr.bf16.mxu1 %v4577_v16  ;;  %2050 = vmatprep.subr.bf16.mxu0 %v4580_v13 }
 0x640   :  { %2080 = vmatprep.mubr.bf16.mxu0 %v5432_v26 }
 0x642   :  { %2012 = vmatpush1.bf16.msra.mxu1 %v4584_v41  ;;  %2051 = vmatpush1.bf16.msra.mxu0 %v4587_v48 }
 0x643   :  { %2013 = vmatprep.subr.bf16.mxu1 %v4590_v53  ;;  %2052 = vmatprep.subr.bf16.mxu0 %v4593_v52 }
 0x646   :  { %2014 = vmatpush1.bf16.msra.mxu1 %v4596_v54  ;;  %2053 = vmatpush1.bf16.msra.mxu0 %v4599_v9 }
 0x647   :  { %2015 = vmatprep.subr.bf16.mxu1 %v4602_v10  ;;  %2054 = vmatprep.subr.bf16.mxu0 %v4605_v33 }
 0x64a   :  { %2016 = vmatpush1.bf16.msra.mxu1 %v4608_v1  ;;  %2055 = vmatpush1.bf16.msra.mxu0 %v4611_v20 }
 0x64b   :  { %2017 = vmatprep.subr.bf16.mxu1 %v5669_v37  ;;  %2056 = vmatprep.subr.bf16.mxu0 %v5670_v32 }
 0x64e   :  { %2018 = vmatpush1.bf16.msra.mxu1 %v5671_v40  ;;  %2057 = vmatpush1.bf16.msra.mxu0 %v5672_v42 }
 0x64f   :  { %2019 = vmatprep.subr.bf16.mxu1 %v5673_v31  ;;  %2058 = vmatprep.subr.bf16.mxu0 %v5674_v58 }
 0x652   :  { %2020 = vmatpush1.bf16.msra.mxu1 %v5675_v25  ;;  %2059 = vmatpush1.bf16.msra.mxu0 %v5676_v6 }
 0x653   :  { %2021 = vmatprep.subr.bf16.mxu1 %v5677_v49  ;;  %2060 = vmatprep.subr.bf16.mxu0 %v5678_v5 }
 0x656   :  { %2022 = vmatpush1.bf16.msra.mxu1 %v5679_v29  ;;  %2061 = vmatpush1.bf16.msra.mxu0 %v4647_v18 }
 0x657   :  { %2023 = vmatprep.subr.bf16.mxu1 %v5680_v39  ;;  %2062 = vmatprep.subr.bf16.mxu0 %v4653_v51 }
 0x65a   :  { %2024 = vmatpush1.bf16.msra.mxu1 %v5681_v12  ;;  %2063 = vmatpush1.bf16.msra.mxu0 %v5682_v15 }
 0x65b   :  { %2025 = vmatprep.subr.bf16.mxu1 %v4662_v46  ;;  %2127 = vmatprep.subr.bf16.mxu0 %v5569_v44  ;;  %v4810_v44 = vld [vmem:[#allocation8 + $0x168] ss:$16 sps:$4 sm:$0xff]  }
 0x65c   :  { %5684 = vst [vmem:[#allocation33_spill] sm:$0xff] %v4810_v44 }
 0x65d   :  { %2984 = vmatmul.mubr.msk.bf16.vlgmr.msra.gmra.mrb[56].mxu0 %vm3925_vm3, %v4749_v27 }
 0x65e   :  { %2026 = vmatpush1.bf16.msra.mxu1 %v4669_v50  ;;  %2128 = vmatpush1.bf16.msra.mxu0 %v5571_v22  ;;  %v4814_v22 = vld [vmem:[#allocation8 + $0x18c] ss:$16 sps:$4 sm:$0xff]  }
 0x65f   :  { %2027 = vmatprep.subr.bf16.mxu1 %v4673_v47  ;;  %2129 = vmatprep.subr.bf16.mxu0 %v4260_v34  ;;  %5685 = vst [vmem:[#allocation67_spill] sm:$0xff] %v4814_v22  ;;  %v4818_v34 = vld [vmem:[#allocation8 + $0x188] ss:$16 sps:$4 sm:$0xff]  }
 0x660   :  { %5686 = vst [vmem:[#allocation34_spill] sm:$0xff] %v4818_v34 }
 0x662   :  { %2028 = vmatpush1.bf16.msra.mxu1 %v4677_v38  ;;  %2130 = vmatpush1.bf16.msra.mxu0 %v5573_v24  ;;  %v4822_v24 = vld [vmem:[#allocation8 + $0x1ac] ss:$16 sps:$4 sm:$0xff]  }
 0x663   :  { %2029 = vmatprep.subr.bf16.mxu1 %v4806_v7  ;;  %2131 = vmatprep.subr.bf16.mxu0 %v5575_v8  ;;  %5687 = vst [vmem:[#allocation69_spill] sm:$0xff] %v4822_v24  ;;  %v4826_v8 = vld [vmem:[#allocation8 + $0x1a8] ss:$16 sps:$4 sm:$0xff]  }
 0x664   :  { %5688 = vst [vmem:[#allocation35_spill] sm:$0xff] %v4826_v8 }
 0x666   :  { %2030 = vmatpush1.bf16.msra.mxu1 %v4810_v44  ;;  %2132 = vmatpush1.bf16.msra.mxu0 %v4397_v55 }
 0x667   :  { %2031 = vmatprep.subr.bf16.mxu1 %v4814_v22  ;;  %2133 = vmatprep.subr.bf16.mxu0 %v4401_v56 }
 0x66a   :  { %2032 = vmatpush1.bf16.msra.mxu1 %v4818_v34  ;;  %2134 = vmatpush1.bf16.msra.mxu0 %v4405_v23 }
 0x66b   :  { %2033 = vmatprep.subr.bf16.mxu1 %v4822_v24  ;;  %2135 = vmatprep.subr.bf16.mxu0 %v4409_v57  ;;  %v5730_v57 = vld [vmem:[#allocation89_spill] sm:$0xff] }
 0x66e   :  { %2034 = vmatpush1.bf16.msra.mxu1 %v4826_v8  ;;  %2136 = vmatpush1.bf16.msra.mxu0 %v4413_v59 }
 0x66f   :  { %2035 = vmatprep.subr.bf16.mxu1 %v4830_v35  ;;  %2137 = vmatprep.subr.bf16.mxu0 %v4417_v60  ;;  %v5709_v60 = vld [vmem:[#allocation15_spill] sm:$0xff] }
 0x672   :  { %2036 = vmatpush1.bf16.msra.mxu1 %v4834_v63  ;;  %2138 = vmatpush1.bf16.msra.mxu0 %v4421_v61  ;;  %v5696_v61 = vld [vmem:[#allocation51_spill] sm:$0xff] }
 0x673   :  { %2037 = vmatprep.subr.bf16.mxu1 %v4838_v0  ;;  %2139 = vmatprep.subr.bf16.mxu0 %v4425_v62  ;;  %v5697_v0 = vld [vmem:[#allocation53_spill] sm:$0xff]  ;;  %v5703_v63 = vld [vmem:[#allocation11_spill] sm:$0xff] }
 0x674   :  { %v5698_v62 = vld [vmem:[#allocation57_spill] sm:$0xff] }
 0x676   :  { %2038 = vmatpush1.bf16.msra.mxu1 %v4842_v3  ;;  %2140 = vmatpush1.bf16.msra.mxu0 %v4429_v2  ;;  %v5699_v3 = vld [vmem:[#allocation58_spill] sm:$0xff]  ;;  %v5700_v2 = vld [vmem:[#allocation59_spill] sm:$0xff] }
 0x677   :  { %2141 = vmatprep.subr.bf16.mxu0 %v5693_v36  ;;  %2168 = vmatprep.subr.bf16.mxu1 %v5694_v21  ;;  %v5701_v36 = vld [vmem:[#allocation68_spill] sm:$0xff]  ;;  %v5702_v21 = vld [vmem:[#allocation70_spill] sm:$0xff] }
 0x679   :  { %2981 = vmatmul.mubr.msk.bf16.vlgmr.msra.gmra.mrb[56].mxu1 %vm3944_vm8, %v4749_v27  ;;  %v5704_v27 = vld [vmem:[#allocation71_spill] sm:$0xff] }
 0x67a   :  { %2142 = vmatpush1.bf16.msra.mxu0 %v5695_v43  ;;  %2169 = vmatpush1.bf16.msra.mxu1 %v5696_v61  ;;  %v5705_v43 = vld [vmem:[#allocation12_spill] sm:$0xff]  ;;  %v5706_v61 = vld [vmem:[#allocation74_spill] sm:$0xff] }
 0x67b   :  { %2143 = vmatprep.subr.bf16.mxu0 %v5697_v0  ;;  %2170 = vmatprep.subr.bf16.mxu1 %v5698_v62  ;;  %v5707_v0 = vld [vmem:[#allocation13_spill] sm:$0xff] }
 0x67c   :  { %2200 = vmatprep.mubr.bf16.mxu1 %v5432_v26  ;;  %v5708_v62 = vld [vmem:[#allocation77_spill] sm:$0xff] }
 0x67e   :  { %2144 = vmatpush1.bf16.msra.mxu0 %v5699_v3  ;;  %2171 = vmatpush1.bf16.msra.mxu1 %v5700_v2  ;;  %v5710_v3 = vld [vmem:[#allocation14_spill] sm:$0xff]  ;;  %v5711_v2 = vld [vmem:[#allocation17_spill] sm:$0xff] }
 0x67f   :  { %2145 = vmatprep.subr.bf16.mxu0 %v5701_v36  ;;  %2172 = vmatprep.subr.bf16.mxu1 %v5702_v21  ;;  %v5712_v36 = vld [vmem:[#allocation16_spill] sm:$0xff]  ;;  %v5713_v21 = vld [vmem:[#allocation19_spill] sm:$0xff] }
 0x682   :  { %2146 = vmatpush1.bf16.msra.mxu0 %v5703_v63  ;;  %2173 = vmatpush1.bf16.msra.mxu1 %v5704_v27  ;;  %v5714_v63 = vld [vmem:[#allocation18_spill] sm:$0xff]  ;;  %v5715_v27 = vld [vmem:[#allocation21_spill] sm:$0xff] }
 0x683   :  { %2147 = vmatprep.subr.bf16.mxu0 %v5705_v43  ;;  %2174 = vmatprep.subr.bf16.mxu1 %v5706_v61  ;;  %v5716_v43 = vld [vmem:[#allocation20_spill] sm:$0xff]  ;;  %v5717_v61 = vld [vmem:[#allocation23_spill] sm:$0xff] }
 0x686   :  { %2148 = vmatpush1.bf16.msra.mxu0 %v5707_v0  ;;  %2175 = vmatpush1.bf16.msra.mxu1 %v5708_v62  ;;  %v5718_v0 = vld [vmem:[#allocation22_spill] sm:$0xff]  ;;  %v5719_v62 = vld [vmem:[#allocation25_spill] sm:$0xff] }
 0x687   :  { %2149 = vmatprep.subr.bf16.mxu0 %v5709_v60  ;;  %2176 = vmatprep.subr.bf16.mxu1 %v5710_v3  ;;  %v5720_v60 = vld [vmem:[#allocation24_spill] sm:$0xff]  ;;  %v5721_v3 = vld [vmem:[#allocation27_spill] sm:$0xff] }
 0x68a   :  { %2150 = vmatpush1.bf16.msra.mxu0 %v5711_v2  ;;  %2177 = vmatpush1.bf16.msra.mxu1 %v5712_v36  ;;  %v5722_v2 = vld [vmem:[#allocation26_spill] sm:$0xff]  ;;  %v5723_v36 = vld [vmem:[#allocation28_spill] sm:$0xff] }
 0x68b   :  { %2151 = vmatprep.subr.bf16.mxu0 %v5713_v21  ;;  %2178 = vmatprep.subr.bf16.mxu1 %v5714_v63  ;;  %v5724_v21 = vld [vmem:[#allocation29_spill] sm:$0xff]  ;;  %v5725_v63 = vld [vmem:[#allocation30_spill] sm:$0xff] }
 0x68e   :  { %2152 = vmatpush1.bf16.msra.mxu0 %v5715_v27  ;;  %2179 = vmatpush1.bf16.msra.mxu1 %v5716_v43  ;;  %v5726_v27 = vld [vmem:[#allocation31_spill] sm:$0xff]  ;;  %v5727_v43 = vld [vmem:[#allocation73_spill] sm:$0xff] }
 0x68f   :  { %2153 = vmatprep.subr.bf16.mxu0 %v5717_v61  ;;  %2180 = vmatprep.subr.bf16.mxu1 %v5718_v0  ;;  %v5728_v61 = vld [vmem:[#allocation76_spill] sm:$0xff] }
 0x692   :  { %2154 = vmatpush1.bf16.msra.mxu0 %v5719_v62  ;;  %2181 = vmatpush1.bf16.msra.mxu1 %v5720_v60 }
 0x693   :  { %2155 = vmatprep.subr.bf16.mxu0 %v5721_v3  ;;  %2182 = vmatprep.subr.bf16.mxu1 %v5722_v2  ;;  %v5729_v3 = vld [vmem:[#allocation87_spill] sm:$0xff] }
 0x696   :  { %2156 = vmatpush1.bf16.msra.mxu0 %v5723_v36  ;;  %2183 = vmatpush1.bf16.msra.mxu1 %v5724_v21 }
 0x697   :  { %2157 = vmatprep.subr.bf16.mxu0 %v5725_v63  ;;  %2209 = vmatprep.subr.bf16.mxu1 %v5726_v27 }
 0x69a   :  { %2158 = vmatpush1.bf16.msra.mxu0 %v5727_v43 }
 0x69b   :  { %2250 = vmatprep.subr.bf16.mxu0 %v5728_v61 }
 0x70c   :  { %v2000_v0 = vpop.f32.mrb[52].mxu1 }
 0x70d   :  { %v2002_v62 = vpop.f32.mrb[53].mxu1 }
 0x70e   :  { %v2004_v35 = vpop.f32.mrb[54].mxu1 }
 0x70f   :  { %v2005_v60 = vpop.f32.mrb[55].mxu1 }
 0x710   :  { %v1959_v59 = vpop.f32.mrb[52].mxu0 }
 0x711   :  { %v1960_v8 = vadd.f32 %v1959_v59, %v5729_v3  ;;  %v1961_v2 = vpop.f32.mrb[53].mxu0  ;;  %v5731_v3 = vld [vmem:[#allocation86_spill] sm:$0xff] }
 0x712   :  { %v1962_v36 = vadd.f32 %v1961_v2, %v5730_v57  ;;  %v1963_v24 = vpop.f32.mrb[54].mxu0  ;;  %v5732_v2 = vld [vmem:[#allocation88_spill] sm:$0xff] }
 0x713   :  { %v2001_v21 = vadd.f32 %v2000_v0, %v1960_v8  ;;  %v1964_v23 = vpop.f32.mrb[55].mxu0 }
 0x714   :  { %v2003_v63 = vadd.f32 %v2002_v62, %v1962_v36 }
 0x715   :  { %v2985_v61 = vmul.f32 -1.442695, %v2001_v21 }
 0x716   :  { %v2986_v22 = vmul.f32 -1.442695, %v2003_v63 }
 0x718   :  { %3354 = vpow2.f32 %v2986_v22 }
 0x719   :  { %3356 = vpow2.f32 %v2985_v61 }
 0x722   :  { %v3355_v35 = vpop.eup %3354 }
 0x723   :  { %v3357_v60 = vpop.eup %3356  ;;  %v2098_v55 = vadd.f32 1.0, %v3355_v35 }
 0x724   :  { %v2092_v44 = vadd.f32 1.0, %v3357_v60 }
 0x725   :  { %3358 = vrcp.f32 %v2098_v55 }
 0x726   :  { %3360 = vrcp.f32 %v2092_v44 }
 0x72f   :  { %v3359_v61 = vpop.eup %3358 }
 0x730   :  { %v2082_v34 = vpop.f32.mrb[56].mxu0  ;;  %v3361_v22 = vpop.eup %3360  ;;  %v2108_v36 = vmul.f32 %v3359_v61, %v4746_v45  ;;  %v5740_v61 = vld [vmem:[#allocation37_spill] sm:$0xff] }
 0x731   :  { %v2084_v27 = vpop.f32.mrb[57].mxu0 }
 0x732   :  { %v2086_v56 = vpop.f32.mrb[58].mxu0 }
 0x733   :  { %v2087_v43 = vpop.f32.mrb[59].mxu0 }
 0x74c   :  { %v2041_v59 = vpop.f32.mrb[56].mxu1 }
 0x74d   :  { %v2042_v7 = vadd.f32 %v2041_v59, %v5731_v3  ;;  %v2043_v57 = vpop.f32.mrb[57].mxu1  ;;  %v4941_v3 = vld [vmem:[#allocation8 + $0x4] ss:$16 sps:$4 sm:$0xff]  }
 0x74e   :  { %v2044_v24 = vadd.f32 %v2043_v57, %v5732_v2  ;;  %v2045_v23 = vpop.f32.mrb[58].mxu1  ;;  %v4948_v57 = vld [vmem:[#allocation8] ss:$16 sps:$4 sm:$0xff]   ;;  %v4952_v2 = vld [vmem:[#allocation8 + $0x24] ss:$16 sps:$4 sm:$0xff]  }
 0x74f   :  { %v2083_v62 = vadd.f32 %v2082_v34, %v2042_v7  ;;  %v2046_v8 = vpop.f32.mrb[59].mxu1  ;;  %5733 = vst [vmem:[#allocation83_spill] sm:$0xff] %v4952_v2  ;;  %v5735_v23 = vld [vmem:[#allocation66_spill] sm:$0xff] }
 0x750   :  { %v2085_v56 = vadd.f32 %v2084_v27, %v2044_v24  ;;  %v4956_v24 = vld [vmem:[#allocation8 + $0x20] ss:$16 sps:$4 sm:$0xff]  }
 0x751   :  { %3362 = vtanh.f32 %v2083_v62  ;;  %5734 = vst [vmem:[#allocation85_spill] sm:$0xff] %v4956_v24  ;;  %v4960_v62 = vld [vmem:[#allocation8 + $0x44] ss:$16 sps:$4 sm:$0xff]  }
 0x752   :  { %v2987_v63 = vmul.f32 -1.442695, %v2085_v56  ;;  %5736 = vst [vmem:[#allocation82_spill] sm:$0xff] %v4960_v62  ;;  %v5737_v8 = vld [vmem:[#allocation33_spill] sm:$0xff]  ;;  %v5738_v56 = vld [vmem:[#allocation36_spill] sm:$0xff] }
 0x754   :  { %3364 = vpow2.f32 %v2987_v63  ;;  %v5739_v63 = vld [vmem:[#allocation67_spill] sm:$0xff] }
 0x75b   :  { %v3363_v0 = vpop.eup %3362 }
 0x75c   :  { %v2109_v21 = vmul.f32 %v3363_v0, %v3361_v22  ;;  %v5741_v22 = vld [vmem:[#allocation34_spill] sm:$0xff] }
 0x75d   :  { %v5742_v0 = vld [vmem:[#allocation38_spill] sm:$0xff] }
 0x75e   :  { %v3365_v43 = vpop.eup %3364  ;;  %v4891_v35 = vadd.f32 %v2109_v21, %v2108_v36  ;;  %v5743_v36 = vld [vmem:[#allocation69_spill] sm:$0xff]  ;;  %v5744_v21 = vld [vmem:[#allocation39_spill] sm:$0xff] }
 0x75f   :  { %v2105_v60 = vadd.f32 1.0, %v3365_v43  ;;  %v5745_v43 = vld [vmem:[#allocation35_spill] sm:$0xff] }
 0x760   :  { %3366 = vtanh.f32 %v4891_v35 }
 0x761   :  { %3368 = vrcp.f32 %v2105_v60  ;;  %v5746_v60 = vld [vmem:[#allocation40_spill] sm:$0xff] }
 0x76a   :  { %v3367_v55 = vpop.eup %3366 }
 0x76b   :  { %v3369_v7 = vpop.eup %3368 }
 0x76c   :  { %v2112_v44 = vmul.f32 %v3369_v7, %v3367_v55  ;;  %v5747_v55 = vld [vmem:[#allocation79_spill] sm:$0xff]  ;;  %v5748_v7 = vld [vmem:[#allocation41_spill] sm:$0xff] }
 0x76e   :  { %v4894_v34 = vpack.c.bf16 %v2112_v44, %v2112_v44  ;;  %v2115_v27 = vrot.slane %v2112_v44, 6  ;;  %v5749_v44 = vld [vmem:[#allocation81_spill] sm:$0xff] }
 0x770   :  { %2996 = vmatmul.mubr.msk.bf16.vlgmr.msra.gmra.mrb[60].mxu1 %vm3925_vm3, %v4894_v34  ;;  %v2117_v45 = vsel %vm529_vm4, 0.0, %v2115_v27  ;;  %v5750_v27 = vld [vmem:[#allocation42_spill] sm:$0xff] }
 0x771   :  { %2210 = vmatpush1.bf16.msra.mxu1 %v4558_v11  ;;  %v2989_v59 = vpack.c.bf16 %v2117_v45, %v2117_v45  ;;  %v5751_v45 = vld [vmem:[#allocation78_spill] sm:$0xff] }
 0x772   :  { %2211 = vmatprep.subr.bf16.mxu1 %v4561_v14 }
 0x773   :  { %2990 = vmatprep.mubr.msk.bf16.mxu0 %vm3939_vm7, %v2989_v59  ;;  %2999 = vmatprep.mubr.msk.bf16.mxu1 %vm3939_vm7, %v2989_v59  ;;  %v5752_v59 = vld [vmem:[#allocation43_spill] sm:$0xff] }
 0x774   :  { %2993 = vmatmul.mubr.msk.bf16.vlgmr.msra.gmra.mrb[60].mxu0 %vm3944_vm8, %v4894_v34 }
 0x775   :  { %2212 = vmatpush1.bf16.msra.mxu1 %v4571_v30  ;;  %2251 = vmatpush1.bf16.msra.mxu0 %v4574_v17 }
 0x776   :  { %2213 = vmatprep.subr.bf16.mxu1 %v4577_v16  ;;  %2252 = vmatprep.subr.bf16.mxu0 %v4580_v13 }
 0x777   :  { %2282 = vmatprep.mubr.bf16.mxu0 %v5432_v26 }
 0x779   :  { %2214 = vmatpush1.bf16.msra.mxu1 %v4584_v41  ;;  %2253 = vmatpush1.bf16.msra.mxu0 %v4587_v48 }
 0x77a   :  { %2215 = vmatprep.subr.bf16.mxu1 %v4590_v53  ;;  %2254 = vmatprep.subr.bf16.mxu0 %v4593_v52 }
 0x77d   :  { %2216 = vmatpush1.bf16.msra.mxu1 %v4596_v54  ;;  %2255 = vmatpush1.bf16.msra.mxu0 %v4599_v9 }
 0x77e   :  { %2217 = vmatprep.subr.bf16.mxu1 %v4602_v10  ;;  %2256 = vmatprep.subr.bf16.mxu0 %v4605_v33 }
 0x781   :  { %2218 = vmatpush1.bf16.msra.mxu1 %v4608_v1  ;;  %2257 = vmatpush1.bf16.msra.mxu0 %v4611_v20 }
 0x782   :  { %2219 = vmatprep.subr.bf16.mxu1 %v5669_v37  ;;  %2258 = vmatprep.subr.bf16.mxu0 %v5670_v32 }
 0x785   :  { %2220 = vmatpush1.bf16.msra.mxu1 %v5671_v40  ;;  %2259 = vmatpush1.bf16.msra.mxu0 %v5672_v42 }
 0x786   :  { %2221 = vmatprep.subr.bf16.mxu1 %v5673_v31  ;;  %2260 = vmatprep.subr.bf16.mxu0 %v5674_v58 }
 0x789   :  { %2222 = vmatpush1.bf16.msra.mxu1 %v5675_v25  ;;  %2261 = vmatpush1.bf16.msra.mxu0 %v5676_v6 }
 0x78a   :  { %2223 = vmatprep.subr.bf16.mxu1 %v5677_v49  ;;  %2262 = vmatprep.subr.bf16.mxu0 %v5678_v5 }
 0x78d   :  { %2224 = vmatpush1.bf16.msra.mxu1 %v5679_v29  ;;  %2263 = vmatpush1.bf16.msra.mxu0 %v4647_v18 }
 0x78e   :  { %2225 = vmatprep.subr.bf16.mxu1 %v5680_v39  ;;  %2264 = vmatprep.subr.bf16.mxu0 %v4653_v51 }
 0x791   :  { %2226 = vmatpush1.bf16.msra.mxu1 %v5681_v12  ;;  %2265 = vmatpush1.bf16.msra.mxu0 %v5682_v15 }
 0x792   :  { %2227 = vmatprep.subr.bf16.mxu1 %v4662_v46  ;;  %2329 = vmatprep.subr.bf16.mxu0 %v4941_v3 }
 0x794   :  { %3005 = vmatmul.mubr.msk.bf16.vlgmr.msra.gmra.mrb[64].mxu0 %vm3925_vm3, %v4894_v34 }
 0x795   :  { %2228 = vmatpush1.bf16.msra.mxu1 %v4669_v50  ;;  %2330 = vmatpush1.bf16.msra.mxu0 %v4948_v57 }
 0x796   :  { %2229 = vmatprep.subr.bf16.mxu1 %v4673_v47  ;;  %2331 = vmatprep.subr.bf16.mxu0 %v4952_v2 }
 0x799   :  { %2230 = vmatpush1.bf16.msra.mxu1 %v4677_v38  ;;  %2332 = vmatpush1.bf16.msra.mxu0 %v4956_v24 }
 0x79a   :  { %2231 = vmatprep.subr.bf16.mxu1 %v5735_v23  ;;  %2333 = vmatprep.subr.bf16.mxu0 %v4960_v62 }
 0x79d   :  { %2232 = vmatpush1.bf16.msra.mxu1 %v5737_v8  ;;  %2334 = vmatpush1.bf16.msra.mxu0 %v5738_v56  ;;  %v5753_v56 = vld [vmem:[#allocation80_spill] sm:$0xff] }
 0x79e   :  { %2233 = vmatprep.subr.bf16.mxu1 %v5739_v63  ;;  %2335 = vmatprep.subr.bf16.mxu0 %v5740_v61  ;;  %v5754_v61 = vld [vmem:[#allocation44_spill] sm:$0xff] }
 0x7a1   :  { %2234 = vmatpush1.bf16.msra.mxu1 %v5741_v22  ;;  %2336 = vmatpush1.bf16.msra.mxu0 %v5742_v0  ;;  %v5755_v0 = vld [vmem:[#allocation45_spill] sm:$0xff]  ;;  %v5792_v22 = vld [vmem:[#allocation95_spill] sm:$0xff] }
 0x7a2   :  { %2235 = vmatprep.subr.bf16.mxu1 %v5743_v36  ;;  %2337 = vmatprep.subr.bf16.mxu0 %v5744_v21  ;;  %v5756_v21 = vld [vmem:[#allocation47_spill] sm:$0xff] }
 0x7a5   :  { %2236 = vmatpush1.bf16.msra.mxu1 %v5745_v43  ;;  %2338 = vmatpush1.bf16.msra.mxu0 %v5746_v60  ;;  %v5757_v60 = vld [vmem:[#allocation50_spill] sm:$0xff] }
 0x7a6   :  { %2237 = vmatprep.subr.bf16.mxu1 %v5747_v55  ;;  %2339 = vmatprep.subr.bf16.mxu0 %v5748_v7  ;;  %v5758_v7 = vld [vmem:[#allocation51_spill] sm:$0xff] }
 0x7a9   :  { %2238 = vmatpush1.bf16.msra.mxu1 %v5749_v44  ;;  %2340 = vmatpush1.bf16.msra.mxu0 %v5750_v27  ;;  %v5759_v27 = vld [vmem:[#allocation53_spill] sm:$0xff]  ;;  %v5771_v44 = vld [vmem:[#allocation15_spill] sm:$0xff] }
 0x7aa   :  { %2239 = vmatprep.subr.bf16.mxu1 %v5751_v45  ;;  %2341 = vmatprep.subr.bf16.mxu0 %v5752_v59  ;;  %v5760_v45 = vld [vmem:[#allocation57_spill] sm:$0xff]  ;;  %v5761_v59 = vld [vmem:[#allocation58_spill] sm:$0xff] }
 0x7ad   :  { %2240 = vmatpush1.bf16.msra.mxu1 %v5753_v56  ;;  %2342 = vmatpush1.bf16.msra.mxu0 %v5754_v61  ;;  %v5762_v61 = vld [vmem:[#allocation59_spill] sm:$0xff] }
 0x7ae   :  { %2343 = vmatprep.subr.bf16.mxu0 %v5755_v0  ;;  %2370 = vmatprep.subr.bf16.mxu1 %v5756_v21  ;;  %v5763_v0 = vld [vmem:[#allocation68_spill] sm:$0xff]  ;;  %v5764_v21 = vld [vmem:[#allocation70_spill] sm:$0xff]  ;;  %v5765_v56 = vld [vmem:[#allocation11_spill] sm:$0xff] }
 0x7b0   :  { %3002 = vmatmul.mubr.msk.bf16.vlgmr.msra.gmra.mrb[64].mxu1 %vm3944_vm8, %v4894_v34  ;;  %v5766_v34 = vld [vmem:[#allocation71_spill] sm:$0xff] }
 0x7b1   :  { %2344 = vmatpush1.bf16.msra.mxu0 %v5757_v60  ;;  %2371 = vmatpush1.bf16.msra.mxu1 %v5758_v7  ;;  %v5767_v60 = vld [vmem:[#allocation12_spill] sm:$0xff]  ;;  %v5768_v7 = vld [vmem:[#allocation74_spill] sm:$0xff] }
 0x7b2   :  { %2345 = vmatprep.subr.bf16.mxu0 %v5759_v27  ;;  %2372 = vmatprep.subr.bf16.mxu1 %v5760_v45  ;;  %v5769_v27 = vld [vmem:[#allocation13_spill] sm:$0xff] }
 0x7b3   :  { %2402 = vmatprep.mubr.bf16.mxu1 %v5432_v26  ;;  %v5770_v45 = vld [vmem:[#allocation77_spill] sm:$0xff] }
 0x7b5   :  { %2346 = vmatpush1.bf16.msra.mxu0 %v5761_v59  ;;  %2373 = vmatpush1.bf16.msra.mxu1 %v5762_v61  ;;  %v5772_v59 = vld [vmem:[#allocation14_spill] sm:$0xff]  ;;  %v5773_v61 = vld [vmem:[#allocation17_spill] sm:$0xff] }
 0x7b6   :  { %2347 = vmatprep.subr.bf16.mxu0 %v5763_v0  ;;  %2374 = vmatprep.subr.bf16.mxu1 %v5764_v21  ;;  %v5774_v0 = vld [vmem:[#allocation16_spill] sm:$0xff]  ;;  %v5775_v21 = vld [vmem:[#allocation19_spill] sm:$0xff] }
 0x7b9   :  { %2348 = vmatpush1.bf16.msra.mxu0 %v5765_v56  ;;  %2375 = vmatpush1.bf16.msra.mxu1 %v5766_v34  ;;  %v5776_v56 = vld [vmem:[#allocation18_spill] sm:$0xff]  ;;  %v5777_v34 = vld [vmem:[#allocation21_spill] sm:$0xff] }
 0x7ba   :  { %2349 = vmatprep.subr.bf16.mxu0 %v5767_v60  ;;  %2376 = vmatprep.subr.bf16.mxu1 %v5768_v7  ;;  %v5778_v60 = vld [vmem:[#allocation20_spill] sm:$0xff]  ;;  %v5779_v7 = vld [vmem:[#allocation23_spill] sm:$0xff] }
 0x7bd   :  { %2350 = vmatpush1.bf16.msra.mxu0 %v5769_v27  ;;  %2377 = vmatpush1.bf16.msra.mxu1 %v5770_v45  ;;  %v5780_v27 = vld [vmem:[#allocation22_spill] sm:$0xff]  ;;  %v5781_v45 = vld [vmem:[#allocation25_spill] sm:$0xff] }
 0x7be   :  { %2351 = vmatprep.subr.bf16.mxu0 %v5771_v44  ;;  %2378 = vmatprep.subr.bf16.mxu1 %v5772_v59  ;;  %v5782_v44 = vld [vmem:[#allocation24_spill] sm:$0xff]  ;;  %v5783_v59 = vld [vmem:[#allocation27_spill] sm:$0xff] }
 0x7c1   :  { %2352 = vmatpush1.bf16.msra.mxu0 %v5773_v61  ;;  %2379 = vmatpush1.bf16.msra.mxu1 %v5774_v0  ;;  %v5784_v61 = vld [vmem:[#allocation26_spill] sm:$0xff]  ;;  %v5785_v0 = vld [vmem:[#allocation28_spill] sm:$0xff] }
 0x7c2   :  { %2353 = vmatprep.subr.bf16.mxu0 %v5775_v21  ;;  %2380 = vmatprep.subr.bf16.mxu1 %v5776_v56  ;;  %v5786_v21 = vld [vmem:[#allocation29_spill] sm:$0xff]  ;;  %v5787_v56 = vld [vmem:[#allocation30_spill] sm:$0xff] }
 0x7c5   :  { %2354 = vmatpush1.bf16.msra.mxu0 %v5777_v34  ;;  %2381 = vmatpush1.bf16.msra.mxu1 %v5778_v60  ;;  %v5788_v34 = vld [vmem:[#allocation31_spill] sm:$0xff]  ;;  %v5789_v60 = vld [vmem:[#allocation73_spill] sm:$0xff] }
 0x7c6   :  { %2355 = vmatprep.subr.bf16.mxu0 %v5779_v7  ;;  %2382 = vmatprep.subr.bf16.mxu1 %v5780_v27  ;;  %v5790_v7 = vld [vmem:[#allocation76_spill] sm:$0xff] }
 0x7c9   :  { %2356 = vmatpush1.bf16.msra.mxu0 %v5781_v45  ;;  %2383 = vmatpush1.bf16.msra.mxu1 %v5782_v44 }
 0x7ca   :  { %2357 = vmatprep.subr.bf16.mxu0 %v5783_v59  ;;  %2384 = vmatprep.subr.bf16.mxu1 %v5784_v61  ;;  %v5791_v59 = vld [vmem:[#allocation91_spill] sm:$0xff] }
 0x7cd   :  { %2358 = vmatpush1.bf16.msra.mxu0 %v5785_v0  ;;  %2385 = vmatpush1.bf16.msra.mxu1 %v5786_v21 }
 0x7ce   :  { %2359 = vmatprep.subr.bf16.mxu0 %v5787_v56  ;;  %2411 = vmatprep.subr.bf16.mxu1 %v5788_v34 }
 0x7d1   :  { %2360 = vmatpush1.bf16.msra.mxu0 %v5789_v60 }
 0x7d2   :  { %2452 = vmatprep.subr.bf16.mxu0 %v5790_v7 }
 0x843   :  { %v2202_v27 = vpop.f32.mrb[60].mxu1 }
 0x844   :  { %v2204_v45 = vpop.f32.mrb[61].mxu1 }
 0x845   :  { %v2206_v55 = vpop.f32.mrb[62].mxu1 }
 0x846   :  { %v2207_v44 = vpop.f32.mrb[63].mxu1 }
 0x847   :  { %v2161_v43 = vpop.f32.mrb[60].mxu0 }
 0x848   :  { %v2162_v36 = vadd.f32 %v2161_v43, %v5791_v59  ;;  %v2163_v61 = vpop.f32.mrb[61].mxu0  ;;  %v5793_v59 = vld [vmem:[#allocation90_spill] sm:$0xff] }
 0x849   :  { %v2164_v0 = vadd.f32 %v2163_v61, %v5792_v22  ;;  %v2165_v63 = vpop.f32.mrb[62].mxu0 }
 0x84a   :  { %v2203_v21 = vadd.f32 %v2202_v27, %v2162_v36  ;;  %v2166_v8 = vpop.f32.mrb[63].mxu0  ;;  %v5794_v63 = vld [vmem:[#allocation92_spill] sm:$0xff] }
 0x84b   :  { %v2205_v56 = vadd.f32 %v2204_v45, %v2164_v0 }
 0x84c   :  { %v3006_v7 = vmul.f32 -1.442695, %v2203_v21 }
 0x84d   :  { %v3007_v24 = vmul.f32 -1.442695, %v2205_v56 }
 0x84f   :  { %3370 = vpow2.f32 %v3007_v24 }
 0x850   :  { %3372 = vpow2.f32 %v3006_v7 }
 0x859   :  { %v3371_v55 = vpop.eup %3370 }
 0x85a   :  { %v3373_v44 = vpop.eup %3372  ;;  %v2300_v38 = vadd.f32 1.0, %v3371_v55 }
 0x85b   :  { %v2294_v2 = vadd.f32 1.0, %v3373_v44 }
 0x85c   :  { %3374 = vrcp.f32 %v2300_v38 }
 0x85d   :  { %3376 = vrcp.f32 %v2294_v2 }
 0x866   :  { %v3375_v24 = vpop.eup %3374 }
 0x867   :  { %v2284_v62 = vpop.f32.mrb[64].mxu0  ;;  %v3377_v0 = vpop.eup %3376  ;;  %v2310_v56 = vmul.f32 %v3375_v24, %v4891_v35  ;;  %v3549_v24 = vld [vmem:[#allocation8 + $0x184] ss:$16 sps:$4 sm:$0xff]  }
 0x868   :  { %v2286_v34 = vpop.f32.mrb[65].mxu0 }
 0x869   :  { %v2288_v23 = vpop.f32.mrb[66].mxu0 }
 0x86a   :  { %v2289_v60 = vpop.f32.mrb[67].mxu0 }
 0x883   :  { %v2243_v43 = vpop.f32.mrb[64].mxu1 }
 0x884   :  { %v2244_v47 = vadd.f32 %v2243_v43, %v5793_v59  ;;  %v2245_v22 = vpop.f32.mrb[65].mxu1  ;;  %v3540_v59 = vld [vmem:[#allocation8 + $0x6c] ss:$16 sps:$4 sm:$0xff]  }
 0x885   :  { %v2246_v36 = vadd.f32 %v2245_v22, %v5794_v63  ;;  %v2247_v8 = vpop.f32.mrb[66].mxu1  ;;  %v3541_v22 = vld [vmem:[#allocation8 + $0x144] ss:$16 sps:$4 sm:$0xff]   ;;  %v3542_v63 = vld [vmem:[#allocation8 + $0x68] ss:$16 sps:$4 sm:$0xff]  }
 0x886   :  { %v2285_v27 = vadd.f32 %v2284_v62, %v2244_v47  ;;  %v2248_v45 = vpop.f32.mrb[67].mxu1  ;;  %v3544_v8 = vld [vmem:[#allocation8 + $0x8c] ss:$16 sps:$4 sm:$0xff]  }
 0x887   :  { %v2287_v23 = vadd.f32 %v2286_v34, %v2246_v36  ;;  %v3543_v36 = vld [vmem:[#allocation8 + $0x140] ss:$16 sps:$4 sm:$0xff]   ;;  %v3546_v45 = vld [vmem:[#allocation8 + $0x88] ss:$16 sps:$4 sm:$0xff]  }
 0x888   :  { %3378 = vtanh.f32 %v2285_v27  ;;  %v3545_v27 = vld [vmem:[#allocation8 + $0x164] ss:$16 sps:$4 sm:$0xff]  }
 0x889   :  { %v3008_v61 = vmul.f32 -1.442695, %v2287_v23  ;;  %v3547_v23 = vld [vmem:[#allocation8 + $0x160] ss:$16 sps:$4 sm:$0xff]  }
 0x88b   :  { %3380 = vpow2.f32 %v3008_v61  ;;  %v3548_v61 = vld [vmem:[#allocation8 + $0xac] ss:$16 sps:$4 sm:$0xff]  }
 0x892   :  { %v3379_v21 = vpop.eup %3378 }
 0x893   :  { %v2311_v60 = vmul.f32 %v3379_v21, %v3377_v0  ;;  %v3550_v0 = vld [vmem:[#allocation8 + $0xa8] ss:$16 sps:$4 sm:$0xff]   ;;  %v3551_v21 = vld [vmem:[#allocation8 + $0x180] ss:$16 sps:$4 sm:$0xff]  }
 0x895   :  { %v3381_v7 = vpop.eup %3380  ;;  %v5026_v55 = vadd.f32 %v2311_v60, %v2310_v56  ;;  %v3552_v56 = vld [vmem:[#allocation8 + $0xcc] ss:$16 sps:$4 sm:$0xff]   ;;  %v3553_v60 = vld [vmem:[#allocation8 + $0x1a4] ss:$16 sps:$4 sm:$0xff]  }
 0x896   :  { %v2307_v44 = vadd.f32 1.0, %v3381_v7  ;;  %v3554_v7 = vld [vmem:[#allocation8 + $0xc8] ss:$16 sps:$4 sm:$0xff]  }
 0x897   :  { %3382 = vtanh.f32 %v5026_v55 }
 0x898   :  { %3384 = vrcp.f32 %v2307_v44  ;;  %v3555_v44 = vld [vmem:[#allocation8 + $0x1a0] ss:$16 sps:$4 sm:$0xff]  }
 0x8a1   :  { %v3383_v47 = vpop.eup %3382 }
 0x8a2   :  { %v3385_v38 = vpop.eup %3384 }
 0x8a3   :  { %v2314_v2 = vmul.f32 %v3385_v38, %v3383_v47  ;;  %v3556_v47 = vld [vmem:[#allocation8 + $0xec] ss:$16 sps:$4 sm:$0xff]   ;;  %v3557_v38 = vld [vmem:[#allocation8 + $0x1c4] ss:$16 sps:$4 sm:$0xff]  }
 0x8a5   :  { %v5029_v62 = vpack.c.bf16 %v2314_v2, %v2314_v2  ;;  %v2317_v34 = vrot.slane %v2314_v2, 6  ;;  %v3558_v2 = vld [vmem:[#allocation8 + $0xe8] ss:$16 sps:$4 sm:$0xff]  }
 0x8a7   :  { %3017 = vmatmul.mubr.msk.bf16.vlgmr.msra.gmra.mrb[68].mxu1 %vm3925_vm3, %v5029_v62  ;;  %v2319_v35 = vsel %vm529_vm4, 0.0, %v2317_v34  ;;  %v3560_v34 = vld [vmem:[#allocation8 + $0x10c] ss:$16 sps:$4 sm:$0xff]  }
 0x8a8   :  { %2412 = vmatpush1.bf16.msra.mxu1 %v4558_v11  ;;  %v3010_v43 = vpack.c.bf16 %v2319_v35, %v2319_v35  ;;  %v5795_v11 = vld [vmem:[#allocation65_spill] sm:$0xff] }
 0x8a9   :  { %2413 = vmatprep.subr.bf16.mxu1 %v4561_v14  ;;  %v5796_v14 = vld [vmem:[#allocation83_spill] sm:$0xff] }
 0x8aa   :  { %3011 = vmatprep.mubr.msk.bf16.mxu0 %vm3939_vm7, %v3010_v43  ;;  %3020 = vmatprep.mubr.msk.bf16.mxu1 %vm3939_vm7, %v3010_v43  ;;  %v3561_v35 = vld [vmem:[#allocation8 + $0x1e4] ss:$16 sps:$4 sm:$0xff]   ;;  %v3562_v43 = vld [vmem:[#allocation8 + $0x108] ss:$16 sps:$4 sm:$0xff]  }
 0x8ab   :  { %3014 = vmatmul.mubr.msk.bf16.vlgmr.msra.gmra.mrb[68].mxu0 %vm3944_vm8, %v5029_v62 }
 0x8ac   :  { %2414 = vmatpush1.bf16.msra.mxu1 %v4571_v30  ;;  %2453 = vmatpush1.bf16.msra.mxu0 %v4574_v17  ;;  %v5797_v30 = vld [vmem:[#allocation32_spill] sm:$0xff]  ;;  %v5798_v17 = vld [vmem:[#allocation85_spill] sm:$0xff] }
 0x8ad   :  { %2415 = vmatprep.subr.bf16.mxu1 %v4577_v16  ;;  %2454 = vmatprep.subr.bf16.mxu0 %v4580_v13  ;;  %v5799_v16 = vld [vmem:[#allocation66_spill] sm:$0xff] }
 0x8ae   :  { %2484 = vmatprep.mubr.bf16.mxu0 %v5432_v26  ;;  %v5800_v13 = vld [vmem:[#allocation82_spill] sm:$0xff] }
 0x8b0   :  { %2416 = vmatpush1.bf16.msra.mxu1 %v4584_v41  ;;  %2455 = vmatpush1.bf16.msra.mxu0 %v4587_v48  ;;  %v5801_v41 = vld [vmem:[#allocation33_spill] sm:$0xff] }
 0x8b1   :  { %2417 = vmatprep.subr.bf16.mxu1 %v4590_v53  ;;  %2456 = vmatprep.subr.bf16.mxu0 %v4593_v52  ;;  %v3519_v48 = vld [vmem:[#allocation8 + $0x40] ss:$16 sps:$4 sm:$0xff]   ;;  %v3520_v52 = vld [vmem:[#allocation8 + $0x64] ss:$16 sps:$4 sm:$0xff]  }
 0x8b2   :  { %v5802_v53 = vld [vmem:[#allocation67_spill] sm:$0xff] }
 0x8b4   :  { %2418 = vmatpush1.bf16.msra.mxu1 %v4596_v54  ;;  %2457 = vmatpush1.bf16.msra.mxu0 %v4599_v9  ;;  %v5803_v54 = vld [vmem:[#allocation34_spill] sm:$0xff]  ;;  %v3521_v9 = vld [vmem:[#allocation8 + $0x60] ss:$16 sps:$4 sm:$0xff]  }
 0x8b5   :  { %2419 = vmatprep.subr.bf16.mxu1 %v4602_v10  ;;  %2458 = vmatprep.subr.bf16.mxu0 %v4605_v33  ;;  %v5804_v10 = vld [vmem:[#allocation69_spill] sm:$0xff] }
 0x8b6   :  { %v3522_v33 = vld [vmem:[#allocation8 + $0x84] ss:$16 sps:$4 sm:$0xff]  }
 0x8b8   :  { %2420 = vmatpush1.bf16.msra.mxu1 %v4608_v1  ;;  %2459 = vmatpush1.bf16.msra.mxu0 %v4611_v20  ;;  %v5805_v1 = vld [vmem:[#allocation35_spill] sm:$0xff] }
 0x8b9   :  { %2421 = vmatprep.subr.bf16.mxu1 %v5669_v37  ;;  %2460 = vmatprep.subr.bf16.mxu0 %v5670_v32  ;;  %v3523_v20 = vld [vmem:[#allocation8 + $0x80] ss:$16 sps:$4 sm:$0xff]   ;;  %v5808_v37 = vld [vmem:[#allocation78_spill] sm:$0xff]  ;;  %v3526_v32 = vld [vmem:[#allocation8 + $0xc4] ss:$16 sps:$4 sm:$0xff]  }
 0x8bc   :  { %2422 = vmatpush1.bf16.msra.mxu1 %v5671_v40  ;;  %2461 = vmatpush1.bf16.msra.mxu0 %v5672_v42  ;;  %v5809_v40 = vld [vmem:[#allocation80_spill] sm:$0xff]  ;;  %v3527_v42 = vld [vmem:[#allocation8 + $0xc0] ss:$16 sps:$4 sm:$0xff]  }
 0x8bd   :  { %2423 = vmatprep.subr.bf16.mxu1 %v5673_v31  ;;  %2462 = vmatprep.subr.bf16.mxu0 %v5674_v58  ;;  %v3528_v31 = vld [vmem:[#allocation8 + $0xc] ss:$16 sps:$4 sm:$0xff]   ;;  %v3529_v58 = vld [vmem:[#allocation8 + $0xe4] ss:$16 sps:$4 sm:$0xff]  }
 0x8c0   :  { %2424 = vmatpush1.bf16.msra.mxu1 %v5675_v25  ;;  %2463 = vmatpush1.bf16.msra.mxu0 %v5676_v6  ;;  %v3530_v25 = vld [vmem:[#allocation8 + $0x8] ss:$16 sps:$4 sm:$0xff]   ;;  %v3531_v6 = vld [vmem:[#allocation8 + $0xe0] ss:$16 sps:$4 sm:$0xff]  }
 0x8c1   :  { %2425 = vmatprep.subr.bf16.mxu1 %v5677_v49  ;;  %2464 = vmatprep.subr.bf16.mxu0 %v5678_v5  ;;  %v3532_v49 = vld [vmem:[#allocation8 + $0x2c] ss:$16 sps:$4 sm:$0xff]   ;;  %v3533_v5 = vld [vmem:[#allocation8 + $0x104] ss:$16 sps:$4 sm:$0xff]  }
 0x8c4   :  { %2426 = vmatpush1.bf16.msra.mxu1 %v5679_v29  ;;  %2465 = vmatpush1.bf16.msra.mxu0 %v4647_v18  ;;  %v3525_v18 = vld [vmem:[#allocation8 + $0xa0] ss:$16 sps:$4 sm:$0xff]   ;;  %v3534_v29 = vld [vmem:[#allocation8 + $0x28] ss:$16 sps:$4 sm:$0xff]  }
 0x8c5   :  { %2427 = vmatprep.subr.bf16.mxu1 %v5680_v39  ;;  %2466 = vmatprep.subr.bf16.mxu0 %v4653_v51  ;;  %v3524_v51 = vld [vmem:[#allocation8 + $0xa4] ss:$16 sps:$4 sm:$0xff]   ;;  %v3535_v39 = vld [vmem:[#allocation8 + $0x100] ss:$16 sps:$4 sm:$0xff]  }
 0x8c8   :  { %2428 = vmatpush1.bf16.msra.mxu1 %v5681_v12  ;;  %2467 = vmatpush1.bf16.msra.mxu0 %v5682_v15  ;;  %v3536_v12 = vld [vmem:[#allocation8 + $0x4c] ss:$16 sps:$4 sm:$0xff]   ;;  %v3537_v15 = vld [vmem:[#allocation8 + $0x124] ss:$16 sps:$4 sm:$0xff]  }
 0x8c9   :  { %2429 = vmatprep.subr.bf16.mxu1 %v4662_v46  ;;  %2531 = vmatprep.subr.bf16.mxu0 %v4941_v3  ;;  %v5807_v46 = vld [vmem:[#allocation81_spill] sm:$0xff]  ;;  %v3538_v3 = vld [vmem:[#allocation8 + $0x48] ss:$16 sps:$4 sm:$0xff]  }
 0x8cb   :  { %3026 = vmatmul.mubr.msk.bf16.vlgmr.msra.gmra.mrb[72].mxu0 %vm3925_vm3, %v5029_v62 }
 0x8cc   :  { %2430 = vmatpush1.bf16.msra.mxu1 %v4669_v50  ;;  %2532 = vmatpush1.bf16.msra.mxu0 %v4948_v57  ;;  %v5806_v50 = vld [vmem:[#allocation79_spill] sm:$0xff] }
 0x8cd   :  { %2431 = vmatprep.subr.bf16.mxu1 %v5795_v11  ;;  %2533 = vmatprep.subr.bf16.mxu0 %v5796_v14  ;;  %v3539_v57 = vld [vmem:[#allocation8 + $0x120] ss:$16 sps:$4 sm:$0xff]   ;;  %v3564_v14 = vld [vmem:[#allocation8 + $0x12c] ss:$16 sps:$4 sm:$0xff]  }
 0x8ce   :  { %v3563_v11 = vld [vmem:[#allocation8 + $0x1e0] ss:$16 sps:$4 sm:$0xff]  }
 0x8d0   :  { %2432 = vmatpush1.bf16.msra.mxu1 %v5797_v30  ;;  %2534 = vmatpush1.bf16.msra.mxu0 %v5798_v17  ;;  %v3565_v30 = vld [vmem:[#allocation8 + $0x204] ss:$16 sps:$4 sm:$0xff]   ;;  %v3566_v17 = vld [vmem:[#allocation8 + $0x128] ss:$16 sps:$4 sm:$0xff]  }
 0x8d1   :  { %2433 = vmatprep.subr.bf16.mxu1 %v5799_v16  ;;  %2535 = vmatprep.subr.bf16.mxu0 %v5800_v13  ;;  %v3567_v13 = vld [vmem:[#allocation8 + $0x14c] ss:$16 sps:$4 sm:$0xff]  }
 0x8d4   :  { %2434 = vmatpush1.bf16.msra.mxu1 %v5801_v41  ;;  %2536 = vmatpush1.bf16.msra.mxu0 %v3519_v48  ;;  %v3568_v48 = vld [vmem:[#allocation8 + $0x148] ss:$16 sps:$4 sm:$0xff]  }
 0x8d5   :  { %2435 = vmatprep.subr.bf16.mxu1 %v5802_v53  ;;  %2537 = vmatprep.subr.bf16.mxu0 %v3520_v52  ;;  %v3569_v52 = vld [vmem:[#allocation8 + $0x20c] ss:$16 sps:$4 sm:$0xff]  }
 0x8d8   :  { %2436 = vmatpush1.bf16.msra.mxu1 %v5803_v54  ;;  %2538 = vmatpush1.bf16.msra.mxu0 %v3521_v9 }
 0x8d9   :  { %2437 = vmatprep.subr.bf16.mxu1 %v5804_v10  ;;  %2539 = vmatprep.subr.bf16.mxu0 %v3522_v33 }
 0x8dc   :  { %2438 = vmatpush1.bf16.msra.mxu1 %v5805_v1  ;;  %2540 = vmatpush1.bf16.msra.mxu0 %v3523_v20 }
 0x8dd   :  { %2439 = vmatprep.subr.bf16.mxu1 %v5806_v50  ;;  %2541 = vmatprep.subr.bf16.mxu0 %v3524_v51  ;;  %v5811_v51 = vld [vmem:[#allocation97_spill] sm:$0xff] }
 0x8e0   :  { %2440 = vmatpush1.bf16.msra.mxu1 %v5807_v46  ;;  %2542 = vmatpush1.bf16.msra.mxu0 %v3525_v18 }
 0x8e1   :  { %2441 = vmatprep.subr.bf16.mxu1 %v5808_v37  ;;  %2543 = vmatprep.subr.bf16.mxu0 %v3526_v32 }
 0x8e4   :  { %2442 = vmatpush1.bf16.msra.mxu1 %v5809_v40  ;;  %2544 = vmatpush1.bf16.msra.mxu0 %v3527_v42 }
 0x8e5   :  { %2613 = vmatprep.subr.bf16.mxu1 %v3528_v31  ;;  %2545 = vmatprep.subr.bf16.mxu0 %v3529_v58 }
 0x8e7   :  { %3023 = vmatmul.mubr.msk.bf16.vlgmr.msra.gmra.mrb[72].mxu1 %vm3944_vm8, %v5029_v62  ;;  %v3559_v62 = vld [vmem:[#allocation8 + $0x1c0] ss:$16 sps:$4 sm:$0xff]  }
 0x8e8   :  { %2614 = vmatpush1.bf16.msra.mxu1 %v3530_v25  ;;  %2546 = vmatpush1.bf16.msra.mxu0 %v3531_v6 }
 0x8e9   :  { %2615 = vmatprep.subr.bf16.mxu1 %v3532_v49  ;;  %2547 = vmatprep.subr.bf16.mxu0 %v3533_v5 }
 0x8ec   :  { %2616 = vmatpush1.bf16.msra.mxu1 %v3534_v29  ;;  %2548 = vmatpush1.bf16.msra.mxu0 %v3535_v39 }
 0x8ed   :  { %2617 = vmatprep.subr.bf16.mxu1 %v3536_v12  ;;  %2549 = vmatprep.subr.bf16.mxu0 %v3537_v15  ;;  %v5812_v12 = vld [vmem:[#allocation93_spill] sm:$0xff] }
 0x8f0   :  { %2618 = vmatpush1.bf16.msra.mxu1 %v3538_v3  ;;  %2550 = vmatpush1.bf16.msra.mxu0 %v3539_v57  ;;  %v5813_v57 = vld [vmem:[#allocation94_spill] sm:$0xff] }
 0x8f1   :  { %2619 = vmatprep.subr.bf16.mxu1 %v3540_v59  ;;  %2551 = vmatprep.subr.bf16.mxu0 %v3541_v22 }
 0x8f4   :  { %2620 = vmatpush1.bf16.msra.mxu1 %v3542_v63  ;;  %2552 = vmatpush1.bf16.msra.mxu0 %v3543_v36 }
 0x8f5   :  { %2621 = vmatprep.subr.bf16.mxu1 %v3544_v8  ;;  %2553 = vmatprep.subr.bf16.mxu0 %v3545_v27 }
 0x8f8   :  { %2622 = vmatpush1.bf16.msra.mxu1 %v3546_v45  ;;  %2554 = vmatpush1.bf16.msra.mxu0 %v3547_v23 }
 0x8f9   :  { %2623 = vmatprep.subr.bf16.mxu1 %v3548_v61  ;;  %2555 = vmatprep.subr.bf16.mxu0 %v3549_v24 }
 0x8fc   :  { %2624 = vmatpush1.bf16.msra.mxu1 %v3550_v0  ;;  %2556 = vmatpush1.bf16.msra.mxu0 %v3551_v21 }
 0x8fd   :  { %2625 = vmatprep.subr.bf16.mxu1 %v3552_v56  ;;  %2557 = vmatprep.subr.bf16.mxu0 %v3553_v60 }
 0x900   :  { %2626 = vmatpush1.bf16.msra.mxu1 %v3554_v7  ;;  %2558 = vmatpush1.bf16.msra.mxu0 %v3555_v44 }
 0x901   :  { %2627 = vmatprep.subr.bf16.mxu1 %v3556_v47  ;;  %2559 = vmatprep.subr.bf16.mxu0 %v3557_v38 }
 0x904   :  { %2628 = vmatpush1.bf16.msra.mxu1 %v3558_v2  ;;  %2560 = vmatpush1.bf16.msra.mxu0 %v3559_v62 }
 0x905   :  { %2629 = vmatprep.subr.bf16.mxu1 %v3560_v34  ;;  %2561 = vmatprep.subr.bf16.mxu0 %v3561_v35  ;;  %v3571_v35 = vld [vmem:[#allocation8 + $0x208] ss:$16 sps:$4 sm:$0xff]  }
 0x908   :  { %2630 = vmatpush1.bf16.msra.mxu1 %v3562_v43  ;;  %2562 = vmatpush1.bf16.msra.mxu0 %v3563_v11  ;;  %v3572_v43 = vld [vmem:[#allocation8 + $0x224] ss:$16 sps:$4 sm:$0xff]   ;;  %v3573_v11 = vld [vmem:[#allocation8 + $0x22c] ss:$16 sps:$4 sm:$0xff]  }
 0x909   :  { %2631 = vmatprep.subr.bf16.mxu1 %v3564_v14  ;;  %2572 = vmatprep.subr.bf16.mxu0 %v3565_v30  ;;  %v3575_v14 = vld [vmem:[#allocation8 + $0x228] ss:$16 sps:$4 sm:$0xff]   ;;  %v3576_v30 = vld [vmem:[#allocation8 + $0x244] ss:$16 sps:$4 sm:$0xff]  }
 0x90c   :  { %2632 = vmatpush1.bf16.msra.mxu1 %v3566_v17  ;;  %v3578_v17 = vld [vmem:[#allocation8 + $0x240] ss:$16 sps:$4 sm:$0xff]  }
 0x90d   :  { %2633 = vmatprep.subr.bf16.mxu1 %v3567_v13  ;;  %v3579_v13 = vld [vmem:[#allocation8 + $0x248] ss:$16 sps:$4 sm:$0xff]  }
 0x910   :  { %2634 = vmatpush1.bf16.msra.mxu1 %v3568_v48  ;;  %v3580_v48 = vld [vmem:[#allocation8 + $0x264] ss:$16 sps:$4 sm:$0xff]  }
 0x911   :  { %2635 = vmatprep.subr.bf16.mxu1 %v5799_v16 }
 0x914   :  { %2636 = vmatpush1.bf16.msra.mxu1 %v5801_v41 }
 0x915   :  { %2637 = vmatprep.subr.bf16.mxu1 %v5802_v53 }
 0x918   :  { %2638 = vmatpush1.bf16.msra.mxu1 %v5803_v54  ;;  %v5810_v54 = vld [vmem:[#allocation96_spill] sm:$0xff] }
 0x919   :  { %2639 = vmatprep.subr.bf16.mxu1 %v5804_v10 }
 0x91c   :  { %2640 = vmatpush1.bf16.msra.mxu1 %v5805_v1 }
 0x91d   :  { %2641 = vmatprep.subr.bf16.mxu1 %v5806_v50 }
 0x920   :  { %2642 = vmatpush1.bf16.msra.mxu1 %v5807_v46 }
 0x921   :  { %2643 = vmatprep.subr.bf16.mxu1 %v5808_v37 }
 0x924   :  { %2644 = vmatpush1.bf16.msra.mxu1 %v5809_v40 }
 0x925   :  { %2654 = vmatprep.subr.bf16.mxu1 %v3569_v52  ;;  %v3581_v52 = vld [vmem:[#allocation8 + $0x26c] ss:$16 sps:$4 sm:$0xff]  }
 0x97a   :  { %v2404_v16 = vpop.f32.mrb[68].mxu1 }
 0x97b   :  { %v2406_v41 = vpop.f32.mrb[69].mxu1 }
 0x97c   :  { %v2408_v9 = vpop.f32.mrb[70].mxu1 }
 0x97d   :  { %v2409_v53 = vpop.f32.mrb[71].mxu1  ;;  %v3585_v9 = vld [vmem:[#allocation8 + $0x28c] ss:$16 sps:$4 sm:$0xff]  }
 0x97e   :  { %v2363_v33 = vpop.f32.mrb[68].mxu0  ;;  %v3586_v53 = vld [vmem:[#allocation8 + $0x280] ss:$16 sps:$4 sm:$0xff]  }
 0x97f   :  { %v2364_v20 = vadd.f32 %v2363_v33, %v5810_v54  ;;  %v2365_v10 = vpop.f32.mrb[69].mxu0  ;;  %v3587_v33 = vld [vmem:[#allocation8 + $0x288] ss:$16 sps:$4 sm:$0xff]   ;;  %v3588_v54 = vld [vmem:[#allocation8 + $0x2a4] ss:$16 sps:$4 sm:$0xff]  }
 0x980   :  { %v2366_v1 = vadd.f32 %v2365_v10, %v5811_v51  ;;  %v2367_v18 = vpop.f32.mrb[70].mxu0  ;;  %v3590_v10 = vld [vmem:[#allocation8 + $0x2a0] ss:$16 sps:$4 sm:$0xff]   ;;  %v3591_v51 = vld [vmem:[#allocation8 + $0x2a8] ss:$16 sps:$4 sm:$0xff]  }
 0x981   :  { %v2405_v50 = vadd.f32 %v2404_v16, %v2364_v20  ;;  %v2368_v32 = vpop.f32.mrb[71].mxu0  ;;  %v3582_v16 = vld [vmem:[#allocation8 + $0x260] ss:$16 sps:$4 sm:$0xff]   ;;  %v3589_v20 = vld [vmem:[#allocation8 + $0x2ac] ss:$16 sps:$4 sm:$0xff]  }
 0x982   :  { %v2407_v46 = vadd.f32 %v2406_v41, %v2366_v1  ;;  %v3583_v41 = vld [vmem:[#allocation8 + $0x268] ss:$16 sps:$4 sm:$0xff]   ;;  %v3592_v1 = vld [vmem:[#allocation8 + $0x2c4] ss:$16 sps:$4 sm:$0xff]   ;;  %v3593_v18 = vld [vmem:[#allocation8 + $0x2cc] ss:$16 sps:$4 sm:$0xff]  }
 0x983   :  { %v3027_v25 = vmul.f32 -1.442695, %v2405_v50  ;;  %v3594_v50 = vld [vmem:[#allocation8 + $0x2c0] ss:$16 sps:$4 sm:$0xff]   ;;  %v3595_v32 = vld [vmem:[#allocation8 + $0x2c8] ss:$16 sps:$4 sm:$0xff]  }
 0x984   :  { %v3028_v58 = vmul.f32 -1.442695, %v2407_v46  ;;  %v3596_v46 = vld [vmem:[#allocation8 + $0x2e4] ss:$16 sps:$4 sm:$0xff]  }
 0x986   :  { %3386 = vpow2.f32 %v3028_v58 }
 0x987   :  { %3388 = vpow2.f32 %v3027_v25 }
 0x990   :  { %v3387_v6 = vpop.eup %3386 }
 0x991   :  { %v3389_v49 = vpop.eup %3388  ;;  %v2502_v5 = vadd.f32 1.0, %v3387_v6 }
 0x992   :  { %v2496_v29 = vadd.f32 1.0, %v3389_v49 }
 0x993   :  { %3390 = vrcp.f32 %v2502_v5 }
 0x994   :  { %3392 = vrcp.f32 %v2496_v29 }
 0x99d   :  { %v3391_v45 = vpop.eup %3390 }
 0x99e   :  { %v2486_v42 = vpop.f32.mrb[72].mxu0  ;;  %v3393_v23 = vpop.eup %3392  ;;  %v2512_v24 = vmul.f32 %v3391_v45, %v5026_v55  ;;  %v3570_v55 = vld [vmem:[#allocation8 + $0x200] ss:$16 sps:$4 sm:$0xff]  }
 0x99f   :  { %v2488_v37 = vpop.f32.mrb[73].mxu0 }
 0x9a0   :  { %v2490_v31 = vpop.f32.mrb[74].mxu0 }
 0x9a1   :  { %v2491_v40 = vpop.f32.mrb[75].mxu0  ;;  %v3599_v31 = vld [vmem:[#allocation8 + $0x2e8] ss:$16 sps:$4 sm:$0xff]  }
 0x9ba   :  { %v2445_v39 = vpop.f32.mrb[72].mxu1 }
 0x9bb   :  { %v2446_v15 = vadd.f32 %v2445_v39, %v5812_v12  ;;  %v2447_v3 = vpop.f32.mrb[73].mxu1 }
 0x9bc   :  { %v2448_v59 = vadd.f32 %v2447_v3, %v5813_v57  ;;  %v2449_v22 = vpop.f32.mrb[74].mxu1 }
 0x9bd   :  { %v2487_v63 = vadd.f32 %v2486_v42, %v2446_v15  ;;  %v2450_v36 = vpop.f32.mrb[75].mxu1  ;;  %v3597_v42 = vld [vmem:[#allocation8 + $0x2ec] ss:$16 sps:$4 sm:$0xff]  }
 0x9be   :  { %v2489_v8 = vadd.f32 %v2488_v37, %v2448_v59  ;;  %v3598_v37 = vld [vmem:[#allocation8 + $0x2e0] ss:$16 sps:$4 sm:$0xff]  }
 0x9bf   :  { %3394 = vtanh.f32 %v2487_v63 }
 0x9c0   :  { %v3029_v27 = vmul.f32 -1.442695, %v2489_v8 }
 0x9c2   :  { %3396 = vpow2.f32 %v3029_v27 }
 0x9c9   :  { %v3395_v61 = vpop.eup %3394 }
 0x9ca   :  { %v2513_v0 = vmul.f32 %v3395_v61, %v3393_v23 }
 0x9cc   :  { %v3397_v21 = vpop.eup %3396  ;;  %v5115_v56 = vadd.f32 %v2513_v0, %v2512_v24 }
 0x9cd   :  { %v2509_v60 = vadd.f32 1.0, %v3397_v21 }
 0x9ce   :  { %3398 = vtanh.f32 %v5115_v56 }
 0x9cf   :  { %3400 = vrcp.f32 %v2509_v60  ;;  %v3051_v60 = vld [vmem:[%s5149_s3] ss:$0 sm:$0xff] }
 0x9d8   :  { %v3399_v7 = vpop.eup %3398 }
 0x9d9   :  { %v3401_v44 = vpop.eup %3400 }
 0x9da   :  { %v2516_v47 = vmul.f32 %v3401_v44, %v3399_v7 }
 0x9dc   :  { %v2519_v38 = vrot.slane %v2516_v47, 6  ;;  %v5119_v34 = vpack.c.bf16 %v2516_v47, %v2516_v47 }
 0x9de   :  { %v2521_v2 = vsel %vm529_vm4, 0.0, %v2519_v38  ;;  %v3052_v38 = vld [vmem:[#allocation3] ss:$0 sm:$0xff] }
 0x9df   :  { %v3031_v62 = vpack.c.bf16 %v2521_v2, %v2521_v2 }
 0x9e1   :  { %3032 = vmatprep.mubr.msk.bf16.mxu0 %vm3939_vm7, %v3031_v62  ;;  %3041 = vmatprep.mubr.msk.bf16.mxu1 %vm3939_vm7, %v3031_v62 }
 0x9e2   :  { %3035 = vmatmul.mubr.msk.bf16.vlgmr.msra.gmra.mrb[16].mxu0 %vm3944_vm8, %v5119_v34  ;;  %3044 = vmatmul.mubr.msk.bf16.vlgmr.msra.gmra.mrb[16].mxu1 %vm3944_vm8, %v5119_v34 }
 0x9e3   :  { %2573 = vmatpush1.bf16.msra.mxu0 %v3570_v55  ;;  %2655 = vmatpush1.bf16.msra.mxu1 %v3571_v35 }
 0x9e4   :  { %2574 = vmatprep.subr.bf16.mxu0 %v3572_v43  ;;  %2656 = vmatprep.subr.bf16.mxu1 %v3573_v11 }
 0x9e5   :  { %2604 = vmatprep.mubr.bf16.mxu0 %v5432_v26  ;;  %2686 = vmatprep.mubr.bf16.mxu1 %v5432_v26  ;;  %v3584_v26 = vld [vmem:[#allocation8 + $0x284] ss:$16 sps:$4 sm:$0xff]  }
 0x9e7   :  { %2575 = vmatpush1.bf16.msra.mxu0 %v3574_v19  ;;  %2657 = vmatpush1.bf16.msra.mxu1 %v3575_v14 }
 0x9e8   :  { %2576 = vmatprep.subr.bf16.mxu0 %v3576_v30  ;;  %2658 = vmatprep.subr.bf16.mxu1 %v3577_v28 }
 0x9eb   :  { %2577 = vmatpush1.bf16.msra.mxu0 %v3578_v17  ;;  %2659 = vmatpush1.bf16.msra.mxu1 %v3579_v13 }
 0x9ec   :  { %2578 = vmatprep.subr.bf16.mxu0 %v3580_v48  ;;  %2660 = vmatprep.subr.bf16.mxu1 %v3581_v52 }
 0x9ef   :  { %2579 = vmatpush1.bf16.msra.mxu0 %v3582_v16  ;;  %2661 = vmatpush1.bf16.msra.mxu1 %v3583_v41 }
 0x9f0   :  { %2580 = vmatprep.subr.bf16.mxu0 %v3584_v26  ;;  %2662 = vmatprep.subr.bf16.mxu1 %v3585_v9 }
 0x9f3   :  { %2581 = vmatpush1.bf16.msra.mxu0 %v3586_v53  ;;  %2663 = vmatpush1.bf16.msra.mxu1 %v3587_v33 }
 0x9f4   :  { %2582 = vmatprep.subr.bf16.mxu0 %v3588_v54  ;;  %2664 = vmatprep.subr.bf16.mxu1 %v3589_v20 }
 0x9f7   :  { %2583 = vmatpush1.bf16.msra.mxu0 %v3590_v10  ;;  %2665 = vmatpush1.bf16.msra.mxu1 %v3591_v51 }
 0x9f8   :  { %2584 = vmatprep.subr.bf16.mxu0 %v3592_v1  ;;  %2666 = vmatprep.subr.bf16.mxu1 %v3593_v18 }
 0x9fb   :  { %2585 = vmatpush1.bf16.msra.mxu0 %v3594_v50  ;;  %2667 = vmatpush1.bf16.msra.mxu1 %v3595_v32 }
 0x9fc   :  { %2586 = vmatprep.subr.bf16.mxu0 %v3596_v46  ;;  %2668 = vmatprep.subr.bf16.mxu1 %v3597_v42 }
 0x9ff   :  { %2587 = vmatpush1.bf16.msra.mxu0 %v3598_v37  ;;  %2669 = vmatpush1.bf16.msra.mxu1 %v3599_v31 }
 0xa02   :  { %3038 = vmatmul.mubr.msk.bf16.vlgmr.msra.gmra.mrb[16].mxu0 %vm3925_vm3, %v5119_v34  ;;  %3047 = vmatmul.mubr.msk.bf16.vlgmr.msra.gmra.mrb[16].mxu1 %vm3925_vm3, %v5119_v34 }
 0xad5   :  { %v2606_v40 = vpop.f32.mrb[16].mxu0  ;;  %v2688_v58 = vpop.f32.mrb[16].mxu1 }
 0xad6   :  { %v3048_v25 = vmul.f32 -1.442695, %v2606_v40  ;;  %v2608_v6 = vpop.f32.mrb[17].mxu0  ;;  %v2690_v49 = vpop.f32.mrb[17].mxu1 }
 0xad7   :  { %v3049_v5 = vmul.f32 -1.442695, %v2608_v6  ;;  %v2610_v29 = vpop.f32.mrb[18].mxu0  ;;  %v2692_v39 = vpop.f32.mrb[18].mxu1  ;;  %v3050_v3 = vmul.f32 -1.442695, %v2690_v49 }
 0xad8   :  { %3402 = vpow2.f32 %v3048_v25  ;;  %v2611_v12 = vpop.f32.mrb[19].mxu0  ;;  %v2693_v15 = vpop.f32.mrb[19].mxu1 }
 0xad9   :  { %3404 = vpow2.f32 %v3049_v5 }
 0xada   :  { %3406 = vpow2.f32 %v3050_v3 }
 0xadb   :  { %3408 = vtanh.f32 %v2688_v58 }
 0xae2   :  { %v3403_v57 = vpop.eup %3402 }
 0xae3   :  { %v3405_v59 = vpop.eup %3404  ;;  %v2698_v22 = vadd.f32 1.0, %v3403_v57 }
 0xae4   :  { %v2704_v4 = vadd.f32 1.0, %v3405_v59  ;;  %v3407_v63 = vpop.eup %3406 }
 0xae5   :  { %3410 = vrcp.f32 %v2698_v22  ;;  %v3409_v36 = vpop.eup %3408  ;;  %v2711_v23 = vadd.f32 1.0, %v3407_v63 }
 0xae6   :  { %3412 = vrcp.f32 %v2704_v4 }
 0xae7   :  { %3414 = vrcp.f32 %v2711_v23 }
 0xaef   :  { %v3411_v8 = vpop.eup %3410 }
 0xaf0   :  { %v3413_v27 = vpop.eup %3412  ;;  %v2715_v45 = vmul.f32 %v3411_v8, %v3409_v36 }
 0xaf1   :  { %v2714_v61 = vmul.f32 %v3413_v27, %v5115_v56  ;;  %v3415_v0 = vpop.eup %3414 }
 0xaf3   :  { %v2716_v24 = vadd.f32 %v2715_v45, %v2714_v61 }
 0xaf5   :  { %3416 = vtanh.f32 %v2716_v24 }
 0xaff   :  { %v3417_v21 = vpop.eup %3416 }
 0xb00   :  { %v2718_v7 = vmul.f32 %v3417_v21, %v3415_v0 }
 0xb02   :  { %v2726_v44 = vmul.f32 %v3051_v60, %v2718_v7 }
 0xb04   :  { %v2728_v47 = vsel %vm2727_vm9, %v2726_v44, 0.0 }
 0xb05   :  { %2729 = vadd.xlane.f32.xlu0 %v2728_v47 }
 0xb92   :  { %v2730_v2 = vpop.xlane.xlu0 %2729 }
 0xb93   :  { %v2738_v62 = vadd.f32 %v3052_v38, %v2730_v2 }
 0xb95   :  { %2740 = vst.msk [vmem:[%s5151_s5 - $0x2] sm:$0xc] %vm2739_vm10, %v2738_v62 }
 0xb96   :  { %2745 = vsyncpa [#allocation5], 1 }
 0xb97   :  { %2746 = vsyncpa [#allocation7], 1 }

</bundles_post_ra>
